<compile_context>
chip_gen: v7x
topology: tpu7x:2x2x1
jax: 0.10.0
libtpu: 0.0.40
codegen_flags: <defaults>
</compile_context>

<pallas_src>
import functools

import jax
import jax.numpy as jnp
from jax.experimental import pallas as pl
from jax.experimental.pallas import tpu as pltpu

_LANE = 128      # channels are zero-padded up to a multiple of this (lane width)
_SUBLANE = 8     # padded W is rounded up to a multiple of this (sublane width)

_WEIGHT_PIPELINE_OK = True   # flipped off at runtime if pl.Buffered(1) is rejected


def _round_up(v, m):
    return (v + m - 1) // m * m


def _hardswish(x):
    # x * hardtanh(x + 3, 0, 6) / 6
    return x * jnp.clip(x + 3.0, 0.0, 6.0) * (1.0 / 6.0)


def _bottleneck_kernel(xc_ref, xt_ref, xb_ref, w1_ref, b1_ref, w2_ref, b2_ref,
                       out_ref, y1_ref, *, add, h_true, h_padded):
    # xc_ref : (1, TH, Wp, C1p)   input rows of this tile (W zero-padded)
    # xt_ref : (1, 1,  Wp, C1p)   row above the tile (clamped at the image edge)
    # xb_ref : (1, 1,  Wp, C1p)   row below the tile (clamped at the image edge)
    # w1_ref : (C1p, Cmp)         1x1 conv weights, BN scale folded in
    # b1_ref : (1, Cmp)           folded BN bias (f32)
    # w2_ref : (3, 3, Cmp, C2p)   3x3 conv weights, BN scale folded in
    # b2_ref : (1, C2p)           folded BN bias (f32)
    # out_ref: (1, TH, W, C2p)
    # y1_ref : (TH + 2, Wp, Cmp)  VMEM scratch: zero-padded cv1 activation band
    _, TH, Wp, C1p = xc_ref.shape
    W = out_ref.shape[2]
    Cmp = w1_ref.shape[1]
    C2p = w2_ref.shape[3]

    i = pl.program_id(1)
    row0 = i * TH                        # global image row of the first centre row

    # cv2 expects a ZERO-padded y1 band (hardswish(bn_bias) != 0), so the W pad
    # columns are always masked, and halo / padded rows are masked at the image
    # borders (clamped halo fetches are therefore safe).
    col = jax.lax.broadcasted_iota(jnp.int32, (Wp, 1), 0)
    col_ok = (col >= 1) & (col <= W)                          # (Wp, 1)

    def cv1(x2d):                        # (R, C1p) -> (R, Cmp) f32
        y = jnp.dot(x2d, w1_ref[...], preferred_element_type=jnp.float32)
        return _hardswish(y + b1_ref[...])

    # ---- cv1: 1x1 conv written straight into the scratch band (no concat) ----
    yc = cv1(xc_ref[0].reshape(TH * Wp, C1p)).reshape(TH, Wp, Cmp)
    keep_c = col_ok[None]                                     # (1, Wp, 1)
    if h_padded:                         # rows past the true image height are pad
        grow = row0 + jax.lax.broadcasted_iota(jnp.int32, (TH, 1, 1), 0)
        keep_c = keep_c & (grow < h_true)
    y1_ref[1:TH + 1] = jnp.where(keep_c, yc, 0.0).astype(y1_ref.dtype)

    keep_t = col_ok & (row0 > 0)                 # top image border -> zero halo
    y1_ref[0] = jnp.where(keep_t, cv1(xt_ref[0, 0]), 0.0).astype(y1_ref.dtype)

    keep_b = col_ok & (row0 + TH < h_true)       # bottom image border -> zero halo
    y1_ref[TH + 1] = jnp.where(keep_b, cv1(xb_ref[0, 0]), 0.0).astype(y1_ref.dtype)

    # ---- cv2: 3x3 conv as 9 accumulating matmuls with K = Cmp -----------------
    acc = None
    for dy in range(3):
        band = y1_ref[dy:dy + TH]                             # (TH, Wp, Cmp)
        for dx in range(3):
            lhs = band[:, dx:dx + W, :].reshape(TH * W, Cmp)
            part = jnp.dot(lhs, w2_ref[dy, dx],
                           preferred_element_type=jnp.float32)
            acc = part if acc is None else acc + part
    y2 = _hardswish(acc + b2_ref[...]).reshape(TH, W, C2p)

    if add:
        # Residual: re-read the centre input columns in their native dtype.
        y2 = y2 + xc_ref[0, :, 1:W + 1, :].astype(jnp.float32)
    out_ref[0] = y2.astype(out_ref.dtype)


def bottleneck_forward(x_nhwc, w1, s1, b1, w2, s2, b2, *, add, tile_h=32,
                       vmem_limit_bytes=None, single_buffer_weights=True,
                       depad_output=True):
    """YOLOP Bottleneck forward (inference).

    x_nhwc: (N, H, W, C1).  w1: (C1, C_).  w2: (3, 3, C_, C2) (HWIO).
    s*/b*: folded BatchNorm scale / bias per channel ((C,) or (1, C)).

    Tuning knobs (per TPU generation):
      tile_h           : rows per grid step.  Sweep 16/32/64; bigger tiles cut
                         the ~0.35us per-step overhead and the (tile_h+2)/tile_h
                         cv1 halo recompute, at the cost of VMEM.
      vmem_limit_bytes : raise to 64-96 MiB on v5e/v6e (128 MiB VMEM parts)
                         together with a larger tile_h; keep None / <=48 MiB on
                         v7x (64 MiB VMEM) with a smaller tile_h.
      depad_output     : if False, the lane-padded (N, H, W, C2p) layout is
                         returned (avoids an extra HBM pass when C2 % 128 != 0
                         and the next layer consumes the padded layout).
    """
    global _WEIGHT_PIPELINE_OK

    N, H, W, C1 = x_nhwc.shape
    C_ = w1.shape[1]
    C2 = w2.shape[-1]
    dt = x_nhwc.dtype
    if add:
        assert C1 == C2, "residual shortcut requires c1 == c2"

    tile_h = max(1, min(tile_h, H))
    n_ht = pl.cdiv(H, tile_h)
    Hpad = n_ht * tile_h                 # H rounded up; extra rows are masked

    C1p = _round_up(C1, _LANE)
    Cmp = _round_up(C_, _LANE)
    C2p = _round_up(C2, _LANE)
    Wp = _round_up(W + 2, _SUBLANE)      # W + 1-px halo each side, sublane aligned

    s1 = jnp.asarray(s1, jnp.float32).reshape(-1)
    b1 = jnp.asarray(b1, jnp.float32).reshape(-1)
    s2 = jnp.asarray(s2, jnp.float32).reshape(-1)
    b2 = jnp.asarray(b2, jnp.float32).reshape(-1)

    # Fold BN scale into the conv weights; zero-pad channels to lane multiples.
    w1f = jnp.asarray(w1, jnp.float32) * s1[None, :]
    w1p = jnp.zeros((C1p, Cmp), jnp.float32).at[:C1, :C_].set(w1f).astype(dt)
    b1p = jnp.zeros((1, Cmp), jnp.float32).at[0, :C_].set(b1)

    w2f = jnp.asarray(w2, jnp.float32) * s2[None, None, None, :]
    w2p = jnp.zeros((3, 3, Cmp, C2p), jnp.float32).at[:, :, :C_, :C2].set(w2f).astype(dt)
    b2p = jnp.zeros((1, C2p), jnp.float32).at[0, :C2].set(b2)
    # TODO(synk): on v7x, optionally quantize w2p to fp8 if accuracy allows.

    # Single zero-pad pass over the input: 1 halo column each side in W (rounded
    # to a sublane multiple), channels to C1p, and (only if H % tile_h != 0) a
    # few zero rows at the bottom.  Halo ROWS are NOT materialised -- they are
    # fetched from this same array via the clamped index maps below.
    xw = jnp.pad(x_nhwc, ((0, 0), (0, Hpad - H), (1, Wp - W - 1), (0, C1p - C1)))

    kernel = functools.partial(_bottleneck_kernel, add=add, h_true=H,
                               h_padded=(Hpad != H))

    cp_kwargs = dict(dimension_semantics=("parallel", "parallel"))
    if vmem_limit_bytes is not None:
        cp_kwargs["vmem_limit_bytes"] = vmem_limit_bytes
    compiler_params = pltpu.CompilerParams(**cp_kwargs)

    def _call(weight_mode):
        wkw = {} if weight_mode is None else {"pipeline_mode": weight_mode}

        def const_spec(shape):           # resident weight / bias block
            zeros = (0,) * len(shape)
            return pl.BlockSpec(shape, lambda n, i: zeros, **wkw)

        return pl.pallas_call(
            kernel,
            out_shape=jax.ShapeDtypeStruct((N, Hpad, W, C2p), dt),
            grid=(N, n_ht),
            in_specs=[
                pl.BlockSpec((1, tile_h, Wp, C1p), lambda n, i: (n, i, 0, 0)),
                # halo row above / below the tile, clamped at the image borders
                # (the kernel zeroes the corresponding y1 rows there anyway)
                pl.BlockSpec((1, 1, Wp, C1p),
                             lambda n, i: (n, jnp.maximum(i * tile_h - 1, 0), 0, 0)),
                pl.BlockSpec((1, 1, Wp, C1p),
                             lambda n, i: (n, jnp.minimum((i + 1) * tile_h, Hpad - 1), 0, 0)),
                const_spec((C1p, Cmp)),
                const_spec((1, Cmp)),
                const_spec((3, 3, Cmp, C2p)),
                const_spec((1, C2p)),
            ],
            out_specs=pl.BlockSpec((1, tile_h, W, C2p), lambda n, i: (n, i, 0, 0)),
            scratch_shapes=[pltpu.VMEM((tile_h + 2, Wp, Cmp), dt)],
            compiler_params=compiler_params,
        )(xw, xw, xw, w1p, b1p, w2p, b2p)

    out = None
    if single_buffer_weights and _WEIGHT_PIPELINE_OK and hasattr(pl, "Buffered"):
        try:
            # Resident (grid-invariant) weights don't need double buffering;
            # single-buffering them frees VMEM headroom (matters most on v7x).
            out = _call(pl.Buffered(1))
        except Exception:
            _WEIGHT_PIPELINE_OK = False
    if out is None:
        out = _call(None)

    if Hpad != H:
        out = out[:, :H]
    if depad_output and C2p != C2:
        # TODO(synk): keep the lane-padded channel layout when the next layer
        # consumes it, to avoid this extra HBM pass.
        out = out[..., :C2]
    return out


def _fold_bn(gamma, beta, mean, var, eps=1e-5):
    scale = gamma / jnp.sqrt(var + eps)
    bias = beta - mean * scale
    return scale.reshape(1, -1), bias.reshape(1, -1)


def _reference(x_nhwc, w1, s1, b1, w2, s2, b2, add):
    # pure-JAX reference (inference BN folded to scale/bias)
    dn = ('NHWC', 'HWIO', 'NHWC')
    y1 = jax.lax.conv_general_dilated(
        x_nhwc, w1.reshape(1, 1, *w1.shape), (1, 1), [(0, 0), (0, 0)],
        dimension_numbers=dn)
    y1 = _hardswish(y1 * s1.reshape(1, 1, 1, -1) + b1.reshape(1, 1, 1, -1))
    y2 = jax.lax.conv_general_dilated(
        y1, w2, (1, 1), [(1, 1), (1, 1)], dimension_numbers=dn)
    y2 = _hardswish(y2 * s2.reshape(1, 1, 1, -1) + b2.reshape(1, 1, 1, -1))
    return x_nhwc + y2 if add else y2


if __name__ == "__main__":
    # Bottleneck(c1=4, c2=4, shortcut=True, e=0.5)  ->  c_ = 2, add = True
    N, H, W = 2, 16, 16
    c1, c2, e = 4, 4, 0.5
    c_ = int(c2 * e)
    add = True and (c1 == c2)

    key = jax.random.PRNGKey(0)
    ks = jax.random.split(key, 11)

    x = jax.random.normal(ks[0], (N, H, W, c1), jnp.float32)

    # conv weights (PyTorch OIHW -> our layouts)
    w1_oihw = jax.random.normal(ks[1], (c_, c1, 1, 1), jnp.float32) * 0.3
    w2_oihw = jax.random.normal(ks[2], (c2, c_, 3, 3), jnp.float32) * 0.3
    w1 = jnp.transpose(w1_oihw[:, :, 0, 0], (1, 0))            # (c1, c_)
    w2 = jnp.transpose(w2_oihw, (2, 3, 1, 0))                  # (3, 3, c_, c2) HWIO

    # BatchNorm params (inference: folded to per-channel scale/bias)
    g1 = 0.5 + jax.random.uniform(ks[3], (c_,), jnp.float32)
    bt1 = 0.1 * jax.random.normal(ks[4], (c_,), jnp.float32)
    m1 = 0.1 * jax.random.normal(ks[5], (c_,), jnp.float32)
    v1 = 0.5 + jax.random.uniform(ks[6], (c_,), jnp.float32)
    g2 = 0.5 + jax.random.uniform(ks[7], (c2,), jnp.float32)
    bt2 = 0.1 * jax.random.normal(ks[8], (c2,), jnp.float32)
    m2 = 0.1 * jax.random.normal(ks[9], (c2,), jnp.float32)
    v2 = 0.5 + jax.random.uniform(ks[10], (c2,), jnp.float32)

    s1, b1 = _fold_bn(g1, bt1, m1, v1)
    s2, b2 = _fold_bn(g2, bt2, m2, v2)

    ref = _reference(x, w1, s1, b1, w2, s2, b2, add)

    # f32, two H tiles -> exercises real (inter-tile) halo rows.
    out = jax.block_until_ready(
        bottleneck_forward(x, w1, s1, b1, w2, s2, b2, add=add, tile_h=8))
    assert out.shape == (N, H, W, c2)
    assert jnp.allclose(out, ref, atol=2e-3, rtol=2e-3), "f32 tile_h=8 mismatch"

    # f32, tile_h that does NOT divide H -> exercises the padded-row mask path.
    out_pad = jax.block_until_ready(
        bottleneck_forward(x, w1, s1, b1, w2, s2, b2, add=add, tile_h=6))
    assert jnp.allclose(out_pad, ref, atol=2e-3, rtol=2e-3), "f32 tile_h=6 mismatch"

    # bf16 activations/weights (production path): matmuls at native MXU rate;
    # bias/hardswish/accumulation/residual stay f32 in-kernel.  cv1 output is
    # re-quantised to bf16 before cv2 -> looser tolerance (documented).
    out_bf16 = jax.block_until_ready(
        bottleneck_forward(x.astype(jnp.bfloat16), w1, s1, b1, w2, s2, b2, add=add))
    assert jnp.allclose(out_bf16.astype(jnp.float32), ref, atol=1e-1, rtol=1e-1), \
        "bf16 mismatch vs JAX reference"

    print("KERNEL_OK")
</pallas_src>

<mosaic_0001>
module attributes {stable_mosaic.version = 11 : i64} {
  func.func @_bottleneck_kernel(%arg0: i32, %arg1: i32, %arg2: memref<1x8x24x128xf32, #tpu.memory_space<vmem>>, %arg3: memref<1x1x24x128xf32, #tpu.memory_space<vmem>>, %arg4: memref<1x1x24x128xf32, #tpu.memory_space<vmem>>, %arg5: memref<128x128xf32, #tpu.memory_space<vmem>>, %arg6: memref<1x128xf32, #tpu.memory_space<vmem>>, %arg7: memref<3x3x128x128xf32, #tpu.memory_space<vmem>>, %arg8: memref<1x128xf32, #tpu.memory_space<vmem>>, %arg9: memref<1x8x16x128xf32, #tpu.memory_space<vmem>>, %arg10: memref<10x24x128xf32, #tpu.memory_space<vmem>>) attributes {dimension_semantics = [#tpu.dimension_semantics<parallel>, #tpu.dimension_semantics<parallel>], iteration_bounds = array<i64: 2, 2>, scalar_prefetch = 0 : i64, scratch_operands = 1 : i64, tpu.core_type = #tpu.core_type<tc>, window_params = [{transform_indices = @transform_0, window_bounds = array<i64: 1, 8, 24, 128>}, {transform_indices = @transform_1, window_bounds = array<i64: 1, 1, 24, 128>}, {transform_indices = @transform_2, window_bounds = array<i64: 1, 1, 24, 128>}, {pipeline_mode = #tpu.pipeline_mode<synchronous>, transform_indices = @transform_3, window_bounds = array<i64: 128, 128>}, {pipeline_mode = #tpu.pipeline_mode<synchronous>, transform_indices = @transform_4, window_bounds = array<i64: 1, 128>}, {pipeline_mode = #tpu.pipeline_mode<synchronous>, transform_indices = @transform_5, window_bounds = array<i64: 3, 3, 128, 128>}, {pipeline_mode = #tpu.pipeline_mode<synchronous>, transform_indices = @transform_6, window_bounds = array<i64: 1, 128>}, {transform_indices = @transform_7, window_bounds = array<i64: 1, 8, 16, 128>}]} {
    %c8_i32 = arith.constant 8 : i32
    %0 = arith.muli %arg1, %c8_i32 : i32
    %1 = tpu.iota {dimensions = array<i32: 0>} : vector<24x1xi32>
    %c1_i32 = arith.constant 1 : i32
    %2 = vector.broadcast %c1_i32 : i32 to vector<24x1xi32>
    %3 = arith.cmpi sge, %1, %2 : vector<24x1xi32>
    %c16_i32 = arith.constant 16 : i32
    %4 = vector.broadcast %c16_i32 : i32 to vector<24x1xi32>
    %5 = arith.cmpi sle, %1, %4 : vector<24x1xi32>
    %6 = arith.andi %3, %5 : vector<24x1xi1>
    %c0 = arith.constant 0 : index
    %c0_0 = arith.constant 0 : index
    %c0_1 = arith.constant 0 : index
    %c0_2 = arith.constant 0 : index
    %7 = vector.load %arg2[%c0, %c0_0, %c0_1, %c0_2] : memref<1x8x24x128xf32, #tpu.memory_space<vmem>>, vector<1x8x24x128xf32>
    %8 = vector.shape_cast %7 : vector<1x8x24x128xf32> to vector<8x24x128xf32>
    %9 = vector.shape_cast %8 : vector<8x24x128xf32> to vector<192x128xf32>
    %c0_3 = arith.constant 0 : index
    %c0_4 = arith.constant 0 : index
    %10 = vector.load %arg5[%c0_3, %c0_4] : memref<128x128xf32, #tpu.memory_space<vmem>>, vector<128x128xf32>
    %cst = arith.constant dense<0.000000e+00> : vector<192x128xf32>
    %11 = tpu.matmul %9, %10, %cst {dimension_numbers = #tpu.dot_dimension_numbers<[1], [0], [0], [1], [0, 0, 1, 1], [], []>} : vector<192x128xf32>, vector<128x128xf32>, vector<192x128xf32> -> vector<192x128xf32>
    %c0_5 = arith.constant 0 : index
    %c0_6 = arith.constant 0 : index
    %12 = vector.load %arg6[%c0_5, %c0_6] : memref<1x128xf32, #tpu.memory_space<vmem>>, vector<1x128xf32>
    %13 = vector.broadcast %12 : vector<1x128xf32> to vector<192x128xf32>
    %14 = arith.addf %11, %13 : vector<192x128xf32>
    %cst_7 = arith.constant 3.000000e+00 : f32
    %15 = vector.broadcast %cst_7 : f32 to vector<192x128xf32>
    %16 = arith.addf %14, %15 : vector<192x128xf32>
    %cst_8 = arith.constant 0.000000e+00 : f32
    %cst_9 = arith.constant 6.000000e+00 : f32
    %17 = vector.broadcast %cst_8 : f32 to vector<192x128xf32>
    %18 = arith.maximumf %17, %16 : vector<192x128xf32>
    %19 = vector.broadcast %cst_9 : f32 to vector<192x128xf32>
    %20 = arith.minimumf %19, %18 : vector<192x128xf32>
    %21 = arith.mulf %14, %20 : vector<192x128xf32>
    %cst_10 = arith.constant 0.166666672 : f32
    %22 = vector.broadcast %cst_10 : f32 to vector<192x128xf32>
    %23 = arith.mulf %21, %22 : vector<192x128xf32>
    %24 = vector.shape_cast %23 : vector<192x128xf32> to vector<8x24x128xf32>
    %25 = vector.shape_cast %6 : vector<24x1xi1> to vector<1x24x1xi1>
    %cst_11 = arith.constant 0.000000e+00 : f32
    %26 = vector.shape_cast %25 : vector<1x24x1xi1> to vector<1x24x1xi1>
    %27 = vector.broadcast %26 : vector<1x24x1xi1> to vector<8x24x128xi1>
    %28 = vector.broadcast %cst_11 : f32 to vector<8x24x128xf32>
    %29 = arith.select %27, %24, %28 : vector<8x24x128xi1>, vector<8x24x128xf32>
    %c1 = arith.constant 1 : index
    %c0_12 = arith.constant 0 : index
    %c0_13 = arith.constant 0 : index
    %30 = vector.load %arg10[%c1, %c0_12, %c0_13] : memref<10x24x128xf32, #tpu.memory_space<vmem>>, vector<8x24x128xf32>
    tpu.vector_store %arg10[%c1, %c0_12, %c0_13], %29 {strides = array<i32>} : memref<10x24x128xf32, #tpu.memory_space<vmem>>, vector<8x24x128xf32>,
    %c0_i32 = arith.constant 0 : i32
    %31 = arith.cmpi sgt, %0, %c0_i32 : i32
    %32 = vector.broadcast %31 : i1 to vector<24x1xi1>
    %33 = arith.andi %6, %32 : vector<24x1xi1>
    %c0_14 = arith.constant 0 : index
    %c0_15 = arith.constant 0 : index
    %c0_16 = arith.constant 0 : index
    %c0_17 = arith.constant 0 : index
    %34 = vector.load %arg3[%c0_14, %c0_15, %c0_16, %c0_17] : memref<1x1x24x128xf32, #tpu.memory_space<vmem>>, vector<1x1x24x128xf32>
    %35 = vector.shape_cast %34 : vector<1x1x24x128xf32> to vector<24x128xf32>
    %c0_18 = arith.constant 0 : index
    %c0_19 = arith.constant 0 : index
    %36 = vector.load %arg5[%c0_18, %c0_19] : memref<128x128xf32, #tpu.memory_space<vmem>>, vector<128x128xf32>
    %cst_20 = arith.constant dense<0.000000e+00> : vector<24x128xf32>
    %37 = tpu.matmul %35, %36, %cst_20 {dimension_numbers = #tpu.dot_dimension_numbers<[1], [0], [0], [1], [0, 0, 1, 1], [], []>} : vector<24x128xf32>, vector<128x128xf32>, vector<24x128xf32> -> vector<24x128xf32>
    %c0_21 = arith.constant 0 : index
    %c0_22 = arith.constant 0 : index
    %38 = vector.load %arg6[%c0_21, %c0_22] : memref<1x128xf32, #tpu.memory_space<vmem>>, vector<1x128xf32>
    %39 = vector.broadcast %38 : vector<1x128xf32> to vector<24x128xf32>
    %40 = arith.addf %37, %39 : vector<24x128xf32>
    %cst_23 = arith.constant 3.000000e+00 : f32
    %41 = vector.broadcast %cst_23 : f32 to vector<24x128xf32>
    %42 = arith.addf %40, %41 : vector<24x128xf32>
    %cst_24 = arith.constant 0.000000e+00 : f32
    %cst_25 = arith.constant 6.000000e+00 : f32
    %43 = vector.broadcast %cst_24 : f32 to vector<24x128xf32>
    %44 = arith.maximumf %43, %42 : vector<24x128xf32>
    %45 = vector.broadcast %cst_25 : f32 to vector<24x128xf32>
    %46 = arith.minimumf %45, %44 : vector<24x128xf32>
    %47 = arith.mulf %40, %46 : vector<24x128xf32>
    %cst_26 = arith.constant 0.166666672 : f32
    %48 = vector.broadcast %cst_26 : f32 to vector<24x128xf32>
    %49 = arith.mulf %47, %48 : vector<24x128xf32>
    %cst_27 = arith.constant 0.000000e+00 : f32
    %50 = vector.shape_cast %33 : vector<24x1xi1> to vector<24x1xi1>
    %51 = vector.broadcast %50 : vector<24x1xi1> to vector<24x128xi1>
    %52 = vector.broadcast %cst_27 : f32 to vector<24x128xf32>
    %53 = arith.select %51, %49, %52 : vector<24x128xi1>, vector<24x128xf32>
    %c0_28 = arith.constant 0 : index
    %c0_29 = arith.constant 0 : index
    %c0_30 = arith.constant 0 : index
    %54 = vector.load %arg10[%c0_28, %c0_29, %c0_30] : memref<10x24x128xf32, #tpu.memory_space<vmem>>, vector<1x24x128xf32>
    %55 = vector.shape_cast %54 : vector<1x24x128xf32> to vector<24x128xf32>
    %56 = vector.shape_cast %53 : vector<24x128xf32> to vector<1x24x128xf32>
    tpu.vector_store %arg10[%c0_28, %c0_29, %c0_30], %56 {strides = array<i32>} : memref<10x24x128xf32, #tpu.memory_space<vmem>>, vector<1x24x128xf32>,
    %c8_i32_31 = arith.constant 8 : i32
    %57 = arith.addi %0, %c8_i32_31 : i32
    %c16_i32_32 = arith.constant 16 : i32
    %58 = arith.cmpi slt, %57, %c16_i32_32 : i32
    %59 = vector.broadcast %58 : i1 to vector<24x1xi1>
    %60 = arith.andi %6, %59 : vector<24x1xi1>
    %c0_33 = arith.constant 0 : index
    %c0_34 = arith.constant 0 : index
    %c0_35 = arith.constant 0 : index
    %c0_36 = arith.constant 0 : index
    %61 = vector.load %arg4[%c0_33, %c0_34, %c0_35, %c0_36] : memref<1x1x24x128xf32, #tpu.memory_space<vmem>>, vector<1x1x24x128xf32>
    %62 = vector.shape_cast %61 : vector<1x1x24x128xf32> to vector<24x128xf32>
    %c0_37 = arith.constant 0 : index
    %c0_38 = arith.constant 0 : index
    %63 = vector.load %arg5[%c0_37, %c0_38] : memref<128x128xf32, #tpu.memory_space<vmem>>, vector<128x128xf32>
    %cst_39 = arith.constant dense<0.000000e+00> : vector<24x128xf32>
    %64 = tpu.matmul %62, %63, %cst_39 {dimension_numbers = #tpu.dot_dimension_numbers<[1], [0], [0], [1], [0, 0, 1, 1], [], []>} : vector<24x128xf32>, vector<128x128xf32>, vector<24x128xf32> -> vector<24x128xf32>
    %c0_40 = arith.constant 0 : index
    %c0_41 = arith.constant 0 : index
    %65 = vector.load %arg6[%c0_40, %c0_41] : memref<1x128xf32, #tpu.memory_space<vmem>>, vector<1x128xf32>
    %66 = vector.broadcast %65 : vector<1x128xf32> to vector<24x128xf32>
    %67 = arith.addf %64, %66 : vector<24x128xf32>
    %cst_42 = arith.constant 3.000000e+00 : f32
    %68 = vector.broadcast %cst_42 : f32 to vector<24x128xf32>
    %69 = arith.addf %67, %68 : vector<24x128xf32>
    %cst_43 = arith.constant 0.000000e+00 : f32
    %cst_44 = arith.constant 6.000000e+00 : f32
    %70 = vector.broadcast %cst_43 : f32 to vector<24x128xf32>
    %71 = arith.maximumf %70, %69 : vector<24x128xf32>
    %72 = vector.broadcast %cst_44 : f32 to vector<24x128xf32>
    %73 = arith.minimumf %72, %71 : vector<24x128xf32>
    %74 = arith.mulf %67, %73 : vector<24x128xf32>
    %cst_45 = arith.constant 0.166666672 : f32
    %75 = vector.broadcast %cst_45 : f32 to vector<24x128xf32>
    %76 = arith.mulf %74, %75 : vector<24x128xf32>
    %cst_46 = arith.constant 0.000000e+00 : f32
    %77 = vector.shape_cast %60 : vector<24x1xi1> to vector<24x1xi1>
    %78 = vector.broadcast %77 : vector<24x1xi1> to vector<24x128xi1>
    %79 = vector.broadcast %cst_46 : f32 to vector<24x128xf32>
    %80 = arith.select %78, %76, %79 : vector<24x128xi1>, vector<24x128xf32>
    %c9 = arith.constant 9 : index
    %c0_47 = arith.constant 0 : index
    %c0_48 = arith.constant 0 : index
    %81 = vector.load %arg10[%c9, %c0_47, %c0_48] : memref<10x24x128xf32, #tpu.memory_space<vmem>>, vector<1x24x128xf32>
    %82 = vector.shape_cast %81 : vector<1x24x128xf32> to vector<24x128xf32>
    %83 = vector.shape_cast %80 : vector<24x128xf32> to vector<1x24x128xf32>
    tpu.vector_store %arg10[%c9, %c0_47, %c0_48], %83 {strides = array<i32>} : memref<10x24x128xf32, #tpu.memory_space<vmem>>, vector<1x24x128xf32>,
    %c0_49 = arith.constant 0 : index
    %c0_50 = arith.constant 0 : index
    %c0_51 = arith.constant 0 : index
    %84 = vector.load %arg10[%c0_49, %c0_50, %c0_51] : memref<10x24x128xf32, #tpu.memory_space<vmem>>, vector<8x24x128xf32>
    %85 = vector.extract_strided_slice %84 {offsets = [0, 0, 0], sizes = [8, 16, 128], strides = [1, 1, 1]} : vector<8x24x128xf32> to vector<8x16x128xf32>
    %86 = vector.shape_cast %85 : vector<8x16x128xf32> to vector<128x128xf32>
    %c0_52 = arith.constant 0 : index
    %c0_53 = arith.constant 0 : index
    %c0_54 = arith.constant 0 : index
    %c0_55 = arith.constant 0 : index
    %87 = vector.load %arg7[%c0_52, %c0_53, %c0_54, %c0_55] : memref<3x3x128x128xf32, #tpu.memory_space<vmem>>, vector<1x1x128x128xf32>
    %88 = vector.shape_cast %87 : vector<1x1x128x128xf32> to vector<128x128xf32>
    %cst_56 = arith.constant dense<0.000000e+00> : vector<128x128xf32>
    %89 = tpu.matmul %86, %88, %cst_56 {dimension_numbers = #tpu.dot_dimension_numbers<[1], [0], [0], [1], [0, 0, 1, 1], [], []>} : vector<128x128xf32>, vector<128x128xf32>, vector<128x128xf32> -> vector<128x128xf32>
    %90 = vector.extract_strided_slice %84 {offsets = [0, 1, 0], sizes = [8, 16, 128], strides = [1, 1, 1]} : vector<8x24x128xf32> to vector<8x16x128xf32>
    %91 = vector.shape_cast %90 : vector<8x16x128xf32> to vector<128x128xf32>
    %c0_57 = arith.constant 0 : index
    %c1_58 = arith.constant 1 : index
    %c0_59 = arith.constant 0 : index
    %c0_60 = arith.constant 0 : index
    %92 = vector.load %arg7[%c0_57, %c1_58, %c0_59, %c0_60] : memref<3x3x128x128xf32, #tpu.memory_space<vmem>>, vector<1x1x128x128xf32>
    %93 = vector.shape_cast %92 : vector<1x1x128x128xf32> to vector<128x128xf32>
    %cst_61 = arith.constant dense<0.000000e+00> : vector<128x128xf32>
    %94 = tpu.matmul %91, %93, %cst_61 {dimension_numbers = #tpu.dot_dimension_numbers<[1], [0], [0], [1], [0, 0, 1, 1], [], []>} : vector<128x128xf32>, vector<128x128xf32>, vector<128x128xf32> -> vector<128x128xf32>
    %95 = arith.addf %89, %94 : vector<128x128xf32>
    %96 = vector.extract_strided_slice %84 {offsets = [0, 2, 0], sizes = [8, 16, 128], strides = [1, 1, 1]} : vector<8x24x128xf32> to vector<8x16x128xf32>
    %97 = vector.shape_cast %96 : vector<8x16x128xf32> to vector<128x128xf32>
    %c0_62 = arith.constant 0 : index
    %c2 = arith.constant 2 : index
    %c0_63 = arith.constant 0 : index
    %c0_64 = arith.constant 0 : index
    %98 = vector.load %arg7[%c0_62, %c2, %c0_63, %c0_64] : memref<3x3x128x128xf32, #tpu.memory_space<vmem>>, vector<1x1x128x128xf32>
    %99 = vector.shape_cast %98 : vector<1x1x128x128xf32> to vector<128x128xf32>
    %cst_65 = arith.constant dense<0.000000e+00> : vector<128x128xf32>
    %100 = tpu.matmul %97, %99, %cst_65 {dimension_numbers = #tpu.dot_dimension_numbers<[1], [0], [0], [1], [0, 0, 1, 1], [], []>} : vector<128x128xf32>, vector<128x128xf32>, vector<128x128xf32> -> vector<128x128xf32>
    %101 = arith.addf %95, %100 : vector<128x128xf32>
    %c1_66 = arith.constant 1 : index
    %c0_67 = arith.constant 0 : index
    %c0_68 = arith.constant 0 : index
    %102 = vector.load %arg10[%c1_66, %c0_67, %c0_68] : memref<10x24x128xf32, #tpu.memory_space<vmem>>, vector<8x24x128xf32>
    %103 = vector.extract_strided_slice %102 {offsets = [0, 0, 0], sizes = [8, 16, 128], strides = [1, 1, 1]} : vector<8x24x128xf32> to vector<8x16x128xf32>
    %104 = vector.shape_cast %103 : vector<8x16x128xf32> to vector<128x128xf32>
    %c1_69 = arith.constant 1 : index
    %c0_70 = arith.constant 0 : index
    %c0_71 = arith.constant 0 : index
    %c0_72 = arith.constant 0 : index
    %105 = vector.load %arg7[%c1_69, %c0_70, %c0_71, %c0_72] : memref<3x3x128x128xf32, #tpu.memory_space<vmem>>, vector<1x1x128x128xf32>
    %106 = vector.shape_cast %105 : vector<1x1x128x128xf32> to vector<128x128xf32>
    %cst_73 = arith.constant dense<0.000000e+00> : vector<128x128xf32>
    %107 = tpu.matmul %104, %106, %cst_73 {dimension_numbers = #tpu.dot_dimension_numbers<[1], [0], [0], [1], [0, 0, 1, 1], [], []>} : vector<128x128xf32>, vector<128x128xf32>, vector<128x128xf32> -> vector<128x128xf32>
    %108 = arith.addf %101, %107 : vector<128x128xf32>
    %109 = vector.extract_strided_slice %102 {offsets = [0, 1, 0], sizes = [8, 16, 128], strides = [1, 1, 1]} : vector<8x24x128xf32> to vector<8x16x128xf32>
    %110 = vector.shape_cast %109 : vector<8x16x128xf32> to vector<128x128xf32>
    %c1_74 = arith.constant 1 : index
    %c1_75 = arith.constant 1 : index
    %c0_76 = arith.constant 0 : index
    %c0_77 = arith.constant 0 : index
    %111 = vector.load %arg7[%c1_74, %c1_75, %c0_76, %c0_77] : memref<3x3x128x128xf32, #tpu.memory_space<vmem>>, vector<1x1x128x128xf32>
    %112 = vector.shape_cast %111 : vector<1x1x128x128xf32> to vector<128x128xf32>
    %cst_78 = arith.constant dense<0.000000e+00> : vector<128x128xf32>
    %113 = tpu.matmul %110, %112, %cst_78 {dimension_numbers = #tpu.dot_dimension_numbers<[1], [0], [0], [1], [0, 0, 1, 1], [], []>} : vector<128x128xf32>, vector<128x128xf32>, vector<128x128xf32> -> vector<128x128xf32>
    %114 = arith.addf %108, %113 : vector<128x128xf32>
    %115 = vector.extract_strided_slice %102 {offsets = [0, 2, 0], sizes = [8, 16, 128], strides = [1, 1, 1]} : vector<8x24x128xf32> to vector<8x16x128xf32>
    %116 = vector.shape_cast %115 : vector<8x16x128xf32> to vector<128x128xf32>
    %c1_79 = arith.constant 1 : index
    %c2_80 = arith.constant 2 : index
    %c0_81 = arith.constant 0 : index
    %c0_82 = arith.constant 0 : index
    %117 = vector.load %arg7[%c1_79, %c2_80, %c0_81, %c0_82] : memref<3x3x128x128xf32, #tpu.memory_space<vmem>>, vector<1x1x128x128xf32>
    %118 = vector.shape_cast %117 : vector<1x1x128x128xf32> to vector<128x128xf32>
    %cst_83 = arith.constant dense<0.000000e+00> : vector<128x128xf32>
    %119 = tpu.matmul %116, %118, %cst_83 {dimension_numbers = #tpu.dot_dimension_numbers<[1], [0], [0], [1], [0, 0, 1, 1], [], []>} : vector<128x128xf32>, vector<128x128xf32>, vector<128x128xf32> -> vector<128x128xf32>
    %120 = arith.addf %114, %119 : vector<128x128xf32>
    %c2_84 = arith.constant 2 : index
    %c0_85 = arith.constant 0 : index
    %c0_86 = arith.constant 0 : index
    %121 = vector.load %arg10[%c2_84, %c0_85, %c0_86] : memref<10x24x128xf32, #tpu.memory_space<vmem>>, vector<8x24x128xf32>
    %122 = vector.extract_strided_slice %121 {offsets = [0, 0, 0], sizes = [8, 16, 128], strides = [1, 1, 1]} : vector<8x24x128xf32> to vector<8x16x128xf32>
    %123 = vector.shape_cast %122 : vector<8x16x128xf32> to vector<128x128xf32>
    %c2_87 = arith.constant 2 : index
    %c0_88 = arith.constant 0 : index
    %c0_89 = arith.constant 0 : index
    %c0_90 = arith.constant 0 : index
    %124 = vector.load %arg7[%c2_87, %c0_88, %c0_89, %c0_90] : memref<3x3x128x128xf32, #tpu.memory_space<vmem>>, vector<1x1x128x128xf32>
    %125 = vector.shape_cast %124 : vector<1x1x128x128xf32> to vector<128x128xf32>
    %cst_91 = arith.constant dense<0.000000e+00> : vector<128x128xf32>
    %126 = tpu.matmul %123, %125, %cst_91 {dimension_numbers = #tpu.dot_dimension_numbers<[1], [0], [0], [1], [0, 0, 1, 1], [], []>} : vector<128x128xf32>, vector<128x128xf32>, vector<128x128xf32> -> vector<128x128xf32>
    %127 = arith.addf %120, %126 : vector<128x128xf32>
    %128 = vector.extract_strided_slice %121 {offsets = [0, 1, 0], sizes = [8, 16, 128], strides = [1, 1, 1]} : vector<8x24x128xf32> to vector<8x16x128xf32>
    %129 = vector.shape_cast %128 : vector<8x16x128xf32> to vector<128x128xf32>
    %c2_92 = arith.constant 2 : index
    %c1_93 = arith.constant 1 : index
    %c0_94 = arith.constant 0 : index
    %c0_95 = arith.constant 0 : index
    %130 = vector.load %arg7[%c2_92, %c1_93, %c0_94, %c0_95] : memref<3x3x128x128xf32, #tpu.memory_space<vmem>>, vector<1x1x128x128xf32>
    %131 = vector.shape_cast %130 : vector<1x1x128x128xf32> to vector<128x128xf32>
    %cst_96 = arith.constant dense<0.000000e+00> : vector<128x128xf32>
    %132 = tpu.matmul %129, %131, %cst_96 {dimension_numbers = #tpu.dot_dimension_numbers<[1], [0], [0], [1], [0, 0, 1, 1], [], []>} : vector<128x128xf32>, vector<128x128xf32>, vector<128x128xf32> -> vector<128x128xf32>
    %133 = arith.addf %127, %132 : vector<128x128xf32>
    %134 = vector.extract_strided_slice %121 {offsets = [0, 2, 0], sizes = [8, 16, 128], strides = [1, 1, 1]} : vector<8x24x128xf32> to vector<8x16x128xf32>
    %135 = vector.shape_cast %134 : vector<8x16x128xf32> to vector<128x128xf32>
    %c2_97 = arith.constant 2 : index
    %c2_98 = arith.constant 2 : index
    %c0_99 = arith.constant 0 : index
    %c0_100 = arith.constant 0 : index
    %136 = vector.load %arg7[%c2_97, %c2_98, %c0_99, %c0_100] : memref<3x3x128x128xf32, #tpu.memory_space<vmem>>, vector<1x1x128x128xf32>
    %137 = vector.shape_cast %136 : vector<1x1x128x128xf32> to vector<128x128xf32>
    %cst_101 = arith.constant dense<0.000000e+00> : vector<128x128xf32>
    %138 = tpu.matmul %135, %137, %cst_101 {dimension_numbers = #tpu.dot_dimension_numbers<[1], [0], [0], [1], [0, 0, 1, 1], [], []>} : vector<128x128xf32>, vector<128x128xf32>, vector<128x128xf32> -> vector<128x128xf32>
    %139 = arith.addf %133, %138 : vector<128x128xf32>
    %c0_102 = arith.constant 0 : index
    %c0_103 = arith.constant 0 : index
    %140 = vector.load %arg8[%c0_102, %c0_103] : memref<1x128xf32, #tpu.memory_space<vmem>>, vector<1x128xf32>
    %141 = vector.broadcast %140 : vector<1x128xf32> to vector<128x128xf32>
    %142 = arith.addf %139, %141 : vector<128x128xf32>
    %cst_104 = arith.constant 3.000000e+00 : f32
    %143 = vector.broadcast %cst_104 : f32 to vector<128x128xf32>
    %144 = arith.addf %142, %143 : vector<128x128xf32>
    %cst_105 = arith.constant 0.000000e+00 : f32
    %cst_106 = arith.constant 6.000000e+00 : f32
    %145 = vector.broadcast %cst_105 : f32 to vector<128x128xf32>
    %146 = arith.maximumf %145, %144 : vector<128x128xf32>
    %147 = vector.broadcast %cst_106 : f32 to vector<128x128xf32>
    %148 = arith.minimumf %147, %146 : vector<128x128xf32>
    %149 = arith.mulf %142, %148 : vector<128x128xf32>
    %cst_107 = arith.constant 0.166666672 : f32
    %150 = vector.broadcast %cst_107 : f32 to vector<128x128xf32>
    %151 = arith.mulf %149, %150 : vector<128x128xf32>
    %152 = vector.shape_cast %151 : vector<128x128xf32> to vector<8x16x128xf32>
    %c0_108 = arith.constant 0 : index
    %c0_109 = arith.constant 0 : index
    %c1_110 = arith.constant 1 : index
    %c0_111 = arith.constant 0 : index
    %153 = vector.load %arg2[%c0_108, %c0_109, %c1_110, %c0_111] : memref<1x8x24x128xf32, #tpu.memory_space<vmem>>, vector<1x8x16x128xf32>
    %154 = vector.shape_cast %153 : vector<1x8x16x128xf32> to vector<8x16x128xf32>
    %155 = arith.addf %152, %154 : vector<8x16x128xf32>
    %c0_112 = arith.constant 0 : index
    %c0_113 = arith.constant 0 : index
    %c0_114 = arith.constant 0 : index
    %c0_115 = arith.constant 0 : index
    %156 = vector.load %arg9[%c0_112, %c0_113, %c0_114, %c0_115] : memref<1x8x16x128xf32, #tpu.memory_space<vmem>>, vector<1x8x16x128xf32>
    %157 = vector.shape_cast %156 : vector<1x8x16x128xf32> to vector<8x16x128xf32>
    %158 = vector.shape_cast %155 : vector<8x16x128xf32> to vector<1x8x16x128xf32>
    tpu.vector_store %arg9[%c0_112, %c0_113, %c0_114, %c0_115], %158 {strides = array<i32>} : memref<1x8x16x128xf32, #tpu.memory_space<vmem>>, vector<1x8x16x128xf32>,
    return
  }
  func.func @transform_0(%arg0: i32, %arg1: i32) -> (i32, i32, i32, i32) {
    %c0_i32 = arith.constant 0 : i32
    %c0_i32_0 = arith.constant 0 : i32
    %c0_i32_1 = arith.constant 0 : i32
    return %arg0, %arg1, %c0_i32, %c0_i32_0 : i32, i32, i32, i32
  }
  func.func @transform_1(%arg0: i32, %arg1: i32) -> (i32, i32, i32, i32) {
    %c8_i32 = arith.constant 8 : i32
    %0 = arith.muli %arg1, %c8_i32 : i32
    %c1_i32 = arith.constant 1 : i32
    %1 = arith.subi %0, %c1_i32 : i32
    %c0_i32 = arith.constant 0 : i32
    %2 = arith.maxsi %1, %c0_i32 : i32
    %c0_i32_0 = arith.constant 0 : i32
    %c0_i32_1 = arith.constant 0 : i32
    %c0_i32_2 = arith.constant 0 : i32
    return %arg0, %2, %c0_i32_0, %c0_i32_1 : i32, i32, i32, i32
  }
  func.func @transform_2(%arg0: i32, %arg1: i32) -> (i32, i32, i32, i32) {
    %c1_i32 = arith.constant 1 : i32
    %0 = arith.addi %arg1, %c1_i32 : i32
    %c8_i32 = arith.constant 8 : i32
    %1 = arith.muli %0, %c8_i32 : i32
    %c15_i32 = arith.constant 15 : i32
    %2 = arith.minsi %1, %c15_i32 : i32
    %c0_i32 = arith.constant 0 : i32
    %c0_i32_0 = arith.constant 0 : i32
    %c0_i32_1 = arith.constant 0 : i32
    return %arg0, %2, %c0_i32, %c0_i32_0 : i32, i32, i32, i32
  }
  func.func @transform_3(%arg0: i32, %arg1: i32) -> (i32, i32) {
    %c0_i32 = arith.constant 0 : i32
    %c0_i32_0 = arith.constant 0 : i32
    %c0_i32_1 = arith.constant 0 : i32
    return %c0_i32, %c0_i32_0 : i32, i32
  }
  func.func @transform_4(%arg0: i32, %arg1: i32) -> (i32, i32) {
    %c0_i32 = arith.constant 0 : i32
    %c0_i32_0 = arith.constant 0 : i32
    %c0_i32_1 = arith.constant 0 : i32
    return %c0_i32, %c0_i32_0 : i32, i32
  }
  func.func @transform_5(%arg0: i32, %arg1: i32) -> (i32, i32, i32, i32) {
    %c0_i32 = arith.constant 0 : i32
    %c0_i32_0 = arith.constant 0 : i32
    %c0_i32_1 = arith.constant 0 : i32
    %c0_i32_2 = arith.constant 0 : i32
    %c0_i32_3 = arith.constant 0 : i32
    return %c0_i32, %c0_i32_0, %c0_i32_1, %c0_i32_2 : i32, i32, i32, i32
  }
  func.func @transform_6(%arg0: i32, %arg1: i32) -> (i32, i32) {
    %c0_i32 = arith.constant 0 : i32
    %c0_i32_0 = arith.constant 0 : i32
    %c0_i32_1 = arith.constant 0 : i32
    return %c0_i32, %c0_i32_0 : i32, i32
  }
  func.func @transform_7(%arg0: i32, %arg1: i32) -> (i32, i32, i32, i32) {
    %c0_i32 = arith.constant 0 : i32
    %c0_i32_0 = arith.constant 0 : i32
    %c0_i32_1 = arith.constant 0 : i32
    return %arg0, %arg1, %c0_i32, %c0_i32_0 : i32, i32, i32, i32
  }
}

module attributes {stable_mosaic.version = 11 : i64} {
  func.func @_bottleneck_kernel(%arg0: i32, %arg1: i32, %arg2: memref<1x8x24x128xf32, #tpu.memory_space<vmem>>, %arg3: memref<1x1x24x128xf32, #tpu.memory_space<vmem>>, %arg4: memref<1x1x24x128xf32, #tpu.memory_space<vmem>>, %arg5: memref<128x128xf32, #tpu.memory_space<vmem>>, %arg6: memref<1x128xf32, #tpu.memory_space<vmem>>, %arg7: memref<3x3x128x128xf32, #tpu.memory_space<vmem>>, %arg8: memref<1x128xf32, #tpu.memory_space<vmem>>, %arg9: memref<1x8x16x128xf32, #tpu.memory_space<vmem>>, %arg10: memref<10x24x128xf32, #tpu.memory_space<vmem>>) attributes {dimension_semantics = [#tpu.dimension_semantics<parallel>, #tpu.dimension_semantics<parallel>], iteration_bounds = array<i64: 2, 2>, scalar_prefetch = 0 : i64, scratch_operands = 1 : i64, tpu.core_type = #tpu.core_type<tc>, window_params = [{transform_indices = @transform_0, window_bounds = array<i64: 1, 8, 24, 128>}, {transform_indices = @transform_1, window_bounds = array<i64: 1, 1, 24, 128>}, {transform_indices = @transform_2, window_bounds = array<i64: 1, 1, 24, 128>}, {pipeline_mode = #tpu.pipeline_mode<synchronous>, transform_indices = @transform_3, window_bounds = array<i64: 128, 128>}, {pipeline_mode = #tpu.pipeline_mode<synchronous>, transform_indices = @transform_4, window_bounds = array<i64: 1, 128>}, {pipeline_mode = #tpu.pipeline_mode<synchronous>, transform_indices = @transform_5, window_bounds = array<i64: 3, 3, 128, 128>}, {pipeline_mode = #tpu.pipeline_mode<synchronous>, transform_indices = @transform_6, window_bounds = array<i64: 1, 128>}, {transform_indices = @transform_7, window_bounds = array<i64: 1, 8, 16, 128>}]} {
    %c8_i32 = arith.constant 8 : i32
    %0 = arith.muli %arg1, %c8_i32 : i32
    %1 = tpu.iota {dimensions = array<i32: 0>} : vector<24x1xi32>
    %c1_i32 = arith.constant 1 : i32
    %2 = vector.broadcast %c1_i32 : i32 to vector<24x1xi32>
    %3 = arith.cmpi sge, %1, %2 : vector<24x1xi32>
    %c16_i32 = arith.constant 16 : i32
    %4 = vector.broadcast %c16_i32 : i32 to vector<24x1xi32>
    %5 = arith.cmpi sle, %1, %4 : vector<24x1xi32>
    %6 = arith.andi %3, %5 : vector<24x1xi1>
    %c0 = arith.constant 0 : index
    %c0_0 = arith.constant 0 : index
    %c0_1 = arith.constant 0 : index
    %c0_2 = arith.constant 0 : index
    %7 = vector.load %arg2[%c0, %c0_0, %c0_1, %c0_2] : memref<1x8x24x128xf32, #tpu.memory_space<vmem>>, vector<1x8x24x128xf32>
    %8 = vector.shape_cast %7 : vector<1x8x24x128xf32> to vector<8x24x128xf32>
    %9 = vector.shape_cast %8 : vector<8x24x128xf32> to vector<192x128xf32>
    %c0_3 = arith.constant 0 : index
    %c0_4 = arith.constant 0 : index
    %10 = vector.load %arg5[%c0_3, %c0_4] : memref<128x128xf32, #tpu.memory_space<vmem>>, vector<128x128xf32>
    %cst = arith.constant dense<0.000000e+00> : vector<192x128xf32>
    %11 = tpu.matmul %9, %10, %cst {dimension_numbers = #tpu.dot_dimension_numbers<[1], [0], [0], [1], [0, 0, 1, 1], [], []>} : vector<192x128xf32>, vector<128x128xf32>, vector<192x128xf32> -> vector<192x128xf32>
    %c0_5 = arith.constant 0 : index
    %c0_6 = arith.constant 0 : index
    %12 = vector.load %arg6[%c0_5, %c0_6] : memref<1x128xf32, #tpu.memory_space<vmem>>, vector<1x128xf32>
    %13 = vector.broadcast %12 : vector<1x128xf32> to vector<192x128xf32>
    %14 = arith.addf %11, %13 : vector<192x128xf32>
    %cst_7 = arith.constant 3.000000e+00 : f32
    %15 = vector.broadcast %cst_7 : f32 to vector<192x128xf32>
    %16 = arith.addf %14, %15 : vector<192x128xf32>
    %cst_8 = arith.constant 0.000000e+00 : f32
    %cst_9 = arith.constant 6.000000e+00 : f32
    %17 = vector.broadcast %cst_8 : f32 to vector<192x128xf32>
    %18 = arith.maximumf %17, %16 : vector<192x128xf32>
    %19 = vector.broadcast %cst_9 : f32 to vector<192x128xf32>
    %20 = arith.minimumf %19, %18 : vector<192x128xf32>
    %21 = arith.mulf %14, %20 : vector<192x128xf32>
    %cst_10 = arith.constant 0.166666672 : f32
    %22 = vector.broadcast %cst_10 : f32 to vector<192x128xf32>
    %23 = arith.mulf %21, %22 : vector<192x128xf32>
    %24 = vector.shape_cast %23 : vector<192x128xf32> to vector<8x24x128xf32>
    %25 = vector.shape_cast %6 : vector<24x1xi1> to vector<1x24x1xi1>
    %cst_11 = arith.constant 0.000000e+00 : f32
    %26 = vector.shape_cast %25 : vector<1x24x1xi1> to vector<1x24x1xi1>
    %27 = vector.broadcast %26 : vector<1x24x1xi1> to vector<8x24x128xi1>
    %28 = vector.broadcast %cst_11 : f32 to vector<8x24x128xf32>
    %29 = arith.select %27, %24, %28 : vector<8x24x128xi1>, vector<8x24x128xf32>
    %c1 = arith.constant 1 : index
    %c0_12 = arith.constant 0 : index
    %c0_13 = arith.constant 0 : index
    %30 = vector.load %arg10[%c1, %c0_12, %c0_13] : memref<10x24x128xf32, #tpu.memory_space<vmem>>, vector<8x24x128xf32>
    tpu.vector_store %arg10[%c1, %c0_12, %c0_13], %29 {strides = array<i32>} : memref<10x24x128xf32, #tpu.memory_space<vmem>>, vector<8x24x128xf32>,
    %c0_i32 = arith.constant 0 : i32
    %31 = arith.cmpi sgt, %0, %c0_i32 : i32
    %32 = vector.broadcast %31 : i1 to vector<24x1xi1>
    %33 = arith.andi %6, %32 : vector<24x1xi1>
    %c0_14 = arith.constant 0 : index
    %c0_15 = arith.constant 0 : index
    %c0_16 = arith.constant 0 : index
    %c0_17 = arith.constant 0 : index
    %34 = vector.load %arg3[%c0_14, %c0_15, %c0_16, %c0_17] : memref<1x1x24x128xf32, #tpu.memory_space<vmem>>, vector<1x1x24x128xf32>
    %35 = vector.shape_cast %34 : vector<1x1x24x128xf32> to vector<24x128xf32>
    %c0_18 = arith.constant 0 : index
    %c0_19 = arith.constant 0 : index
    %36 = vector.load %arg5[%c0_18, %c0_19] : memref<128x128xf32, #tpu.memory_space<vmem>>, vector<128x128xf32>
    %cst_20 = arith.constant dense<0.000000e+00> : vector<24x128xf32>
    %37 = tpu.matmul %35, %36, %cst_20 {dimension_numbers = #tpu.dot_dimension_numbers<[1], [0], [0], [1], [0, 0, 1, 1], [], []>} : vector<24x128xf32>, vector<128x128xf32>, vector<24x128xf32> -> vector<24x128xf32>
    %c0_21 = arith.constant 0 : index
    %c0_22 = arith.constant 0 : index
    %38 = vector.load %arg6[%c0_21, %c0_22] : memref<1x128xf32, #tpu.memory_space<vmem>>, vector<1x128xf32>
    %39 = vector.broadcast %38 : vector<1x128xf32> to vector<24x128xf32>
    %40 = arith.addf %37, %39 : vector<24x128xf32>
    %cst_23 = arith.constant 3.000000e+00 : f32
    %41 = vector.broadcast %cst_23 : f32 to vector<24x128xf32>
    %42 = arith.addf %40, %41 : vector<24x128xf32>
    %cst_24 = arith.constant 0.000000e+00 : f32
    %cst_25 = arith.constant 6.000000e+00 : f32
    %43 = vector.broadcast %cst_24 : f32 to vector<24x128xf32>
    %44 = arith.maximumf %43, %42 : vector<24x128xf32>
    %45 = vector.broadcast %cst_25 : f32 to vector<24x128xf32>
    %46 = arith.minimumf %45, %44 : vector<24x128xf32>
    %47 = arith.mulf %40, %46 : vector<24x128xf32>
    %cst_26 = arith.constant 0.166666672 : f32
    %48 = vector.broadcast %cst_26 : f32 to vector<24x128xf32>
    %49 = arith.mulf %47, %48 : vector<24x128xf32>
    %cst_27 = arith.constant 0.000000e+00 : f32
    %50 = vector.shape_cast %33 : vector<24x1xi1> to vector<24x1xi1>
    %51 = vector.broadcast %50 : vector<24x1xi1> to vector<24x128xi1>
    %52 = vector.broadcast %cst_27 : f32 to vector<24x128xf32>
    %53 = arith.select %51, %49, %52 : vector<24x128xi1>, vector<24x128xf32>
    %c0_28 = arith.constant 0 : index
    %c0_29 = arith.constant 0 : index
    %c0_30 = arith.constant 0 : index
    %54 = vector.load %arg10[%c0_28, %c0_29, %c0_30] : memref<10x24x128xf32, #tpu.memory_space<vmem>>, vector<1x24x128xf32>
    %55 = vector.shape_cast %54 : vector<1x24x128xf32> to vector<24x128xf32>
    %56 = vector.shape_cast %53 : vector<24x128xf32> to vector<1x24x128xf32>
    tpu.vector_store %arg10[%c0_28, %c0_29, %c0_30], %56 {strides = array<i32>} : memref<10x24x128xf32, #tpu.memory_space<vmem>>, vector<1x24x128xf32>,
    %c8_i32_31 = arith.constant 8 : i32
    %57 = arith.addi %0, %c8_i32_31 : i32
    %c16_i32_32 = arith.constant 16 : i32
    %58 = arith.cmpi slt, %57, %c16_i32_32 : i32
    %59 = vector.broadcast %58 : i1 to vector<24x1xi1>
    %60 = arith.andi %6, %59 : vector<24x1xi1>
    %c0_33 = arith.constant 0 : index
    %c0_34 = arith.constant 0 : index
    %c0_35 = arith.constant 0 : index
    %c0_36 = arith.constant 0 : index
    %61 = vector.load %arg4[%c0_33, %c0_34, %c0_35, %c0_36] : memref<1x1x24x128xf32, #tpu.memory_space<vmem>>, vector<1x1x24x128xf32>
    %62 = vector.shape_cast %61 : vector<1x1x24x128xf32> to vector<24x128xf32>
    %c0_37 = arith.constant 0 : index
    %c0_38 = arith.constant 0 : index
    %63 = vector.load %arg5[%c0_37, %c0_38] : memref<128x128xf32, #tpu.memory_space<vmem>>, vector<128x128xf32>
    %cst_39 = arith.constant dense<0.000000e+00> : vector<24x128xf32>
    %64 = tpu.matmul %62, %63, %cst_39 {dimension_numbers = #tpu.dot_dimension_numbers<[1], [0], [0], [1], [0, 0, 1, 1], [], []>} : vector<24x128xf32>, vector<128x128xf32>, vector<24x128xf32> -> vector<24x128xf32>
    %c0_40 = arith.constant 0 : index
    %c0_41 = arith.constant 0 : index
    %65 = vector.load %arg6[%c0_40, %c0_41] : memref<1x128xf32, #tpu.memory_space<vmem>>, vector<1x128xf32>
    %66 = vector.broadcast %65 : vector<1x128xf32> to vector<24x128xf32>
    %67 = arith.addf %64, %66 : vector<24x128xf32>
    %cst_42 = arith.constant 3.000000e+00 : f32
    %68 = vector.broadcast %cst_42 : f32 to vector<24x128xf32>
    %69 = arith.addf %67, %68 : vector<24x128xf32>
    %cst_43 = arith.constant 0.000000e+00 : f32
    %cst_44 = arith.constant 6.000000e+00 : f32
    %70 = vector.broadcast %cst_43 : f32 to vector<24x128xf32>
    %71 = arith.maximumf %70, %69 : vector<24x128xf32>
    %72 = vector.broadcast %cst_44 : f32 to vector<24x128xf32>
    %73 = arith.minimumf %72, %71 : vector<24x128xf32>
    %74 = arith.mulf %67, %73 : vector<24x128xf32>
    %cst_45 = arith.constant 0.166666672 : f32
    %75 = vector.broadcast %cst_45 : f32 to vector<24x128xf32>
    %76 = arith.mulf %74, %75 : vector<24x128xf32>
    %cst_46 = arith.constant 0.000000e+00 : f32
    %77 = vector.shape_cast %60 : vector<24x1xi1> to vector<24x1xi1>
    %78 = vector.broadcast %77 : vector<24x1xi1> to vector<24x128xi1>
    %79 = vector.broadcast %cst_46 : f32 to vector<24x128xf32>
    %80 = arith.select %78, %76, %79 : vector<24x128xi1>, vector<24x128xf32>
    %c9 = arith.constant 9 : index
    %c0_47 = arith.constant 0 : index
    %c0_48 = arith.constant 0 : index
    %81 = vector.load %arg10[%c9, %c0_47, %c0_48] : memref<10x24x128xf32, #tpu.memory_space<vmem>>, vector<1x24x128xf32>
    %82 = vector.shape_cast %81 : vector<1x24x128xf32> to vector<24x128xf32>
    %83 = vector.shape_cast %80 : vector<24x128xf32> to vector<1x24x128xf32>
    tpu.vector_store %arg10[%c9, %c0_47, %c0_48], %83 {strides = array<i32>} : memref<10x24x128xf32, #tpu.memory_space<vmem>>, vector<1x24x128xf32>,
    %c0_49 = arith.constant 0 : index
    %c0_50 = arith.constant 0 : index
    %c0_51 = arith.constant 0 : index
    %84 = vector.load %arg10[%c0_49, %c0_50, %c0_51] : memref<10x24x128xf32, #tpu.memory_space<vmem>>, vector<8x24x128xf32>
    %85 = vector.extract_strided_slice %84 {offsets = [0, 0, 0], sizes = [8, 16, 128], strides = [1, 1, 1]} : vector<8x24x128xf32> to vector<8x16x128xf32>
    %86 = vector.shape_cast %85 : vector<8x16x128xf32> to vector<128x128xf32>
    %c0_52 = arith.constant 0 : index
    %c0_53 = arith.constant 0 : index
    %c0_54 = arith.constant 0 : index
    %c0_55 = arith.constant 0 : index
    %87 = vector.load %arg7[%c0_52, %c0_53, %c0_54, %c0_55] : memref<3x3x128x128xf32, #tpu.memory_space<vmem>>, vector<1x1x128x128xf32>
    %88 = vector.shape_cast %87 : vector<1x1x128x128xf32> to vector<128x128xf32>
    %cst_56 = arith.constant dense<0.000000e+00> : vector<128x128xf32>
    %89 = tpu.matmul %86, %88, %cst_56 {dimension_numbers = #tpu.dot_dimension_numbers<[1], [0], [0], [1], [0, 0, 1, 1], [], []>} : vector<128x128xf32>, vector<128x128xf32>, vector<128x128xf32> -> vector<128x128xf32>
    %90 = vector.extract_strided_slice %84 {offsets = [0, 1, 0], sizes = [8, 16, 128], strides = [1, 1, 1]} : vector<8x24x128xf32> to vector<8x16x128xf32>
    %91 = vector.shape_cast %90 : vector<8x16x128xf32> to vector<128x128xf32>
    %c0_57 = arith.constant 0 : index
    %c1_58 = arith.constant 1 : index
    %c0_59 = arith.constant 0 : index
    %c0_60 = arith.constant 0 : index
    %92 = vector.load %arg7[%c0_57, %c1_58, %c0_59, %c0_60] : memref<3x3x128x128xf32, #tpu.memory_space<vmem>>, vector<1x1x128x128xf32>
    %93 = vector.shape_cast %92 : vector<1x1x128x128xf32> to vector<128x128xf32>
    %cst_61 = arith.constant dense<0.000000e+00> : vector<128x128xf32>
    %94 = tpu.matmul %91, %93, %cst_61 {dimension_numbers = #tpu.dot_dimension_numbers<[1], [0], [0], [1], [0, 0, 1, 1], [], []>} : vector<128x128xf32>, vector<128x128xf32>, vector<128x128xf32> -> vector<128x128xf32>
    %95 = arith.addf %89, %94 : vector<128x128xf32>
    %96 = vector.extract_strided_slice %84 {offsets = [0, 2, 0], sizes = [8, 16, 128], strides = [1, 1, 1]} : vector<8x24x128xf32> to vector<8x16x128xf32>
    %97 = vector.shape_cast %96 : vector<8x16x128xf32> to vector<128x128xf32>
    %c0_62 = arith.constant 0 : index
    %c2 = arith.constant 2 : index
    %c0_63 = arith.constant 0 : index
    %c0_64 = arith.constant 0 : index
    %98 = vector.load %arg7[%c0_62, %c2, %c0_63, %c0_64] : memref<3x3x128x128xf32, #tpu.memory_space<vmem>>, vector<1x1x128x128xf32>
    %99 = vector.shape_cast %98 : vector<1x1x128x128xf32> to vector<128x128xf32>
    %cst_65 = arith.constant dense<0.000000e+00> : vector<128x128xf32>
    %100 = tpu.matmul %97, %99, %cst_65 {dimension_numbers = #tpu.dot_dimension_numbers<[1], [0], [0], [1], [0, 0, 1, 1], [], []>} : vector<128x128xf32>, vector<128x128xf32>, vector<128x128xf32> -> vector<128x128xf32>
    %101 = arith.addf %95, %100 : vector<128x128xf32>
    %c1_66 = arith.constant 1 : index
    %c0_67 = arith.constant 0 : index
    %c0_68 = arith.constant 0 : index
    %102 = vector.load %arg10[%c1_66, %c0_67, %c0_68] : memref<10x24x128xf32, #tpu.memory_space<vmem>>, vector<8x24x128xf32>
    %103 = vector.extract_strided_slice %102 {offsets = [0, 0, 0], sizes = [8, 16, 128], strides = [1, 1, 1]} : vector<8x24x128xf32> to vector<8x16x128xf32>
    %104 = vector.shape_cast %103 : vector<8x16x128xf32> to vector<128x128xf32>
    %c1_69 = arith.constant 1 : index
    %c0_70 = arith.constant 0 : index
    %c0_71 = arith.constant 0 : index
    %c0_72 = arith.constant 0 : index
    %105 = vector.load %arg7[%c1_69, %c0_70, %c0_71, %c0_72] : memref<3x3x128x128xf32, #tpu.memory_space<vmem>>, vector<1x1x128x128xf32>
    %106 = vector.shape_cast %105 : vector<1x1x128x128xf32> to vector<128x128xf32>
    %cst_73 = arith.constant dense<0.000000e+00> : vector<128x128xf32>
    %107 = tpu.matmul %104, %106, %cst_73 {dimension_numbers = #tpu.dot_dimension_numbers<[1], [0], [0], [1], [0, 0, 1, 1], [], []>} : vector<128x128xf32>, vector<128x128xf32>, vector<128x128xf32> -> vector<128x128xf32>
    %108 = arith.addf %101, %107 : vector<128x128xf32>
    %109 = vector.extract_strided_slice %102 {offsets = [0, 1, 0], sizes = [8, 16, 128], strides = [1, 1, 1]} : vector<8x24x128xf32> to vector<8x16x128xf32>
    %110 = vector.shape_cast %109 : vector<8x16x128xf32> to vector<128x128xf32>
    %c1_74 = arith.constant 1 : index
    %c1_75 = arith.constant 1 : index
    %c0_76 = arith.constant 0 : index
    %c0_77 = arith.constant 0 : index
    %111 = vector.load %arg7[%c1_74, %c1_75, %c0_76, %c0_77] : memref<3x3x128x128xf32, #tpu.memory_space<vmem>>, vector<1x1x128x128xf32>
    %112 = vector.shape_cast %111 : vector<1x1x128x128xf32> to vector<128x128xf32>
    %cst_78 = arith.constant dense<0.000000e+00> : vector<128x128xf32>
    %113 = tpu.matmul %110, %112, %cst_78 {dimension_numbers = #tpu.dot_dimension_numbers<[1], [0], [0], [1], [0, 0, 1, 1], [], []>} : vector<128x128xf32>, vector<128x128xf32>, vector<128x128xf32> -> vector<128x128xf32>
    %114 = arith.addf %108, %113 : vector<128x128xf32>
    %115 = vector.extract_strided_slice %102 {offsets = [0, 2, 0], sizes = [8, 16, 128], strides = [1, 1, 1]} : vector<8x24x128xf32> to vector<8x16x128xf32>
    %116 = vector.shape_cast %115 : vector<8x16x128xf32> to vector<128x128xf32>
    %c1_79 = arith.constant 1 : index
    %c2_80 = arith.constant 2 : index
    %c0_81 = arith.constant 0 : index
    %c0_82 = arith.constant 0 : index
    %117 = vector.load %arg7[%c1_79, %c2_80, %c0_81, %c0_82] : memref<3x3x128x128xf32, #tpu.memory_space<vmem>>, vector<1x1x128x128xf32>
    %118 = vector.shape_cast %117 : vector<1x1x128x128xf32> to vector<128x128xf32>
    %cst_83 = arith.constant dense<0.000000e+00> : vector<128x128xf32>
    %119 = tpu.matmul %116, %118, %cst_83 {dimension_numbers = #tpu.dot_dimension_numbers<[1], [0], [0], [1], [0, 0, 1, 1], [], []>} : vector<128x128xf32>, vector<128x128xf32>, vector<128x128xf32> -> vector<128x128xf32>
    %120 = arith.addf %114, %119 : vector<128x128xf32>
    %c2_84 = arith.constant 2 : index
    %c0_85 = arith.constant 0 : index
    %c0_86 = arith.constant 0 : index
    %121 = vector.load %arg10[%c2_84, %c0_85, %c0_86] : memref<10x24x128xf32, #tpu.memory_space<vmem>>, vector<8x24x128xf32>
    %122 = vector.extract_strided_slice %121 {offsets = [0, 0, 0], sizes = [8, 16, 128], strides = [1, 1, 1]} : vector<8x24x128xf32> to vector<8x16x128xf32>
    %123 = vector.shape_cast %122 : vector<8x16x128xf32> to vector<128x128xf32>
    %c2_87 = arith.constant 2 : index
    %c0_88 = arith.constant 0 : index
    %c0_89 = arith.constant 0 : index
    %c0_90 = arith.constant 0 : index
    %124 = vector.load %arg7[%c2_87, %c0_88, %c0_89, %c0_90] : memref<3x3x128x128xf32, #tpu.memory_space<vmem>>, vector<1x1x128x128xf32>
    %125 = vector.shape_cast %124 : vector<1x1x128x128xf32> to vector<128x128xf32>
    %cst_91 = arith.constant dense<0.000000e+00> : vector<128x128xf32>
    %126 = tpu.matmul %123, %125, %cst_91 {dimension_numbers = #tpu.dot_dimension_numbers<[1], [0], [0], [1], [0, 0, 1, 1], [], []>} : vector<128x128xf32>, vector<128x128xf32>, vector<128x128xf32> -> vector<128x128xf32>
    %127 = arith.addf %120, %126 : vector<128x128xf32>
    %128 = vector.extract_strided_slice %121 {offsets = [0, 1, 0], sizes = [8, 16, 128], strides = [1, 1, 1]} : vector<8x24x128xf32> to vector<8x16x128xf32>
    %129 = vector.shape_cast %128 : vector<8x16x128xf32> to vector<128x128xf32>
    %c2_92 = arith.constant 2 : index
    %c1_93 = arith.constant 1 : index
    %c0_94 = arith.constant 0 : index
    %c0_95 = arith.constant 0 : index
    %130 = vector.load %arg7[%c2_92, %c1_93, %c0_94, %c0_95] : memref<3x3x128x128xf32, #tpu.memory_space<vmem>>, vector<1x1x128x128xf32>
    %131 = vector.shape_cast %130 : vector<1x1x128x128xf32> to vector<128x128xf32>
    %cst_96 = arith.constant dense<0.000000e+00> : vector<128x128xf32>
    %132 = tpu.matmul %129, %131, %cst_96 {dimension_numbers = #tpu.dot_dimension_numbers<[1], [0], [0], [1], [0, 0, 1, 1], [], []>} : vector<128x128xf32>, vector<128x128xf32>, vector<128x128xf32> -> vector<128x128xf32>
    %133 = arith.addf %127, %132 : vector<128x128xf32>
    %134 = vector.extract_strided_slice %121 {offsets = [0, 2, 0], sizes = [8, 16, 128], strides = [1, 1, 1]} : vector<8x24x128xf32> to vector<8x16x128xf32>
    %135 = vector.shape_cast %134 : vector<8x16x128xf32> to vector<128x128xf32>
    %c2_97 = arith.constant 2 : index
    %c2_98 = arith.constant 2 : index
    %c0_99 = arith.constant 0 : index
    %c0_100 = arith.constant 0 : index
    %136 = vector.load %arg7[%c2_97, %c2_98, %c0_99, %c0_100] : memref<3x3x128x128xf32, #tpu.memory_space<vmem>>, vector<1x1x128x128xf32>
    %137 = vector.shape_cast %136 : vector<1x1x128x128xf32> to vector<128x128xf32>
    %cst_101 = arith.constant dense<0.000000e+00> : vector<128x128xf32>
    %138 = tpu.matmul %135, %137, %cst_101 {dimension_numbers = #tpu.dot_dimension_numbers<[1], [0], [0], [1], [0, 0, 1, 1], [], []>} : vector<128x128xf32>, vector<128x128xf32>, vector<128x128xf32> -> vector<128x128xf32>
    %139 = arith.addf %133, %138 : vector<128x128xf32>
    %c0_102 = arith.constant 0 : index
    %c0_103 = arith.constant 0 : index
    %140 = vector.load %arg8[%c0_102, %c0_103] : memref<1x128xf32, #tpu.memory_space<vmem>>, vector<1x128xf32>
    %141 = vector.broadcast %140 : vector<1x128xf32> to vector<128x128xf32>
    %142 = arith.addf %139, %141 : vector<128x128xf32>
    %cst_104 = arith.constant 3.000000e+00 : f32
    %143 = vector.broadcast %cst_104 : f32 to vector<128x128xf32>
    %144 = arith.addf %142, %143 : vector<128x128xf32>
    %cst_105 = arith.constant 0.000000e+00 : f32
    %cst_106 = arith.constant 6.000000e+00 : f32
    %145 = vector.broadcast %cst_105 : f32 to vector<128x128xf32>
    %146 = arith.maximumf %145, %144 : vector<128x128xf32>
    %147 = vector.broadcast %cst_106 : f32 to vector<128x128xf32>
    %148 = arith.minimumf %147, %146 : vector<128x128xf32>
    %149 = arith.mulf %142, %148 : vector<128x128xf32>
    %cst_107 = arith.constant 0.166666672 : f32
    %150 = vector.broadcast %cst_107 : f32 to vector<128x128xf32>
    %151 = arith.mulf %149, %150 : vector<128x128xf32>
    %152 = vector.shape_cast %151 : vector<128x128xf32> to vector<8x16x128xf32>
    %c0_108 = arith.constant 0 : index
    %c0_109 = arith.constant 0 : index
    %c1_110 = arith.constant 1 : index
    %c0_111 = arith.constant 0 : index
    %153 = vector.load %arg2[%c0_108, %c0_109, %c1_110, %c0_111] : memref<1x8x24x128xf32, #tpu.memory_space<vmem>>, vector<1x8x16x128xf32>
    %154 = vector.shape_cast %153 : vector<1x8x16x128xf32> to vector<8x16x128xf32>
    %155 = arith.addf %152, %154 : vector<8x16x128xf32>
    %c0_112 = arith.constant 0 : index
    %c0_113 = arith.constant 0 : index
    %c0_114 = arith.constant 0 : index
    %c0_115 = arith.constant 0 : index
    %156 = vector.load %arg9[%c0_112, %c0_113, %c0_114, %c0_115] : memref<1x8x16x128xf32, #tpu.memory_space<vmem>>, vector<1x8x16x128xf32>
    %157 = vector.shape_cast %156 : vector<1x8x16x128xf32> to vector<8x16x128xf32>
    %158 = vector.shape_cast %155 : vector<8x16x128xf32> to vector<1x8x16x128xf32>
    tpu.vector_store %arg9[%c0_112, %c0_113, %c0_114, %c0_115], %158 {strides = array<i32>} : memref<1x8x16x128xf32, #tpu.memory_space<vmem>>, vector<1x8x16x128xf32>,
    return
  }
  func.func @transform_0(%arg0: i32, %arg1: i32) -> (i32, i32, i32, i32) {
    %c0_i32 = arith.constant 0 : i32
    %c0_i32_0 = arith.constant 0 : i32
    %c0_i32_1 = arith.constant 0 : i32
    return %arg0, %arg1, %c0_i32, %c0_i32_0 : i32, i32, i32, i32
  }
  func.func @transform_1(%arg0: i32, %arg1: i32) -> (i32, i32, i32, i32) {
    %c8_i32 = arith.constant 8 : i32
    %0 = arith.muli %arg1, %c8_i32 : i32
    %c1_i32 = arith.constant 1 : i32
    %1 = arith.subi %0, %c1_i32 : i32
    %c0_i32 = arith.constant 0 : i32
    %2 = arith.maxsi %1, %c0_i32 : i32
    %c0_i32_0 = arith.constant 0 : i32
    %c0_i32_1 = arith.constant 0 : i32
    %c0_i32_2 = arith.constant 0 : i32
    return %arg0, %2, %c0_i32_0, %c0_i32_1 : i32, i32, i32, i32
  }
  func.func @transform_2(%arg0: i32, %arg1: i32) -> (i32, i32, i32, i32) {
    %c1_i32 = arith.constant 1 : i32
    %0 = arith.addi %arg1, %c1_i32 : i32
    %c8_i32 = arith.constant 8 : i32
    %1 = arith.muli %0, %c8_i32 : i32
    %c15_i32 = arith.constant 15 : i32
    %2 = arith.minsi %1, %c15_i32 : i32
    %c0_i32 = arith.constant 0 : i32
    %c0_i32_0 = arith.constant 0 : i32
    %c0_i32_1 = arith.constant 0 : i32
    return %arg0, %2, %c0_i32, %c0_i32_0 : i32, i32, i32, i32
  }
  func.func @transform_3(%arg0: i32, %arg1: i32) -> (i32, i32) {
    %c0_i32 = arith.constant 0 : i32
    %c0_i32_0 = arith.constant 0 : i32
    %c0_i32_1 = arith.constant 0 : i32
    return %c0_i32, %c0_i32_0 : i32, i32
  }
  func.func @transform_4(%arg0: i32, %arg1: i32) -> (i32, i32) {
    %c0_i32 = arith.constant 0 : i32
    %c0_i32_0 = arith.constant 0 : i32
    %c0_i32_1 = arith.constant 0 : i32
    return %c0_i32, %c0_i32_0 : i32, i32
  }
  func.func @transform_5(%arg0: i32, %arg1: i32) -> (i32, i32, i32, i32) {
    %c0_i32 = arith.constant 0 : i32
    %c0_i32_0 = arith.constant 0 : i32
    %c0_i32_1 = arith.constant 0 : i32
    %c0_i32_2 = arith.constant 0 : i32
    %c0_i32_3 = arith.constant 0 : i32
    return %c0_i32, %c0_i32_0, %c0_i32_1, %c0_i32_2 : i32, i32, i32, i32
  }
  func.func @transform_6(%arg0: i32, %arg1: i32) -> (i32, i32) {
    %c0_i32 = arith.constant 0 : i32
    %c0_i32_0 = arith.constant 0 : i32
    %c0_i32_1 = arith.constant 0 : i32
    return %c0_i32, %c0_i32_0 : i32, i32
  }
  func.func @transform_7(%arg0: i32, %arg1: i32) -> (i32, i32, i32, i32) {
    %c0_i32 = arith.constant 0 : i32
    %c0_i32_0 = arith.constant 0 : i32
    %c0_i32_1 = arith.constant 0 : i32
    return %arg0, %arg1, %c0_i32, %c0_i32_0 : i32, i32, i32, i32
  }
}

</mosaic_0001>

<bundles_post_ra>
// kernel: tpu_custom_call.1
= control target key start
LH: loop header
LB: loop body
LE: loop exit
PB: predicated region body
PF: predicated region fallthrough
CT: control target
= control target key end

     0   :  { %s7147_s0 = inlined_call_operand.hbm [shape: f32[2,16,24,128], index: 0, kind: input, shape index: {}]   ;;  %s7148_s1 = inlined_call_operand.hbm [shape: f32[2,16,24,128], index: 1, kind: input, shape index: {}]   ;;  %s7149_s2 = inlined_call_operand.hbm [shape: f32[2,16,24,128], index: 2, kind: input, shape index: {}]   ;;  %s7150_s3 = inlined_call_operand.hbm [shape: f32[128,128], index: 3, kind: input, shape index: {}]   ;;  %s7151_s4 = inlined_call_operand.vmem [shape: f32[1,128], index: 4, kind: input, shape index: {}]   ;;  %s7152_s5 = inlined_call_operand.hbm [shape: f32[3,3,128,128], index: 5, kind: input, shape index: {}]   ;;  %s7153_s6 = inlined_call_operand.vmem [shape: f32[1,128], index: 6, kind: input, shape index: {}]   ;;  %s7154_s7 = inlined_call_operand.hbm [shape: f32[2,16,16,128], index: 7, kind: output, shape index: {}]  }
   0x1   :  { %7206 = sst [smem:[#allocation43_spill]] %s7148_s1 }
   0x2   :  { %7207 = sst [smem:[#allocation44_spill]] %s7149_s2 }
   0x3   :  { %7208 = sst [smem:[#allocation45_spill]] %s7150_s3 }
   0x4   :  { %7209 = sst [smem:[#allocation46_spill]] %s7151_s4 }
   0x5   :  { %7210 = sst [smem:[#allocation47_spill]] %s7152_s5 }
   0x6   :  { %7211 = sst [smem:[#allocation48_spill]] %s7153_s6 }
   0x7   :  { %7212 = sst [smem:[#allocation49_spill]] %s7154_s7 }
   0x8   :  { %12 = vsyncpa [#allocation4], 0 }
   0x9   :  { %14 = vsyncpa [#allocation4 + $0x1], 0 }
   0xa   :  { %15 = vsyncpa [#allocation7], 0 }
   0xb   :  { %17 = vsyncpa [#allocation7 + $0x1], 0 }
   0xc   :  { %18 = vsyncpa [#allocation10], 0 }
   0xd   :  { %19 = vsyncpa [#allocation5], 0 }
   0xe   :  { %21 = vsyncpa [#allocation5 + $0x1], 0  ;;  %s5681_s24 = smov 0   ;;  %s5683_s25 = smov 0  }
   0xf   :  { %s5685_s26 = smov 0   ;;  %s5687_s27 = smov 0  }
  0x10   :  { %s5689_s28 = smov 0   ;;  %s5691_s29 = smov 0  }
  0x11   :  { %s5693_s30 = smov 0   ;;  %s5695_s8 = smov 0  }
  0x12   :  { %s5697_s9 = smov 0   ;;  %s5699_s10 = smov 0  }
  0x13   :  { %s5701_s11 = smov 0   ;;  %s5703_s12 = smov 0  }
  0x14   :  { %s5705_s13 = smov 0   ;;  %s5707_s14 = smov 0  }
  0x15 LB: > { %7213 = sst [smem:[#allocation18_spill]] %s5574_s24  ;;  %s5752_s15 = sadd.s32 4294967295, %s5626_s14   ;;  %s5626_s14 = sphi %s5707_s14, %s27_s14   ;;  %s5622_s13 = sphi %s5705_s13, %s7341_s13   ;;  %s5618_s12 = sphi %s5703_s12, %s7340_s12   ;;  %s5614_s11 = sphi %s5701_s11, %s7339_s11   ;;  %s5610_s10 = sphi %s5699_s10, %s7338_s10   ;;  %s5606_s9 = sphi %s5697_s9, %s7337_s9   ;;  %s5602_s8 = sphi %s5695_s8, %s7336_s8   ;;  %s5598_s30 = sphi %s5693_s30, %s7335_s30   ;;  %s5594_s29 = sphi %s5691_s29, %s7326_s29   ;;  %s5590_s28 = sphi %s5689_s28, %s7325_s28   ;;  %s5586_s27 = sphi %s5687_s27, %s7324_s27   ;;  %s5582_s26 = sphi %s5685_s26, %s7334_s26   ;;  %s5578_s25 = sphi %s5683_s25, %s7333_s25   ;;  %s5574_s24 = sphi %s5681_s24, %s7332_s24  }
  0x16   : > { %7214 = sst [smem:[#allocation19_spill]] %s5590_s28  ;;  %p3553_p0 = scmp.ge.s32.totalorder %s5626_s14, 1 }
  0x17   : > { %7215 = sst [smem:[#allocation20_spill]] %s5594_s29  ;;  %p7156_p1 = scmp.eq.s32.totalorder %s5752_s15, 0 }
  0x18   : > { %7216 = sst [smem:[#allocation21_spill]] %s5610_s10  ;;  %p256_p3 = scmp.lt.s32.totalorder %s5626_s14, 5 }
  0x19   : > { %7217 = sst [smem:[#allocation22_spill]] %s5614_s11  ;;  %s5628_s17 = smov [#allocation9]  }
  0x1a   : > { %7218 = sst [smem:[#allocation23_spill]] %s5622_s13  ;;  %p5758_p4 = pnand %p3553_p0, %p256_p3 }
  0x1b   : > { %s268_s18 = sshll.u32 %s5628_s17, 4  ;;  %s7222_s3 = sld [smem:[#allocation45_spill]]  ;;  %s269_s18 = int_to_ptr.vmem [resolvable:$true] %s268_s18 }
  0x1c   : > { %s7219_s16 = scalar_select %p5758_p4, 1, 0 }
  0x1d   : > { %p5174_p5 = pneg %p5758_p4 }
  0x1e   : > { %7220 = sst [smem:[#allocation24_spill]] %s7219_s16 }
  0x1f   : > { %p5766_p6 = pnand %p5174_p5, %p7156_p1 }
  0x21   : > { %s5322_s22 = scalar_lea.hbm %s7222_s3, 2048  ;;  %p7176_p8 = pneg %p5766_p6 }
  0x22   : > { %p5323_p7 = scmp.ne.s32.totalorder %s7222_s3, %s5322_s22  ;;  %p5329_p11 = scmp.lt.u32.totalorder %s5322_s22, %s7222_s3 }
  0x24   : > { %p5325_p9 = pnand %p7176_p8, %p5323_p7 }
  0x26   : > { %p5326_p10 = pneg %p5325_p9 }
  0x28   : > { %p5331_p12 = pnand %p5329_p11, %p5326_p10 }
  0x2a   : > { %5334 = shalt.err (!%p5331_p12)
}
  0x2b   : > { %s5335_s20 = scalar_lea.vmem %s269_s18, 2048  ;;  %p5343_p5 = scmp.lt.s32.totalorder %s269_s18, %s269_s18 }
  0x2c   : > { %p5336_p13 = scmp.ne.s32.totalorder %s269_s18, %s5335_s20  ;;  %p5344_p2 = scmp.lt.s32.totalorder %s5335_s20, %s5335_s20 }
  0x2e   : > { %p5338_p0 = pnand %p5336_p13, %p7176_p8  ;;  %p5345_p1 = por %p5344_p2, %p5343_p5 }
  0x30   : > { %p5339_p3 = pneg %p5338_p0 }
  0x32   : > { %p5346_p4 = pnand %p5345_p1, %p5339_p3 }
  0x34   : > { %5349 = shalt.err (!%p5346_p4)
}
  0x35   : > { %s7160_s7 = smov 128   ;;  %s7162_s11 = smov 8  }
  0x36   : > { %5177 = dma.hbm_to_vmem [thread:$0]  (!%p5766_p6), %s7222_s3, 2048, %s269_s18, [#allocation10], %s7160_s7, %s7160_s7, %s7162_s11  }
  0x37   : > { %s36_s23 = sadd.s32 1, %s5618_s12  ;;  %s39_s17 = sadd.s32 1, %s5622_s13 }
  0x38   : > { %p37_p1 = scmp.ge.s32.totalorder %s36_s23, 2  ;;  %p7175_p2 = scmp.eq.s32.totalorder %s5626_s14, 0 }
  0x39   : > { %s3547_s20 = sshll.u32 %s5618_s12, 3  ;;  %s84_s6 = sadd.s32 1, %s5594_s29 }
  0x3a   : > { %s7343_s23 = smov (%p37_p1, %s36_s23), 0  ;;  %s7345_s17 = smov (!%p37_p1, %s39_s17), %s5622_s13 }
  0x3b   : > { %7223 = sst [smem:[#allocation25_spill]] %s7343_s23  ;;  %s44_s10 = ssub.s32 %s5618_s12, %s7343_s23 }
  0x3c   : > { %s3548_s4 = sadd.s32 4294967295, %s3547_s20  ;;  %p41_p4 = scmp.ge.s32.totalorder %s7345_s17, 2 }
  0x3d   : > { %p73_p7 = scmp.gt.s32.totalorder %s3548_s4, 0  ;;  %s3549_s18 = sshll.u32 %s7343_s23, 3 }
  0x3e   : > { %p91_p9 = scmp.ne.s32.totalorder %s5594_s29, %s5590_s28  ;;  %s7347_s17 = smov (%p41_p4, %s7345_s17), 0 }
  0x3f   : > { %7224 = sst [smem:[#allocation26_spill]] %s7347_s17  ;;  %s7349_s4 = smov (!%p73_p7, %s3548_s4), 0 }
  0x40   : > { %s5812_s21 = ssub.s32 %s5622_s13, %s7347_s17  ;;  %s3550_s22 = sadd.s32 4294967295, %s3549_s18 }
  0x41   : > { %7225 = sst [smem:[#allocation27_spill]] %s5812_s21  ;;  %s5815_s7 = sor.u32 %s44_s10, %s5812_s21 }
  0x42   : > { %p77_p10 = scmp.gt.s32.totalorder %s3550_s22, 0  ;;  %p5820_p12 = por %p91_p9, %p7175_p2 }
  0x43   : > { %p97_p13 = scmp.ne.s32.totalorder %s5590_s28, %s5586_s27  ;;  %s5826_s3 = sadd.s32 8, %s3547_s20 }
  0x44   : > { %s7351_s22 = smov (!%p77_p10, %s3550_s22), 0  ;;  %p7227_p3 = scmp.eq.s32.totalorder %s5752_s15, 0 }
  0x45   : > { %s80_s10 = ssub.s32 %s7349_s4, %s7351_s22  ;;  %s5836_s16 = sadd.s32 8, %s3549_s18 }
  0x46   : > { %s81_s17 = sor.u32 %s80_s10, %s5812_s21  ;;  %p5832_p5 = por %p97_p13, %p7227_p3 }
  0x47   : > { %p82_p1 = scmp.eq.s32.totalorder %s81_s17, 0  ;;  %p7174_p7 = scmp.lt.s32.totalorder %s5626_s14, 4 }
  0x48   : > { %s7228_s23 = scalar_select %p5832_p5, 1, 0 }
  0x49   : > { %s5841_s2 = scalar_select %p82_p1, %s5594_s29, %s84_s6  }
  0x4a   : > { %7229 = sst [smem:[#allocation28_spill]] %s7228_s23  ;;  %s5844_s27 = smul.u32 48, %s5622_s13 }
  0x4b   : > { %7230 = sst [smem:[#allocation29_spill]] %s5841_s2  ;;  %s325_s20 = sand.u32 1, %s5626_s14  }
  0x4c   : > { %s327_s22 = sand.u32 1, %s5594_s29   ;;  %p5852_p9 = pnand %p7174_p7, %p5820_p12 }
  0x4d   : > { %s5149_s28 = smul.u32 24, %s327_s22  ;;  %s7232_s1 = sld [smem:[#allocation43_spill]] }
  0x4e   : > { %s5150_s17 = smul.u32 3, %s7349_s4  ;;  %s5631_s11 = smov [#allocation11]  }
  0x4f   : > { %s329_s23 = scalar_lea.vmem [#allocation6], %s5149_s28  ;;  %s5864_s22 = sshll.u32 %s5631_s11, 4  ;;  %s285_s22 = int_to_ptr.vmem [resolvable:$true] %s5864_s22 }
  0x50   : > { %s339_s18 = sadd.s32 %s5150_s17, %s5844_s27  ;;  %s342_s21 = sshll.u32 %s329_s23, 4  ;;  %s5857_s21 = int_to_ptr.vmem [resolvable:$true] %s342_s21 }
  0x51   : > { %s3562_s6 = sshll.u32 %s339_s18, 7  ;;  %s5866_s24 = scalar_lea.sflag [#allocation7], %s325_s20 }
  0x52   : > { %p5352_p12 = pneg %p5852_p9 }
  0x53   : > { %s5862_s29 = scalar_lea.hbm %s7232_s1, %s3562_s6  ;;  %s5355_s13 = scalar_lea.hbm %s7232_s1, 12288 }
  0x54   : > { %s5350_s4 = scalar_lea.hbm %s5862_s29, 384  ;;  %p5356_p1 = scmp.lt.u32.totalorder %s5862_s29, %s7232_s1 }
  0x55   : > { %p5351_p10 = scmp.ne.s32.totalorder %s5862_s29, %s5350_s4  ;;  %p5357_p4 = scmp.lt.u32.totalorder %s5355_s13, %s5350_s4 }
  0x56   : > { %p5359_p7 = scmp.lt.u32.totalorder %s5350_s4, %s5862_s29 }
  0x57   : > { %p5353_p13 = pnand %p5352_p12, %p5351_p10  ;;  %p5358_p0 = por %p5357_p4, %p5356_p1 }
  0x59   : > { %p5354_p3 = pneg %p5353_p13  ;;  %p5360_p2 = por %p5359_p7, %p5358_p0 }
  0x5b   : > { %p5361_p11 = pnand %p5360_p2, %p5354_p3 }
  0x5d   : > { %5364 = shalt.err (!%p5361_p11)
}
  0x5e   : > { %s5365_s20 = scalar_lea.vmem %s5857_s21, 384  ;;  %s5632_s18 = smov [#allocation6]  }
  0x5f   : > { %p5366_p10 = scmp.ne.s32.totalorder %s5857_s21, %s5365_s20  ;;  %s5370_s6 = sshll.u32 %s5632_s18, 4  ;;  %s5371_s6 = int_to_ptr.vmem [resolvable:$false] %s5370_s6 }
  0x60   : > { %s5372_s11 = scalar_lea.vmem %s5371_s6, 768  ;;  %p5373_p5 = scmp.lt.s32.totalorder %s5857_s21, %s5371_s6 }
  0x61   : > { %p5368_p13 = pnand %p5366_p10, %p5352_p12  ;;  %p5374_p4 = scmp.lt.s32.totalorder %s5372_s11, %s5365_s20 }
  0x63   : > { %p5369_p8 = pneg %p5368_p13  ;;  %p5375_p1 = por %p5374_p4, %p5373_p5 }
  0x65   : > { %p5376_p0 = pnand %p5375_p1, %p5369_p8 }
  0x67   : > { %5379 = shalt.err (!%p5376_p0)
}
  0x68   : > { %s7233_s4 = smov 8   ;;  %s7234_s2 = smov 128  }
  0x69   : > { %5187 = dma.hbm_to_vmem [thread:$0]  (!%p5852_p9), %s5862_s29, 384, %s5857_s21, %s5866_s24, %s7234_s2, %s7234_s2, %s7233_s4  }
  0x6a   : > { %s7235_s5 = sld [smem:[#allocation47_spill]]  ;;  %p7236_p2 = pneg %p5766_p6 }
  0x70   : > { %s5380_s23 = scalar_lea.hbm %s7235_s5, 18432 }
  0x71   : > { %p5381_p8 = scmp.ne.s32.totalorder %s7235_s5, %s5380_s23  ;;  %p5387_p7 = scmp.lt.u32.totalorder %s5380_s23, %s7235_s5 }
  0x73   : > { %p5383_p11 = pnand %p5381_p8, %p7236_p2 }
  0x75   : > { %p5384_p5 = pneg %p5383_p11 }
  0x77   : > { %p5389_p12 = pnand %p5387_p7, %p5384_p5 }
  0x79   : > { %5392 = shalt.err (!%p5389_p12)
}
  0x7a   : > { %s5393_s29 = scalar_lea.vmem %s285_s22, 18432  ;;  %p7237_p3 = pmov %p7236_p2 }
  0x7b   : > { %p5394_p9 = scmp.ne.s32.totalorder %s285_s22, %s5393_s29  ;;  %p5401_p4 = scmp.lt.s32.totalorder %s285_s22, %s285_s22 }
  0x7c   : > { %p5402_p1 = scmp.lt.s32.totalorder %s5393_s29, %s5393_s29 }
  0x7d   : > { %p5396_p10 = pnand %p5394_p9, %p7237_p3 }
  0x7e   : > { %p5403_p0 = por %p5402_p1, %p5401_p4 }
  0x7f   : > { %p5397_p13 = pneg %p5396_p10 }
  0x81   : > { %p5404_p2 = pnand %p5403_p0, %p5397_p13 }
  0x83   : > { %5407 = shalt.err (!%p5404_p2)
}
  0x84   : > { %5180 = dma.hbm_to_vmem [thread:$0]  (!%p5766_p6), %s7235_s5, 18432, %s285_s22, [#allocation10], %s7234_s2, %s7234_s2, %s7233_s4  }
  0x85   : > { %s3546_s19 = sadd.s32 4294967294, %s5626_s14   ;;  %s48_s11 = sadd.s32 1, %s5606_s9 }
  0x86   : > { %p55_p8 = scmp.ne.s32.totalorder %s5606_s9, %s5602_s8  ;;  %p7238_p11 = scmp.eq.s32.totalorder %s5815_s7, 0 }
  0x87   : > { %p7240_p5 = scmp.eq.s32.totalorder %s5626_s14, 0  ;;  %p61_p12 = scmp.ne.s32.totalorder %s5602_s8, %s5598_s30 }
  0x88   : > { %s5928_s28 = scalar_select %p7238_p11, %s5606_s9, %s48_s11  }
  0x89   : > { %p57_p7 = por %p7240_p5, %p55_p8  ;;  %p7241_p9 = scmp.eq.s32.totalorder %s5752_s15, 3 }
  0x8a   : > { %7239 = sst [smem:[#allocation30_spill]] %s5928_s28  ;;  %p249_p10 = scmp.eq.s32.totalorder %s3546_s19, 3 }
  0x8b   : > { %p5936_p3 = por %p7241_p9, %p55_p8  ;;  %p7243_p13 = scmp.eq.s32.totalorder %s5752_s15, 0 }
  0x8c   : > { %s301_s22 = sand.u32 1, %s5606_s9   ;;  %p5947_p6 = por %p249_p10, %p61_p12 }
  0x8d   : > { %s7242_s13 = scalar_select %p5936_p3, 1, 0 }
  0x8e   : > { %p5942_p4 = por %p7243_p13, %p61_p12  ;;  %s5146_s7 = smul.u32 192, %s301_s22 }
  0x8f   : > { %s7245_s17 = scalar_select %p5947_p6, 1, 0 }
  0x90   : > { %p7246_p1 = scmp.lt.s32.totalorder %s5626_s14, 4  ;;  %s5147_s10 = smul.u32 24, %s5618_s12 }
  0x91   : > { %s305_s29 = scalar_lea.vmem [#allocation3], %s5146_s7  ;;  %s5966_s5 = scalar_lea.sflag [#allocation4], %s301_s22 }
  0x92   : > { %p5953_p0 = pnand %p7246_p1, %p57_p7  ;;  %s312_s18 = sadd.s32 %s5844_s27, %s5147_s10 }
  0x93   : > { %s315_s21 = sshll.u32 %s305_s29, 4  ;;  %s3559_s6 = sshll.u32 %s312_s18, 7  ;;  %s5959_s21 = int_to_ptr.vmem [resolvable:$true] %s315_s21 }
  0x94   : > { %s5964_s1 = scalar_lea.hbm %s7147_s0, %s3559_s6  ;;  %p5410_p8 = pneg %p5953_p0 }
  0x95   : > { %s5408_s28 = scalar_lea.hbm %s5964_s1, 3072  ;;  %s5413_s18 = scalar_lea.hbm %s7147_s0, 12288 }
  0x96   : > { %p5409_p2 = scmp.ne.s32.totalorder %s5964_s1, %s5408_s28  ;;  %p5414_p7 = scmp.lt.u32.totalorder %s5964_s1, %s7147_s0 }
  0x97   : > { %p5415_p12 = scmp.lt.u32.totalorder %s5413_s18, %s5408_s28  ;;  %p5417_p10 = scmp.lt.u32.totalorder %s5408_s28, %s5964_s1 }
  0x98   : > { %p5411_p11 = pnand %p5410_p8, %p5409_p2 }
  0x99   : > { %p5416_p9 = por %p5415_p12, %p5414_p7 }
  0x9a   : > { %p5412_p5 = pneg %p5411_p11 }
  0x9b   : > { %p5418_p13 = por %p5417_p10, %p5416_p9 }
  0x9d   : > { %p5419_p1 = pnand %p5418_p13, %p5412_p5 }
  0x9f   : > { %5422 = shalt.err (!%p5419_p1)
}
  0xa0   : > { %s5423_s22 = scalar_lea.vmem %s5959_s21, 3072  ;;  %s5633_s19 = smov [#allocation3]  }
  0xa1   : > { %p5424_p2 = scmp.ne.s32.totalorder %s5959_s21, %s5423_s22  ;;  %s5428_s11 = sshll.u32 %s5633_s19, 4  ;;  %s5429_s11 = int_to_ptr.vmem [resolvable:$false] %s5428_s11 }
  0xa2   : > { %s5430_s7 = scalar_lea.vmem %s5429_s11, 6144  ;;  %p5431_p3 = scmp.lt.s32.totalorder %s5959_s21, %s5429_s11 }
  0xa3   : > { %p5426_p11 = pnand %p5424_p2, %p5410_p8  ;;  %p5432_p7 = scmp.lt.s32.totalorder %s5430_s7, %s5423_s22 }
  0xa5   : > { %p5427_p6 = pneg %p5426_p11  ;;  %p5433_p12 = por %p5432_p7, %p5431_p3 }
  0xa7   : > { %p5434_p9 = pnand %p5433_p12, %p5427_p6 }
  0xa9   : > { %5437 = shalt.err (!%p5434_p9)
}
  0xaa   : > { %s7248_s28 = sld [smem:[#allocation18_spill]]  ;;  %s7249_s10 = sld [smem:[#allocation27_spill]] }
  0xab   : > { %5184 = dma.hbm_to_vmem [thread:$0]  (!%p5953_p0), %s5964_s1, 3072, %s5959_s21, %s5966_s5, %s7234_s2, %s7234_s2, %s7233_s4  }
  0xac   : > { %p7250_p3 = scmp.lt.s32.totalorder %s5826_s3, 15  ;;  %p7251_p6 = scmp.lt.s32.totalorder %s5836_s16, 15 }
  0xad   : > { %s120_s20 = sadd.s32 1, %s5582_s26  ;;  %p127_p8 = scmp.ne.s32.totalorder %s5582_s26, %s5578_s25 }
  0xae   : > { %s7353_s3 = smov (!%p7250_p3, %s5826_s3), 15  ;;  %s7355_s16 = smov (!%p7251_p6, %s5836_s16), 15 }
  0xaf   : > { %s116_s18 = ssub.s32 %s7353_s3, %s7355_s16  ;;  %p7252_p10 = scmp.eq.s32.totalorder %s5626_s14, 0 }
  0xb0   : > { %p133_p5 = scmp.ne.s32.totalorder %s5578_s25, %s7248_s28  ;;  %s117_s29 = sor.u32 %s116_s18, %s7249_s10 }
  0xb1   : > { %p129_p13 = por %p127_p8, %p7252_p10  ;;  %p118_p1 = scmp.eq.s32.totalorder %s117_s29, 0 }
  0xb2   : > { %p7253_p2 = scmp.eq.s32.totalorder %s5752_s15, 0  ;;  %s354_s22 = sand.u32 1, %s5582_s26  }
  0xb3   : > { %s5153_s1 = smul.u32 3, %s7353_s3  ;;  %p7255_p0 = scmp.lt.s32.totalorder %s5626_s14, 4 }
  0xb4   : > { %p6013_p11 = por %p133_p5, %p7253_p2  ;;  %s5152_s21 = smul.u32 24, %s354_s22 }
  0xb5   : > { %s6019_s5 = scalar_select %p118_p1, %s5582_s26, %s120_s20  }
  0xb6   : > { %s7254_s6 = scalar_select %p6013_p11, 1, 0 }
  0xb7   : > { %s366_s19 = sadd.s32 %s5153_s1, %s5844_s27  ;;  %p6024_p7 = pnand %p7255_p0, %p129_p13 }
  0xb8   : > { %s3564_s11 = sshll.u32 %s366_s19, 7  ;;  %s7257_s10 = sld [smem:[#allocation44_spill]] }
  0xb9   : > { %s356_s3 = scalar_lea.vmem [#allocation8], %s5152_s21  ;;  %p5440_p9 = pneg %p6024_p7 }
  0xba   : > { %s369_s20 = sshll.u32 %s356_s3, 4  ;;  %s6033_s20 = int_to_ptr.vmem [resolvable:$true] %s369_s20 }
  0xbe   : > { %s7258_s18 = smov %s7257_s10  ;;  %s6031_s29 = scalar_lea.hbm %s7257_s10, %s3564_s11 }
  0xbf   : > { %s5438_s27 = scalar_lea.hbm %s6031_s29, 384  ;;  %s5443_s19 = scalar_lea.hbm %s7258_s18, 12288 }
  0xc0   : > { %p5439_p12 = scmp.ne.s32.totalorder %s6031_s29, %s5438_s27  ;;  %p5444_p8 = scmp.lt.u32.totalorder %s6031_s29, %s7258_s18 }
  0xc1   : > { %p5445_p5 = scmp.lt.u32.totalorder %s5443_s19, %s5438_s27  ;;  %p5447_p13 = scmp.lt.u32.totalorder %s5438_s27, %s6031_s29 }
  0xc2   : > { %p5441_p3 = pnand %p5440_p9, %p5439_p12 }
  0xc3   : > { %p5446_p10 = por %p5445_p5, %p5444_p8 }
  0xc4   : > { %p5442_p6 = pneg %p5441_p3 }
  0xc5   : > { %p5448_p1 = por %p5447_p13, %p5446_p10 }
  0xc7   : > { %p5449_p2 = pnand %p5448_p1, %p5442_p6 }
  0xc9   : > { %5452 = shalt.err (!%p5449_p2)
}
  0xca   : > { %s5453_s21 = scalar_lea.vmem %s6033_s20, 384  ;;  %s5634_s28 = smov [#allocation8]  }
  0xcb   : > { %p5454_p0 = scmp.ne.s32.totalorder %s6033_s20, %s5453_s21  ;;  %s5458_s10 = sshll.u32 %s5634_s28, 4  ;;  %s5459_s10 = int_to_ptr.vmem [resolvable:$false] %s5458_s10 }
  0xcc   : > { %s5460_s3 = scalar_lea.vmem %s5459_s10, 768  ;;  %p5461_p11 = scmp.lt.s32.totalorder %s6033_s20, %s5459_s10 }
  0xcd   : > { %p5456_p12 = pnand %p5454_p0, %p5440_p9  ;;  %p5462_p8 = scmp.lt.s32.totalorder %s5460_s3, %s5453_s21 }
  0xcf   : > { %p5457_p3 = pneg %p5456_p12  ;;  %p5463_p5 = por %p5462_p8, %p5461_p11 }
  0xd1   : > { %p5464_p10 = pnand %p5463_p5, %p5457_p3 }
  0xd3   : > { %5467 = shalt.err (!%p5464_p10)
}
  0xd4   : > { %5190 = dma.hbm_to_vmem [thread:$0]  (!%p6024_p7), %s6031_s29, 384, %s6033_s20, %s5866_s24, %s7234_s2, %s7234_s2, %s7233_s4  }
  0xd5   : > { %s7259_s27 = sld [smem:[#allocation24_spill]] }
  0xdb   : > { %p7260_p9 = scmp.ne.s32.totalorder %s7259_s27, 0 }
  0xdd   : > { %381 = sbr.rel (%p7260_p9) target bundleno = 1015 (0x3f7), region = 48 }
  0xe4   : > { %s6067_s22 = sand.u32 1, %s5602_s8  }
  0xe5   : > { %s5155_s1 = smul.u32 192, %s6067_s22  ;;  %s384_s19 = scalar_lea.sflag [#allocation4], %s6067_s22 }
  0xe7   : > { %s6071_s11 = scalar_lea.vmem [#allocation3], %s5155_s1 }
  0xe8   : > { %5553 = dma.done.wait (%p5942_p4), %s384_s19, 3072  }
  0xe9   : > { %5555 = vsyncadd (%p5942_p4), %s384_s19, 4294964224  ;;  %s7261_s24 = sld [smem:[#allocation19_spill]]  ;;  %s7262_s4 = sld [smem:[#allocation28_spill]] }
  0xea   : > { %s392_s2 = sand.u32 1, %s5752_s15  }
  0xeb   : > { %s393_s20 = scalar_lea.sflag [#allocation7], %s392_s2 }
  0xef   : > { %s394_s16 = sand.u32 1, %s7261_s24   ;;  %p7263_p11 = scmp.ne.s32.totalorder %s7262_s4, 0 }
  0xf0   : > { %s5156_s29 = smul.u32 24, %s394_s16 }
  0xf2   : > { %s6079_s7 = scalar_lea.vmem [#allocation6], %s5156_s29 }
  0xf3   : > { %5557 = dma.done.wait (%p7263_p11), %s393_s20, 384  }
  0xf4   : > { %5559 = vsyncadd (%p7263_p11), %s393_s20, 4294966912  ;;  %s403_s21 = sand.u32 1, %s5578_s25   ;;  %p7264_p4 = scmp.ne.s32.totalorder %s7254_s6, 0 }
  0xf5   : > { %s5157_s28 = smul.u32 24, %s403_s21 }
  0xf7   : > { %s6086_s23 = scalar_lea.vmem [#allocation8], %s5157_s28 }
  0xf8   : > { %5561 = dma.done.wait (%p7264_p4), %s393_s20, 384  }
  0xf9   : > { %5563 = vsyncadd (%p7264_p4), %s393_s20, 4294966912  ;;  %p7265_p7 = scmp.eq.s32.totalorder %s5752_s15, 0 }
  0xfb   : > { %5565 = dma.done.wait (%p7265_p7), [#allocation10], 20480   ;;  %p7266_p6 = pmov %p7265_p7 }
  0xfc   : > { %v502_v0 = vld [vmem:[#allocation9] sm:$0xff]  ;;  %v503_v1 = vld [vmem:[#allocation9 + $0x8] sm:$0xff]  ;;  %v504_v2 = vld [vmem:[#allocation9 + $0x10] sm:$0xff]  ;;  %v5635_v26 = vmov 0.0|0.0   ;;  %vm5636_vm0 = vmmov 0   ;;  %v5637_v49 = vmov 0.0  }
  0xfd   : > { %5567 = vsyncadd (%p7266_p6), [#allocation10], 4294946816  ;;  %v6096_v3 = vpack.c.bf16 %v503_v1, %v502_v0  ;;  %v505_v4 = vld [vmem:[#allocation9 + $0x18] sm:$0xff]  ;;  %v506_v6 = vld [vmem:[#allocation9 + $0x20] sm:$0xff]  ;;  %s7267_s10 = sld [smem:[#allocation46_spill]]  ;;  %vm1231_vm2 = vcmask 1046528  }
  0xfe   : > { %v6098_v5 = vpack.c.bf16 %v505_v4, %v504_v2  ;;  %v507_v7 = vld [vmem:[#allocation9 + $0x28] sm:$0xff]  ;;  %v478_v9 = vld [vmem:[%s6071_s11] sm:$0xff]  ;;  %v508_v10 = vld [vmem:[#allocation9 + $0x30] sm:$0xff]  ;;  %vm1595_vm4 = vcmask 1045504   ;;  %s7271_s27 = sld [smem:[#allocation21_spill]]  ;;  %s7318_s21 = sld [smem:[#allocation48_spill]] }
  0xff   : > { %4635 = vmatprep.subr.bf16.mxu1 %v6096_v3  ;;  %v6103_v8 = vpack.c.bf16 %v507_v7, %v506_v6  ;;  %v509_v11 = vld [vmem:[#allocation9 + $0x38] sm:$0xff]  ;;  %4012 = vmatprep.mubr.f32.mxu1 %v478_v9  ;;  %v510_v13 = vld [vmem:[#allocation9 + $0x40] sm:$0xff]  ;;  %v511_v14 = vld [vmem:[#allocation9 + $0x48] sm:$0xff]  ;;  %s3568_s28 = sshll.u32 %s6067_s22, 7  ;;  %s7319_s15 = sld [smem:[#allocation22_spill]] }
 0x100   : > { %4637 = vmatpush3.bf16.msra.mxu1 %v6096_v3  ;;  %v6108_v12 = vpack.c.bf16 %v509_v11, %v508_v10  ;;  %v6112_v15 = vpack.c.bf16 %v511_v14, %v510_v13  ;;  %v512_v16 = vld [vmem:[#allocation9 + $0x50] sm:$0xff]  ;;  %v513_v17 = vld [vmem:[#allocation9 + $0x58] sm:$0xff]  ;;  %v514_v19 = vld [vmem:[#allocation9 + $0x60] sm:$0xff]  ;;  %s7320_s2 = sld [smem:[#allocation49_spill]]  ;;  %p7321_p0 = scmp.ne.s32.totalorder %s7242_s13, 0 }
 0x101   : > { %4639 = vmatprep.subr.bf16.mxu1 %v6098_v5  ;;  %v6116_v18 = vpack.c.bf16 %v513_v17, %v512_v16  ;;  %v515_v20 = vld [vmem:[#allocation9 + $0x68] sm:$0xff]  ;;  %v516_v22 = vld [vmem:[#allocation9 + $0x70] sm:$0xff]  ;;  %v517_v23 = vld [vmem:[#allocation9 + $0x78] sm:$0xff] }
 0x102   : > { %v6120_v21 = vpack.c.bf16 %v515_v20, %v514_v19  ;;  %v6124_v24 = vpack.c.bf16 %v517_v23, %v516_v22  ;;  %v479_v25 = vld [vmem:[%s6071_s11 + $0x8] sm:$0xff]  ;;  %v480_v27 = vld [vmem:[%s6071_s11 + $0x10] sm:$0xff]  ;;  %v481_v28 = vld [vmem:[%s6071_s11 + $0x18] sm:$0xff] }
 0x103   : > { %v482_v29 = vld [vmem:[%s6071_s11 + $0x20] sm:$0xff]  ;;  %v483_v30 = vld [vmem:[%s6071_s11 + $0x28] sm:$0xff]  ;;  %v484_v31 = vld [vmem:[%s6071_s11 + $0x30] sm:$0xff]  ;;  %s7268_s3 = smov %s7267_s10 }
 0x104   : > { %4641 = vmatpush3.bf16.msra.mxu1 %v6098_v5  ;;  %v485_v32 = vld [vmem:[%s6071_s11 + $0x38] sm:$0xff]  ;;  %v486_v33 = vld [vmem:[%s6071_s11 + $0x40] sm:$0xff]  ;;  %v487_v34 = vld [vmem:[%s6071_s11 + $0x48] sm:$0xff]  ;;  %s3569_s1 = sshll.u32 %s7271_s27, 3  ;;  %s3587_s6 = sshll.u32 %s7271_s27, 4 }
 0x105   : > { %4643 = vmatprep.subr.bf16.mxu1 %v6103_v8  ;;  %v488_v35 = vld [vmem:[%s6071_s11 + $0x50] sm:$0xff]  ;;  %v489_v36 = vld [vmem:[%s6071_s11 + $0x58] sm:$0xff]  ;;  %v490_v37 = vld [vmem:[%s6071_s11 + $0x60] sm:$0xff]  ;;  %p6273_p13 = scmp.gt.s32.totalorder %s3569_s1, 0  ;;  %s6639_s16 = sadd.s32 8, %s3569_s1 }
 0x106   : > { %v491_v38 = vld [vmem:[%s6071_s11 + $0x68] sm:$0xff]  ;;  %v492_v39 = vld [vmem:[%s6071_s11 + $0x70] sm:$0xff]  ;;  %v493_v40 = vld [vmem:[%s6071_s11 + $0x78] sm:$0xff]  ;;  %p1026_p1 = scmp.lt.s32.totalorder %s6639_s16, 16 }
 0x107   : > { %v494_v41 = vld [vmem:[%s6071_s11 + $0x80] sm:$0xff]  ;;  %v495_v42 = vld [vmem:[%s6071_s11 + $0x88] sm:$0xff]  ;;  %v496_v43 = vld [vmem:[%s6071_s11 + $0x90] sm:$0xff]  ;;  %s886_s24 = scalar_select %p6273_p13, 1, 0 }
 0x108   : > { %4645 = vmatpush3.bf16.msra.mxu1 %v6103_v8  ;;  %v497_v44 = vld [vmem:[%s6071_s11 + $0x98] sm:$0xff]  ;;  %v498_v45 = vld [vmem:[%s6071_s11 + $0xa0] sm:$0xff]  ;;  %v499_v46 = vld [vmem:[%s6071_s11 + $0xa8] sm:$0xff]  ;;  %s6681_s29 = scalar_select %p1026_p1, 1, 0 }
 0x109   : > { %4647 = vmatprep.subr.bf16.mxu1 %v6108_v12  ;;  %v500_v47 = vld [vmem:[%s6071_s11 + $0xb0] sm:$0xff]  ;;  %v501_v48 = vld [vmem:[%s6071_s11 + $0xb8] sm:$0xff]  ;;  %v893_v51 = vld [vmem:[%s6079_s7 + $0x8] sm:$0xff] }
 0x10a   : > { %v892_v50 = vld [vmem:[%s6079_s7] sm:$0xff]  ;;  %v894_v52 = vld [vmem:[%s6079_s7 + $0x10] sm:$0xff]  ;;  %v1034_v54 = vld [vmem:[%s6086_s23 + $0x8] sm:$0xff] }
 0x10b   : > { %v1033_v53 = vld [vmem:[%s6086_s23] sm:$0xff]  ;;  %v1035_v55 = vld [vmem:[%s6086_s23 + $0x10] sm:$0xff]  ;;  %s7010_s23 = scalar_lea.vmem [#allocation12], %s3568_s28 }
 0x10c   : > { %4649 = vmatpush3.bf16.msra.mxu1 %v6108_v12  ;;  %v1289_v56 = vld [vmem:[#allocation11 + $0x80] sm:$0xff]  ;;  %v1290_v57 = vld [vmem:[#allocation11 + $0x88] sm:$0xff]  ;;  %v1291_v62 = vld [vmem:[#allocation11 + $0x90] sm:$0xff]  ;;  %s3387_s1 = sshll.u32 %s7010_s23, 4  ;;  %s7062_s1 = int_to_ptr.vmem [resolvable:$true] %s3387_s1 }
 0x10d   : > { %4651 = vmatprep.subr.bf16.mxu1 %v6112_v15  ;;  %v1653_v58 = vld [vmem:[#allocation11 + $0x100] sm:$0xff]  ;;  %v4714_v59 = vpack.c.bf16 %v1290_v57, %v1289_v56  ;;  %v1654_v60 = vld [vmem:[#allocation11 + $0x108] sm:$0xff]  ;;  %v1292_v63 = vld [vmem:[#allocation11 + $0x98] sm:$0xff]  ;;  %s5468_s20 = scalar_lea.vmem %s7062_s1, 2048 }
 0x10e   : > { %v4778_v61 = vpack.c.bf16 %v1654_v60, %v1653_v58  ;;  %v1655_v0 = vld [vmem:[#allocation11 + $0x110] sm:$0xff]  ;;  %v4718_v1 = vpack.c.bf16 %v1292_v63, %v1291_v62  ;;  %v1656_v2 = vld [vmem:[#allocation11 + $0x118] sm:$0xff]  ;;  %v1293_v4 = vld [vmem:[#allocation11 + $0xa0] sm:$0xff]  ;;  %p5469_p2 = scmp.ne.s32.totalorder %s7062_s1, %s5468_s20 }
 0x10f   : > { %v1657_v6 = vld [vmem:[#allocation11 + $0x120] sm:$0xff]  ;;  %v1295_v10 = vld [vmem:[#allocation11 + $0xb0] sm:$0xff]  ;;  %v1296_v11 = vld [vmem:[#allocation11 + $0xb8] sm:$0xff] }
 0x110   : > { %4653 = vmatpush3.bf16.msra.mxu1 %v6112_v15  ;;  %4779 = vmatprep.subr.bf16.mxu0 %v4778_v61  ;;  %v4726_v13 = vpack.c.bf16 %v1296_v11, %v1295_v10  ;;  %v1660_v14 = vld [vmem:[#allocation11 + $0x138] sm:$0xff]  ;;  %v1297_v16 = vld [vmem:[#allocation11 + $0xc0] sm:$0xff]  ;;  %v1298_v17 = vld [vmem:[#allocation11 + $0xc8] sm:$0xff]  ;;  %p5470_p12 = pnand %p5469_p2, %p7321_p0 }
 0x111   : > { %4655 = vmatprep.subr.bf16.mxu1 %v6116_v18  ;;  %4781 = vmatpush3.bf16.msra.mxu0 %v4778_v61  ;;  %v4730_v19 = vpack.c.bf16 %v1298_v17, %v1297_v16  ;;  %v1662_v20 = vld [vmem:[#allocation11 + $0x148] sm:$0xff]  ;;  %v1299_v22 = vld [vmem:[#allocation11 + $0xd0] sm:$0xff]  ;;  %v1300_v23 = vld [vmem:[#allocation11 + $0xd8] sm:$0xff] }
 0x112   : > { %p5471_p3 = pneg %p5470_p12 }
 0x114   : > { %4657 = vmatpush3.bf16.msra.mxu1 %v6116_v18 }
 0x115   : > { %4659 = vmatprep.subr.bf16.mxu1 %v6120_v21 }
 0x118   : > { %4661 = vmatpush3.bf16.msra.mxu1 %v6120_v21 }
 0x119   : > { %4663 = vmatprep.subr.bf16.mxu1 %v6124_v24 }
 0x11c   : > { %4665 = vmatpush3.bf16.msra.mxu1 %v6124_v24 }
 0x11d   : > { %4666 = vmatprep.subr.bf16.mxu1 %v5635_v26 }
 0x11f   : > { %4013 = vmatmul.mubr.f32.vlgmr.msra.gmra.mrb[0].mxu1 %v479_v25  ;;  %v4734_v25 = vpack.c.bf16 %v1300_v23, %v1299_v22 }
 0x120   : > { %4668 = vmatpush3.bf16.msra.mxu1 %v6096_v3  ;;  %4015 = vmatprep.mubr.f32.mxu1 %v480_v27 }
 0x121   : > { %4669 = vmatprep.subr.bf16.mxu1 %v5635_v26 }
 0x123   : > { %4016 = vmatmul.mubr.f32.gmra.mrb[2].mxu1 %v481_v28  ;;  %v1301_v28 = vld [vmem:[#allocation11 + $0xe0] sm:$0xff] }
 0x124   : > { %4018 = vmatprep.mubr.f32.mxu1 %v482_v29  ;;  %4671 = vmatpush3.bf16.msra.mxu1 %v6098_v5  ;;  %v1302_v29 = vld [vmem:[#allocation11 + $0xe8] sm:$0xff] }
 0x125   : > { %4672 = vmatprep.subr.bf16.mxu1 %v5635_v26 }
 0x127   : > { %4019 = vmatmul.mubr.f32.gmra.mrb[4].mxu1 %v483_v30  ;;  %v1665_v30 = vld [vmem:[#allocation11 + $0x160] sm:$0xff] }
 0x128   : > { %4021 = vmatprep.mubr.f32.mxu1 %v484_v31  ;;  %4674 = vmatpush3.bf16.msra.mxu1 %v6103_v8  ;;  %v4738_v31 = vpack.c.bf16 %v1302_v29, %v1301_v28 }
 0x129   : > { %4675 = vmatprep.subr.bf16.mxu1 %v5635_v26 }
 0x12b   : > { %4022 = vmatmul.mubr.f32.gmra.mrb[6].mxu1 %v485_v32  ;;  %v1666_v32 = vld [vmem:[#allocation11 + $0x168] sm:$0xff] }
 0x12c   : > { %4024 = vmatprep.mubr.f32.mxu1 %v486_v33  ;;  %4677 = vmatpush3.bf16.msra.mxu1 %v6108_v12  ;;  %v4802_v33 = vpack.c.bf16 %v1666_v32, %v1665_v30 }
 0x12d   : > { %4678 = vmatprep.subr.bf16.mxu1 %v5635_v26 }
 0x12f   : > { %4025 = vmatmul.mubr.f32.gmra.mrb[8].mxu1 %v487_v34  ;;  %v1303_v34 = vld [vmem:[#allocation11 + $0xf0] sm:$0xff] }
 0x130   : > { %4027 = vmatprep.mubr.f32.mxu1 %v488_v35  ;;  %4680 = vmatpush3.bf16.msra.mxu1 %v6112_v15  ;;  %v1304_v35 = vld [vmem:[#allocation11 + $0xf8] sm:$0xff] }
 0x131   : > { %4681 = vmatprep.subr.bf16.mxu1 %v5635_v26 }
 0x133   : > { %4028 = vmatmul.mubr.f32.gmra.mrb[10].mxu1 %v489_v36  ;;  %v1667_v36 = vld [vmem:[#allocation11 + $0x170] sm:$0xff] }
 0x134   : > { %4030 = vmatprep.mubr.f32.mxu1 %v490_v37  ;;  %4683 = vmatpush3.bf16.msra.mxu1 %v6116_v18  ;;  %v4742_v37 = vpack.c.bf16 %v1304_v35, %v1303_v34 }
 0x135   : > { %4684 = vmatprep.subr.bf16.mxu1 %v5635_v26 }
 0x137   : > { %4031 = vmatmul.mubr.f32.gmra.mrb[12].mxu1 %v491_v38  ;;  %v1668_v38 = vld [vmem:[#allocation11 + $0x178] sm:$0xff] }
 0x138   : > { %4033 = vmatprep.mubr.f32.mxu1 %v492_v39  ;;  %4686 = vmatpush3.bf16.msra.mxu1 %v6120_v21  ;;  %v4806_v39 = vpack.c.bf16 %v1668_v38, %v1667_v36 }
 0x139   : > { %4687 = vmatprep.subr.bf16.mxu1 %v5635_v26 }
 0x13b   : > { %4034 = vmatmul.mubr.f32.gmra.mrb[14].mxu1 %v493_v40  ;;  %v1191_v40 = vld [vmem:[#allocation11] sm:$0xff] }
 0x13c   : > { %4036 = vmatprep.mubr.f32.mxu1 %v494_v41  ;;  %4689 = vmatpush3.bf16.msra.mxu1 %v6124_v24  ;;  %v1192_v41 = vld [vmem:[#allocation11 + $0x8] sm:$0xff] }
 0x13d   : > { %4690 = vmatprep.subr.bf16.mxu1 %v5635_v26 }
 0x13f   : > { %4037 = vmatmul.mubr.f32.gmra.mrb[16].mxu1 %v495_v42  ;;  %v1855_v42 = vld [vmem:[#allocation11 + $0x180] sm:$0xff] }
 0x140   : > { %4039 = vmatprep.mubr.f32.mxu1 %v496_v43  ;;  %v6196_v43 = vpack.c.bf16 %v1192_v41, %v1191_v40 }
 0x143   : > { %4040 = vmatmul.mubr.f32.gmra.mrb[18].mxu1 %v497_v44  ;;  %v1856_v44 = vld [vmem:[#allocation11 + $0x188] sm:$0xff] }
 0x144   : > { %4042 = vmatprep.mubr.f32.mxu1 %v498_v45  ;;  %v6198_v45 = vpack.c.bf16 %v1856_v44, %v1855_v42 }
 0x147   : > { %4043 = vmatmul.mubr.f32.gmra.mrb[20].mxu1 %v499_v46  ;;  %v6205_v46 = vld [vmem:[%s7267_s10] ss:$0 sm:$0xff]  ;;  %s3577_s10 = sshll.u32 %s7319_s15, 5 }
 0x148   : > { %4045 = vmatprep.mubr.f32.mxu1 %v500_v47  ;;  %s3384_s27 = sadd.s32 %s3587_s6, %s3577_s10 }
 0x149   : > { %s3578_s19 = sshll.u32 %s3384_s27, 7 }
 0x14a   : > { %s7067_s16 = scalar_lea.hbm %s7320_s2, %s3578_s19 }
 0x14b   : > { %4046 = vmatmul.mubr.f32.gmra.mrb[22].mxu1 %v501_v48 }
 0x14c   : > { %4080 = vmatprep.mubr.msk.f32.mxu1 %vm5636_vm0, %v5637_v49 }
 0x14f   : > { %4081 = vmatmul.mubr.f32.vlgmr.msra.gmra.mrb[24].mxu1 %v892_v50 }
 0x150   : > { %4083 = vmatprep.mubr.msk.f32.mxu1 %vm5636_vm0, %v5637_v49  ;;  %4692 = vmatpush3.bf16.msra.mxu1 %v6096_v3  ;;  %v4782_v3 = vpack.c.bf16 %v1656_v2, %v1655_v0 }
 0x151   : > { %4693 = vmatprep.subr.bf16.mxu1 %v5635_v26 }
 0x152   : > { %4783 = vmatprep.subr.bf16.mxu0 %v4782_v3 }
 0x153   : > { %4084 = vmatmul.mubr.f32.gmra.mrb[26].mxu1 %v893_v51  ;;  %4785 = vmatpush3.bf16.msra.mxu0 %v4782_v3 }
 0x154   : > { %4086 = vmatprep.mubr.msk.f32.mxu1 %vm5636_vm0, %v5637_v49  ;;  %4695 = vmatpush3.bf16.msra.mxu1 %v6098_v5  ;;  %v1294_v5 = vld [vmem:[#allocation11 + $0xa8] sm:$0xff] }
 0x155   : > { %4696 = vmatprep.subr.bf16.mxu1 %v5635_v26  ;;  %v4722_v7 = vpack.c.bf16 %v1294_v5, %v1293_v4 }
 0x157   : > { %4087 = vmatmul.mubr.f32.gmra.mrb[28].mxu1 %v894_v52  ;;  %v465_v52 = vlaneseq }
 0x158   : > { %4698 = vmatpush3.bf16.msra.mxu1 %v6103_v8  ;;  %4121 = vmatprep.mubr.msk.f32.mxu1 %vm5636_vm0, %v5637_v49  ;;  %v1658_v8 = vld [vmem:[#allocation11 + $0x128] sm:$0xff] }
 0x159   : > { %4699 = vmatprep.subr.bf16.mxu1 %v5635_v26  ;;  %v4786_v9 = vpack.c.bf16 %v1658_v8, %v1657_v6  ;;  %v6210_v60 = vshrl.u32 %v465_v52, 7 }
 0x15b   : > { %4787 = vmatprep.subr.bf16.mxu0 %v4786_v9  ;;  %v6215_v5 = vadd.s32 16, %v6210_v60  ;;  %vm469_vm1 = vcmp.ge.s32.totalorder %v6210_v60, 1 }
 0x15c   : > { %4701 = vmatpush3.bf16.msra.mxu1 %v6108_v12  ;;  %v1659_v12 = vld [vmem:[#allocation11 + $0x130] sm:$0xff]  ;;  %4789 = vmatpush3.bf16.msra.mxu0 %v4786_v9 }
 0x15d   : > { %4702 = vmatprep.subr.bf16.mxu1 %v5635_v26  ;;  %vm474_vm3 = vcmp.le.s32.totalorder %v6215_v5, 16  ;;  %v2357_v5 = vld [vmem:[#allocation11 + $0x2d0] sm:$0xff] }
 0x160   : > { %4704 = vmatpush3.bf16.msra.mxu1 %v6112_v15  ;;  %v4790_v15 = vpack.c.bf16 %v1660_v14, %v1659_v12 }
 0x161   : > { %4705 = vmatprep.subr.bf16.mxu1 %v5635_v26 }
 0x162   : > { %4791 = vmatprep.subr.bf16.mxu0 %v4790_v15 }
 0x163   : > { %4793 = vmatpush3.bf16.msra.mxu0 %v4790_v15 }
 0x164   : > { %4707 = vmatpush3.bf16.msra.mxu1 %v6116_v18  ;;  %v1661_v18 = vld [vmem:[#allocation11 + $0x140] sm:$0xff] }
 0x165   : > { %4708 = vmatprep.subr.bf16.mxu1 %v5635_v26 }
 0x168   : > { %4710 = vmatpush3.bf16.msra.mxu1 %v6120_v21  ;;  %v4794_v21 = vpack.c.bf16 %v1662_v20, %v1661_v18 }
 0x169   : > { %4711 = vmatprep.subr.bf16.mxu1 %v5635_v26  ;;  %v1664_v26 = vld [vmem:[#allocation11 + $0x158] sm:$0xff] }
 0x16a   : > { %4795 = vmatprep.subr.bf16.mxu0 %v4794_v21 }
 0x16b   : > { %4797 = vmatpush3.bf16.msra.mxu0 %v4794_v21 }
 0x16c   : > { %4713 = vmatpush3.bf16.msra.mxu1 %v6124_v24  ;;  %v1663_v24 = vld [vmem:[#allocation11 + $0x150] sm:$0xff] }
 0x16d   : > { %4715 = vmatprep.subr.bf16.mxu1 %v4714_v59  ;;  %v4798_v27 = vpack.c.bf16 %v1664_v26, %v1663_v24 }
 0x16f   : > { %4122 = vmatmul.mubr.f32.vlgmr.msra.gmra.mrb[30].mxu1 %v1033_v53  ;;  %4799 = vmatprep.subr.bf16.mxu0 %v4798_v27 }
 0x170   : > { %4124 = vmatprep.mubr.msk.f32.mxu1 %vm5636_vm0, %v5637_v49  ;;  %4717 = vmatpush3.bf16.msra.mxu1 %v4714_v59 }
 0x171   : > { %4719 = vmatprep.subr.bf16.mxu1 %v4718_v1  ;;  %4801 = vmatpush3.bf16.msra.mxu0 %v4798_v27 }
 0x172   : > { %4803 = vmatprep.subr.bf16.mxu0 %v4802_v33 }
 0x173   : > { %4125 = vmatmul.mubr.f32.gmra.mrb[32].mxu1 %v1034_v54 }
 0x174   : > { %4127 = vmatprep.mubr.msk.f32.mxu1 %vm5636_vm0, %v5637_v49  ;;  %4721 = vmatpush3.bf16.msra.mxu1 %v4718_v1 }
 0x175   : > { %4723 = vmatprep.subr.bf16.mxu1 %v4722_v7  ;;  %4805 = vmatpush3.bf16.msra.mxu0 %v4802_v33 }
 0x176   : > { %4807 = vmatprep.subr.bf16.mxu0 %v4806_v39 }
 0x177   : > { %4128 = vmatmul.mubr.f32.gmra.mrb[34].mxu1 %v1035_v55 }
 0x178   : > { %4725 = vmatpush3.bf16.msra.mxu1 %v4722_v7 }
 0x179   : > { %4727 = vmatprep.subr.bf16.mxu1 %v4726_v13  ;;  %4809 = vmatpush3.bf16.msra.mxu0 %v4806_v39 }
 0x17a   : > { %4811 = vmatprep.subr.bf16.mxu0 %v6198_v45 }
 0x17c   : > { %4729 = vmatpush3.bf16.msra.mxu1 %v4726_v13 }
 0x17d   : > { %4731 = vmatprep.subr.bf16.mxu1 %v4730_v19 }
 0x180   : > { %4733 = vmatpush3.bf16.msra.mxu1 %v4730_v19 }
 0x181   : > { %4735 = vmatprep.subr.bf16.mxu1 %v4734_v25 }
 0x184   : > { %4737 = vmatpush3.bf16.msra.mxu1 %v4734_v25 }
 0x185   : > { %4739 = vmatprep.subr.bf16.mxu1 %v4738_v31 }
 0x188   : > { %4741 = vmatpush3.bf16.msra.mxu1 %v4738_v31 }
 0x189   : > { %4743 = vmatprep.subr.bf16.mxu1 %v4742_v37 }
 0x18c   : > { %4745 = vmatpush3.bf16.msra.mxu1 %v4742_v37 }
 0x18d   : > { %4747 = vmatprep.subr.bf16.mxu1 %v6196_v43 }
 0x1f2   : > { %v4014_v47 = vpop.f32.mrb[0].mxu1 }
 0x1f3   : > { %v597_v48 = vadd.f32 %v4014_v47, %v6205_v46  ;;  %v591_v49 = vpop.f32.mrb[1].mxu1 }
 0x1f4   : > { %v592_v50 = vadd.f32 %v6205_v46, %v591_v49 }
 0x1f5   : > { %v711_v51 = vadd.f32 3.0, %v597_v48 }
 0x1f6   : > { %v710_v53 = vadd.f32 3.0, %v592_v50  ;;  %v4017_v54 = vpop.f32.mrb[2].mxu1 }
 0x1f7   : > { %v735_v55 = vmax.f32 %v711_v51, 0.0  ;;  %v601_v56 = vpop.f32.mrb[3].mxu1  ;;  %v607_v34 = vadd.f32 %v4017_v54, %v6205_v46 }
 0x1f8   : > { %v734_v57 = vmax.f32 %v710_v53, 0.0  ;;  %v602_v58 = vadd.f32 %v6205_v46, %v601_v56  ;;  %v1193_v56 = vld [vmem:[#allocation11 + $0x10] sm:$0xff] }
 0x1f9   : > { %v759_v59 = vmin.f32 %v735_v55, 6.0  ;;  %v713_v40 = vadd.f32 3.0, %v607_v34 }
 0x1fa   : > { %v758_v61 = vmin.f32 %v734_v57, 6.0  ;;  %v712_v62 = vadd.f32 3.0, %v602_v58  ;;  %v4020_v63 = vpop.f32.mrb[4].mxu1  ;;  %v1194_v57 = vld [vmem:[#allocation11 + $0x18] sm:$0xff] }
 0x1fb   : > { %v783_v0 = vmul.f32 %v759_v59, %v597_v48  ;;  %v611_v1 = vpop.f32.mrb[5].mxu1  ;;  %v617_v29 = vadd.f32 %v4020_v63, %v6205_v46  ;;  %v1858_v63 = vld [vmem:[#allocation11 + $0x198] sm:$0xff] }
 0x1fc   : > { %v782_v2 = vmul.f32 %v758_v61, %v592_v50  ;;  %v736_v3 = vmax.f32 %v712_v62, 0.0  ;;  %v6255_v36 = vadd.f32 %v6205_v46, %v611_v1  ;;  %v737_v50 = vmax.f32 %v713_v40, 0.0  ;;  %v1857_v62 = vld [vmem:[#allocation11 + $0x190] sm:$0xff]  ;;  %v1199_v40 = vld [vmem:[#allocation11 + $0x40] sm:$0xff] }
 0x1fd   : > { %v6212_v4 = vmul.f32 0.16666667, %v783_v0  ;;  %v715_v33 = vadd.f32 3.0, %v617_v29  ;;  %v1195_v0 = vld [vmem:[#allocation11 + $0x20] sm:$0xff] }
 0x1fe   : > { %v6218_v6 = vmul.f32 0.16666667, %v782_v2  ;;  %v760_v7 = vmin.f32 %v736_v3, 6.0  ;;  %v4023_v8 = vpop.f32.mrb[6].mxu1  ;;  %v714_v44 = vadd.f32 3.0, %v6255_v36  ;;  %v1196_v2 = vld [vmem:[#allocation11 + $0x28] sm:$0xff] }
 0x1ff   : > { %7269 = vst [vmem:[#allocation31_spill] sm:$0xff] %v6212_v4  ;;  %v621_v9 = vpop.f32.mrb[7].mxu1  ;;  %v1238_v13 = vrot.slane %v6212_v4, 1  ;;  %v1602_v24 = vrot.slane %v6212_v4, 2  ;;  %v739_v38 = vmax.f32 %v715_v33, 0.0  ;;  %v6261_v39 = vadd.f32 %v4023_v8, %v6205_v46  ;;  %v1859_v3 = vld [vmem:[#allocation11 + $0x1a0] sm:$0xff] }
 0x200   : > { %7270 = vst [vmem:[#allocation32_spill] sm:$0xff] %v6218_v6  ;;  %v784_v10 = vmul.f32 %v760_v7, %v602_v58  ;;  %v836_v11 = vsel %vm469_vm1, %v6218_v6, 0.0  ;;  %v6264_v41 = vadd.f32 %v6205_v46, %v621_v9  ;;  %v738_v54 = vmax.f32 %v714_v44, 0.0  ;;  %v1860_v7 = vld [vmem:[#allocation11 + $0x1a8] sm:$0xff] }
 0x201   : > { %v1237_v12 = vrot.slane %v836_v11, 1  ;;  %v1601_v21 = vrot.slane %v836_v11, 2  ;;  %v763_v48 = vmin.f32 %v739_v38, 6.0  ;;  %v717_v49 = vadd.f32 3.0, %v6261_v39  ;;  %v1200_v44 = vld [vmem:[#allocation11 + $0x48] sm:$0xff] }
 0x202   : > { %v808_v14 = vmul.f32 0.16666667, %v784_v10  ;;  %v4026_v15 = vpop.f32.mrb[8].mxu1  ;;  %v716_v51 = vadd.f32 3.0, %v6264_v41  ;;  %v761_v8 = vmin.f32 %v737_v50, 6.0  ;;  %v6309_v50 = vpack.c.bf16 %v1196_v2, %v1195_v0 }
 0x203   : > { %v631_v16 = vpop.f32.mrb[9].mxu1  ;;  %v6226_v17 = vsel %vm1231_vm2, %v1237_v12, %v1238_v13  ;;  %v6236_v26 = vsel %vm1595_vm4, %v1601_v21, %v1602_v24  ;;  %v787_v58 = vmul.f32 %v763_v48, %v617_v29  ;;  %v6287_v59 = vadd.f32 %v4026_v15, %v6205_v46  ;;  %v1863_v48 = vld [vmem:[#allocation11 + $0x1c0] sm:$0xff] }
 0x204   : > { %v838_v18 = vsel %vm474_vm3, %v808_v14, 0.0  ;;  %v6280_v52 = vadd.f32 %v6205_v46, %v631_v16  ;;  %v741_v1 = vmax.f32 %v717_v49, 0.0  ;;  %v740_v9 = vmax.f32 %v716_v51, 0.0  ;;  %v1198_v14 = vld [vmem:[#allocation11 + $0x38] sm:$0xff] }
 0x205   : > { %v1240_v19 = vrot.slane %v838_v18, 1  ;;  %v1604_v23 = vrot.slane %v838_v18, 2  ;;  %v762_v15 = vmin.f32 %v738_v54, 6.0  ;;  %v6296_v18 = vstv %s886_s24  ;;  %v1864_v54 = vld [vmem:[#allocation11 + $0x1c8] sm:$0xff] }
 0x206   : > { %v4029_v20 = vpop.f32.mrb[10].mxu1  ;;  %v718_v10 = vadd.f32 3.0, %v6280_v52  ;;  %7274 = vst [vmem:[#allocation34_spill] sm:$0xff] %v6296_v18  ;;  %v6300_v21 = vpack.c.bf16 %v1858_v63, %v1857_v62  ;;  %v811_v29 = vmul.f32 0.16666667, %v787_v58  ;;  %v719_v33 = vadd.f32 3.0, %v6287_v59 }
 0x207   : > { %v6230_v22 = vpop.f32.mrb[11].mxu1  ;;  %v6239_v27 = vsel %vm1231_vm2, %v1238_v13, %v1240_v19  ;;  %v6245_v30 = vsel %vm1595_vm4, %v1602_v24, %v1604_v23  ;;  %v6294_v11 = vadd.f32 %v4029_v20, %v6205_v46  ;;  %v1197_v13 = vld [vmem:[#allocation11 + $0x30] sm:$0xff]  ;;  %v6298_v19 = vpack.c.bf16 %v1194_v57, %v1193_v56  ;;  %v1862_v24 = vld [vmem:[#allocation11 + $0x1b8] sm:$0xff] }
 0x208   : > { %v1861_v23 = vld [vmem:[#allocation11 + $0x1b0] sm:$0xff]  ;;  %v765_v49 = vmin.f32 %v741_v1, 6.0  ;;  %v6311_v51 = vpack.c.bf16 %v1860_v7, %v1859_v3  ;;  %v1202_v57 = vld [vmem:[#allocation11 + $0x58] sm:$0xff]  ;;  %v785_v58 = vmul.f32 %v761_v8, %v607_v34  ;;  %v764_v62 = vmin.f32 %v740_v9, 6.0 }
 0x209   : > { %v1201_v56 = vld [vmem:[#allocation11 + $0x50] sm:$0xff]  ;;  %v742_v63 = vmax.f32 %v718_v10, 0.0  ;;  %vm888_vm5 = vcmp.eq.s32.totalorder %v6296_v18, 1  ;;  %v6319_v2 = vpack.c.bf16 %v1862_v24, %v1861_v23  ;;  %v6321_v3 = vpack.c.bf16 %v1200_v44, %v1199_v40  ;;  %v1204_v10 = vld [vmem:[#allocation11 + $0x68] sm:$0xff] }
 0x20a   : > { %v6233_v25 = vpop.f32.mrb[12].mxu1  ;;  %v6325_v34 = vsel %vm474_vm3, %v811_v29, 0.0  ;;  %v743_v7 = vmax.f32 %v719_v33, 0.0  ;;  %v6329_v8 = vadd.f32 %v6205_v46, %v6230_v22  ;;  %v6331_v9 = vpack.c.bf16 %v1864_v54, %v1863_v48  ;;  %vm6383_vm6 = vmand %vm469_vm1, %vm888_vm5 }
 0x20b   : > { %v6241_v28 = vpop.f32.mrb[13].mxu1  ;;  %v6338_v24 = vmul.f32 0.16666667, %v785_v58  ;;  %v788_v29 = vmul.f32 %v764_v62, %v6264_v41  ;;  %v766_v33 = vmin.f32 %v742_v63, 6.0  ;;  %vm891_vm7 = vmand %vm474_vm3, %vm888_vm5 }
 0x20d   : > { %7277 = vst [vmem:[#allocation37_spill] sm:$0xff] %v6338_v24  ;;  %v6359_v58 = vmul.f32 0.16666667, %v788_v29  ;;  %v790_v62 = vmul.f32 %v766_v33, %v6280_v52 }
 0x20e   : > { %v6247_v31 = vpop.f32.mrb[14].mxu1 }
 0x20f   : > { %v6249_v32 = vpop.f32.mrb[15].mxu1 }
 0x212   : > { %v6252_v35 = vpop.f32.mrb[16].mxu1 }
 0x213   : > { %v6257_v37 = vpop.f32.mrb[17].mxu1 }
 0x216   : > { %v6266_v42 = vpop.f32.mrb[18].mxu1 }
 0x217   : > { %v6269_v47 = vpop.f32.mrb[19].mxu1 }
 0x21a   : > { %v4044_v53 = vpop.f32.mrb[20].mxu1 }
 0x21b   : > { %v6282_v55 = vpop.f32.mrb[21].mxu1  ;;  %v6290_v61 = vadd.f32 %v4044_v53, %v6205_v46  ;;  %v6313_v53 = vpack.c.bf16 %v1198_v14, %v1197_v13  ;;  %v789_v13 = vmul.f32 %v765_v49, %v6261_v39  ;;  %v767_v39 = vmin.f32 %v743_v7, 6.0 }
 0x21c   : > { %v720_v49 = vadd.f32 3.0, %v6329_v8 }
 0x21d   : > { %7273 = vst [vmem:[#allocation33_spill] sm:$0xff] %v6290_v61  ;;  %v786_v61 = vmul.f32 %v762_v15, %v6255_v36  ;;  %v1203_v36 = vld [vmem:[#allocation11 + $0x60] sm:$0xff]  ;;  %v6334_v15 = vpack.c.bf16 %v1202_v57, %v1201_v56  ;;  %v6353_v56 = vmul.f32 0.16666667, %v789_v13 }
 0x21e   : > { %v4047_v12 = vpop.f32.mrb[22].mxu1  ;;  %v744_v29 = vmax.f32 %v720_v49, 0.0 }
 0x21f   : > { %v701_v16 = vpop.f32.mrb[23].mxu1  ;;  %v6304_v38 = vadd.f32 %v4047_v12, %v6205_v46  ;;  %v721_v12 = vadd.f32 3.0, %v6294_v11  ;;  %v6342_v48 = vmul.f32 0.16666667, %v786_v61  ;;  %v6357_v61 = vadd.f32 %v6205_v46, %v6241_v28 }
 0x220   : > { %v6307_v20 = vadd.f32 %v6205_v46, %v701_v16  ;;  %v6370_v28 = vsel %vm469_vm1, %v6338_v24, 0.0  ;;  %v6438_v24 = vadd.f32 %v6266_v42, %v6205_v46 }
 0x221   : > { %7275 = vst [vmem:[#allocation35_spill] sm:$0xff] %v6304_v38  ;;  %v1865_v38 = vld [vmem:[#allocation11 + $0x1d0] sm:$0xff]  ;;  %v745_v40 = vmax.f32 %v721_v12, 0.0  ;;  %v1242_v49 = vrot.slane %v6370_v28, 1 }
 0x222   : > { %7276 = vst [vmem:[#allocation36_spill] sm:$0xff] %v6307_v20  ;;  %v984_v16 = vpop.f32.mrb[24].mxu1  ;;  %v1866_v20 = vld [vmem:[#allocation11 + $0x1d8] sm:$0xff] }
 0x223   : > { %v985_v0 = vadd.f32 %v6205_v46, %v984_v16  ;;  %v4082_v1 = vpop.f32.mrb[25].mxu1  ;;  %v6336_v23 = vpack.c.bf16 %v1866_v20, %v1865_v38  ;;  %v6349_v38 = vadd.f32 %v6233_v25, %v6205_v46  ;;  %v769_v63 = vmin.f32 %v745_v40, 6.0 }
 0x224   : > { %v6344_v1 = vpack.c.bf16 %v1204_v10, %v1203_v36  ;;  %v6364_v25 = vadd.f32 %v6205_v46, %v6249_v32  ;;  %v722_v40 = vadd.f32 3.0, %v6357_v61 }
 0x225   : > { %v998_v14 = vadd.f32 3.0, %v985_v0  ;;  %v723_v52 = vadd.f32 3.0, %v6349_v38 }
 0x226   : > { %v989_v44 = vpop.f32.mrb[26].mxu1  ;;  %v746_v20 = vmax.f32 %v722_v40, 0.0 }
 0x227   : > { %v1001_v54 = vmax.f32 %v998_v14, 0.0  ;;  %v4085_v16 = vpop.f32.mrb[27].mxu1  ;;  %v990_v41 = vadd.f32 %v6205_v46, %v989_v44  ;;  %v791_v14 = vmul.f32 %v767_v39, %v6287_v59 }
 0x228   : > { %v793_v16 = vmul.f32 %v769_v63, %v6294_v11  ;;  %v6395_v11 = vadd.f32 %v6252_v35, %v6205_v46 }
 0x229   : > { %v1004_v57 = vmin.f32 %v1001_v54, 6.0  ;;  %v999_v12 = vadd.f32 3.0, %v990_v41  ;;  %v814_v54 = vmul.f32 0.16666667, %v790_v62  ;;  %v6397_v63 = vmul.f32 0.16666667, %v791_v14 }
 0x22a   : > { %v994_v7 = vpop.f32.mrb[28].mxu1  ;;  %v817_v14 = vmul.f32 0.16666667, %v793_v16 }
 0x22b   : > { %v1007_v36 = vmul.f32 %v1004_v57, %v985_v0  ;;  %v995_v10 = vadd.f32 %v6205_v46, %v994_v7  ;;  %v4088_v13 = vpop.f32.mrb[29].mxu1  ;;  %v1002_v33 = vmax.f32 %v999_v12, 0.0  ;;  %v7183_v0 = vrot.slane %v6342_v48, 1 }
 0x22c   : > { %v6390_v57 = vadd.f32 %v6247_v31, %v6205_v46  ;;  %v724_v12 = vadd.f32 3.0, %v6364_v25  ;;  %v768_v7 = vmin.f32 %v744_v29, 6.0  ;;  %v6409_v35 = vsel %vm474_vm3, %v814_v54, 0.0 }
 0x22d   : > { %v6375_v44 = vmul.f32 0.16666667, %v1007_v36  ;;  %v1000_v32 = vadd.f32 3.0, %v995_v10  ;;  %v1005_v39 = vmin.f32 %v1002_v33, 6.0  ;;  %v747_v36 = vmax.f32 %v723_v52, 0.0 }
 0x22e   : > { %v6405_v31 = vsel %vm1231_vm2, %v1242_v49, %v7183_v0  ;;  %v6413_v29 = vadd.f32 %v6205_v46, %v6257_v37  ;;  %v725_v52 = vadd.f32 3.0, %v6390_v57  ;;  %v748_v40 = vmax.f32 %v724_v12, 0.0 }
 0x22f   : > { %v1003_v62 = vmax.f32 %v1000_v32, 0.0  ;;  %v1008_v13 = vmul.f32 %v1005_v39, %v990_v41  ;;  %v1019_v33 = vsel %vm6383_vm6, %v6375_v44, 0.0  ;;  %v727_v32 = vadd.f32 3.0, %v6395_v11 }
 0x230   : > { %v6421_v49 = vadd.f32 %v6205_v46, %v6269_v47  ;;  %v6425_v54 = vadd.f32 %v6205_v46, %v6282_v55  ;;  %v1232_v16 = vrot.slane %v1019_v33, 1  ;;  %v792_v47 = vmul.f32 %v768_v7, %v6329_v8 }
 0x231   : > { %v1006_v22 = vmin.f32 %v1003_v62, 6.0  ;;  %v6415_v41 = vmul.f32 0.16666667, %v1008_v13  ;;  %v771_v13 = vmin.f32 %v747_v36, 6.0  ;;  %v770_v0 = vmin.f32 %v746_v20, 6.0 }
 0x232   : > { %v726_v55 = vadd.f32 3.0, %v6413_v29  ;;  %v749_v6 = vmax.f32 %v725_v52, 0.0  ;;  %v1250_v8 = vrot.slane %v6409_v35, 1  ;;  %v772_v20 = vmin.f32 %v748_v40, 6.0 }
 0x233   : > { %7280 = vst [vmem:[#allocation38_spill] sm:$0xff] %v6415_v41  ;;  %v1009_v39 = vmul.f32 %v1006_v22, %v995_v10  ;;  %v1020_v37 = vsel %vm888_vm5, %v6415_v41, 0.0  ;;  %v1596_v10 = vrot.slane %v1019_v33, 2  ;;  %v751_v7 = vmax.f32 %v727_v32, 0.0 }
 0x234   : > { %v1233_v12 = vrot.slane %v1020_v37, 1  ;;  %v1597_v62 = vrot.slane %v1020_v37, 2  ;;  %v730_v36 = vadd.f32 3.0, %v6425_v54  ;;  %v1614_v46 = vrot.slane %v6409_v35, 2 }
 0x235   : > { %v1012_v22 = vmul.f32 0.16666667, %v1009_v39  ;;  %v728_v39 = vadd.f32 3.0, %v6421_v49  ;;  %v795_v42 = vmul.f32 %v771_v13, %v6349_v38  ;;  %v773_v40 = vmin.f32 %v749_v6, 6.0 }
 0x236   : > { %v1234_v18 = vsel %vm1231_vm2, %v1232_v16, %v1233_v12  ;;  %v1598_v41 = vsel %vm1595_vm4, %v1596_v10, %v1597_v62  ;;  %v1607_v38 = vrot.slane %v6342_v48, 2  ;;  %v754_v10 = vmax.f32 %v730_v36, 0.0 }
 0x237   : > { %v1021_v4 = vsel %vm891_vm7, %v1012_v22, 0.0  ;;  %4162 = vmatprep.mubr.f32.mxu1 %v1234_v18  ;;  %4274 = vmatprep.mubr.f32.mxu0 %v1598_v41  ;;  %v6451_v22 = vsel %vm474_vm3, %v817_v14, 0.0  ;;  %v750_v18 = vmax.f32 %v726_v55, 0.0  ;;  %v729_v41 = vadd.f32 3.0, %v6438_v24 }
 0x238   : > { %v1235_v33 = vrot.slane %v1021_v4, 1  ;;  %v1599_v37 = vrot.slane %v1021_v4, 2  ;;  %v794_v4 = vmul.f32 %v770_v0, %v6357_v61  ;;  %v752_v32 = vmax.f32 %v728_v39, 0.0 }
 0x239   : > { %v842_v14 = vsel %vm469_vm1, %v6359_v58, 0.0  ;;  %v796_v61 = vmul.f32 %v772_v20, %v6364_v25  ;;  %v775_v0 = vmin.f32 %v751_v7, 6.0  ;;  %v1255_v6 = vrot.slane %v6451_v22, 1 }
 0x23a   : > { %v1236_v16 = vsel %vm1231_vm2, %v1233_v12, %v1235_v33  ;;  %v1600_v52 = vsel %vm1595_vm4, %v1597_v62, %v1599_v37  ;;  %v6461_v12 = vmul.f32 0.16666667, %v792_v47  ;;  %v6468_v62 = vmul.f32 0.16666667, %v795_v42  ;;  %v7288_v59 = vld [vmem:[#allocation38_spill] sm:$0xff] }
 0x23b   : > { %4163 = vmatmul.mubr.f32.vlgmr.msra.gmra.mrb[36].mxu1 %v1236_v16  ;;  %4275 = vmatmul.mubr.f32.vlgmr.msra.gmra.mrb[0].mxu0 %v1600_v52  ;;  %v1606_v47 = vrot.slane %v6370_v28, 2  ;;  %v6473_v13 = vmul.f32 0.16666667, %v794_v4  ;;  %v774_v25 = vmin.f32 %v750_v18, 6.0  ;;  %v753_v55 = vmax.f32 %v729_v41, 0.0 }
 0x23c   : > { %4165 = vmatprep.mubr.f32.mxu1 %v6226_v17  ;;  %4749 = vmatpush3.bf16.msra.mxu1 %v6196_v43  ;;  %v1619_v43 = vrot.slane %v6451_v22, 2  ;;  %v797_v39 = vmul.f32 %v773_v40, %v6390_v57  ;;  %v776_v33 = vmin.f32 %v752_v32, 6.0  ;;  %v1611_v28 = vrot.slane %v842_v14, 2 }
 0x23d   : > { %4277 = vmatprep.mubr.f32.mxu0 %v6236_v26  ;;  %4813 = vmatpush3.bf16.msra.mxu0 %v6198_v45  ;;  %v1247_v45 = vrot.slane %v842_v14, 1  ;;  %v6481_v37 = vsel %vm1595_vm4, %v1606_v47, %v1607_v38  ;;  %v820_v20 = vmul.f32 0.16666667, %v796_v61  ;;  %v799_v7 = vmul.f32 %v775_v0, %v6395_v11 }
 0x23e   : > { %4751 = vmatprep.subr.bf16.mxu1 %v6298_v19  ;;  %4815 = vmatprep.subr.bf16.mxu0 %v6300_v21  ;;  %v778_v36 = vmin.f32 %v754_v10, 6.0  ;;  %v1248_v42 = vrot.slane %v6353_v56, 1  ;;  %v7281_v57 = vrot.slane %v6325_v34, 1  ;;  %v7282_v16 = vrot.slane %v6342_v48, 1 }
 0x23f   : > { %4166 = vmatmul.mubr.f32.gmra.mrb[38].mxu1 %v6239_v27  ;;  %4278 = vmatmul.mubr.f32.gmra.mrb[2].mxu0 %v6245_v30  ;;  %v7283_v52 = vrot.slane %v6325_v34, 2  ;;  %v845_v4 = vsel %vm469_vm1, %v6397_v63, 0.0  ;;  %v798_v41 = vmul.f32 %v774_v25, %v6413_v29  ;;  %v777_v40 = vmin.f32 %v753_v55, 6.0 }
 0x240   : > { %4168 = vmatprep.mubr.f32.mxu1 %v6405_v31  ;;  %4753 = vmatpush3.bf16.msra.mxu1 %v6298_v19  ;;  %v6492_v19 = vsel %vm1231_vm2, %v7282_v16, %v7281_v57  ;;  %v6511_v34 = vsel %vm1231_vm2, %v1247_v45, %v1248_v42  ;;  %v1253_v32 = vrot.slane %v6461_v12, 1  ;;  %v800_v14 = vmul.f32 %v776_v33, %v6421_v49 }
 0x241   : > { %4280 = vmatprep.mubr.f32.mxu0 %v6481_v37  ;;  %4817 = vmatpush3.bf16.msra.mxu0 %v6300_v21  ;;  %v6498_v11 = vsel %vm1595_vm4, %v1607_v38, %v7283_v52  ;;  %v1612_v21 = vrot.slane %v6353_v56, 2  ;;  %v1617_v29 = vrot.slane %v6461_v12, 2  ;;  %v848_v0 = vsel %vm469_vm1, %v6473_v13, 0.0 }
 0x242   : > { %4755 = vmatprep.subr.bf16.mxu1 %v6309_v50  ;;  %4819 = vmatprep.subr.bf16.mxu0 %v6311_v51  ;;  %v6505_v18 = vpop.f32.mrb[30].mxu1  ;;  %v6526_v10 = vsel %vm474_vm3, %v820_v20, 0.0  ;;  %v823_v47 = vmul.f32 0.16666667, %v799_v7  ;;  %v802_v49 = vmul.f32 %v778_v36, %v6425_v54  ;;  %v6531_v25 = vmul.f32 0.16666667, %v797_v39 }
 0x243   : > { %4169 = vmatmul.mubr.f32.gmra.mrb[40].mxu1 %v6492_v19  ;;  %4281 = vmatmul.mubr.f32.gmra.mrb[4].mxu0 %v6498_v11  ;;  %v4123_v38 = vpop.f32.mrb[31].mxu1  ;;  %v6518_v61 = vsel %vm1595_vm4, %v1611_v28, %v1612_v21  ;;  %v6536_v55 = vsel %vm1231_vm2, %v1248_v42, %v1250_v8  ;;  %v6542_v45 = vsel %vm1595_vm4, %v1612_v21, %v1614_v46  ;;  %v1616_v54 = vrot.slane %v845_v4, 2  ;;  %v1867_v36 = vld [vmem:[#allocation11 + $0x1e0] sm:$0xff]  ;;  %v1868_v42 = vld [vmem:[#allocation11 + $0x1e8] sm:$0xff] }
 0x244   : > { %4171 = vmatprep.mubr.f32.mxu1 %v6511_v34  ;;  %4757 = vmatpush3.bf16.msra.mxu1 %v6309_v50  ;;  %7284 = vst [vmem:[#allocation39_spill] sm:$0xff] %v6518_v61  ;;  %v1252_v50 = vrot.slane %v845_v4, 1  ;;  %7285 = vst [vmem:[#allocation40_spill] sm:$0xff] %v6542_v45  ;;  %v801_v39 = vmul.f32 %v777_v40, %v6438_v24  ;;  %v1257_v28 = vrot.slane %v848_v0, 1  ;;  %v1260_v46 = vrot.slane %v6526_v10, 1 }
 0x245   : > { %4283 = vmatprep.mubr.f32.mxu0 %v6518_v61  ;;  %4821 = vmatpush3.bf16.msra.mxu0 %v6311_v51  ;;  %v6545_v51 = vmul.f32 0.16666667, %v798_v41  ;;  %v6554_v20 = vmul.f32 0.16666667, %v800_v14  ;;  %v6559_v7 = vsel %vm1595_vm4, %v1616_v54, %v1617_v29  ;;  %v1621_v24 = vrot.slane %v848_v0, 2 }
 0x246   : > { %4759 = vmatprep.subr.bf16.mxu1 %v6313_v53  ;;  %4823 = vmatprep.subr.bf16.mxu0 %v6319_v2  ;;  %v1130_v33 = vpop.f32.mrb[32].mxu1  ;;  %v6551_v8 = vsel %vm1231_vm2, %v1252_v50, %v1253_v32  ;;  %v1624_v57 = vrot.slane %v6526_v10, 2  ;;  %v6564_v16 = vsel %vm474_vm3, %v823_v47, 0.0  ;;  %v826_v52 = vmul.f32 0.16666667, %v802_v49  ;;  %v1205_v49 = vld [vmem:[#allocation11 + $0x70] sm:$0xff] }
 0x247   : > { %4172 = vmatmul.mubr.f32.gmra.mrb[42].mxu1 %v6536_v55  ;;  %4284 = vmatmul.mubr.f32.gmra.mrb[6].mxu0 %v6542_v45  ;;  %v4126_v35 = vpop.f32.mrb[33].mxu1  ;;  %v1258_v21 = vrot.slane %v6468_v62, 1  ;;  %v6578_v4 = vsel %vm1595_vm4, %v1617_v29, %v1619_v43  ;;  %v1622_v41 = vrot.slane %v6468_v62, 2  ;;  %v1263_v43 = vrot.slane %v6545_v51, 1  ;;  %v1206_v50 = vld [vmem:[#allocation11 + $0x78] sm:$0xff] }
 0x248   : > { %4174 = vmatprep.mubr.f32.mxu1 %v6551_v8  ;;  %4761 = vmatpush3.bf16.msra.mxu1 %v6313_v53  ;;  %v6572_v53 = vsel %vm1231_vm2, %v1253_v32, %v1255_v6  ;;  %v3572_v6 = vld [vmem:[%s7268_s3] ss:$0 sm:$0xff]  ;;  %v6588_v32 = vmul.f32 0.16666667, %v801_v39  ;;  %v4834_v38 = vpack.c.bf16 %v1868_v42, %v1867_v36  ;;  %v1265_v29 = vrot.slane %v6564_v16, 1 }
 0x249   : > { %4286 = vmatprep.mubr.f32.mxu0 %v6559_v7  ;;  %4825 = vmatpush3.bf16.msra.mxu0 %v6319_v2  ;;  %v851_v2 = vsel %vm469_vm1, %v6531_v25, 0.0  ;;  %v6593_v22 = vsel %vm1231_vm2, %v1257_v28, %v1258_v21  ;;  %v6600_v0 = vsel %vm1595_vm4, %v1621_v24, %v1622_v41  ;;  %v1627_v10 = vrot.slane %v6545_v51, 2  ;;  %v1870_v28 = vld [vmem:[#allocation11 + $0x1f8] sm:$0xff] }
 0x24a   : > { %4763 = vmatprep.subr.bf16.mxu1 %v6321_v3  ;;  %4827 = vmatprep.subr.bf16.mxu0 %v6331_v9  ;;  %v1135_v40 = vpop.f32.mrb[34].mxu1  ;;  %v854_v47 = vsel %vm469_vm1, %v6554_v20, 0.0  ;;  %v856_v54 = vsel %vm474_vm3, %v826_v52, 0.0  ;;  %v1262_v39 = vrot.slane %v851_v2, 1  ;;  %v6611_v35 = vadd.f32 %v3572_v6, %v6505_v18 }
 0x24b   : > { %4175 = vmatmul.mubr.f32.gmra.mrb[44].mxu1 %v6572_v53  ;;  %4287 = vmatmul.mubr.f32.gmra.mrb[8].mxu0 %v6578_v4  ;;  %v4129_v14 = vpop.f32.mrb[35].mxu1  ;;  %v6613_v24 = vadd.f32 %v3572_v6, %v1130_v33  ;;  %v1629_v36 = vrot.slane %v6564_v16, 2  ;;  %v6617_v42 = vsel %vm1231_vm2, %v1258_v21, %v1260_v46  ;;  %v6621_v52 = vsel %vm1595_vm4, %v1622_v41, %v1624_v57 }
 0x24c   : > { %4177 = vmatprep.mubr.f32.mxu1 %v6593_v22  ;;  %4765 = vmatpush3.bf16.msra.mxu1 %v6321_v3  ;;  %v1869_v3 = vld [vmem:[#allocation11 + $0x1f0] sm:$0xff]  ;;  %v6627_v18 = vsel %vm1231_vm2, %v1262_v39, %v1263_v43  ;;  %v1267_v33 = vrot.slane %v854_v47, 1  ;;  %v4774_v16 = vpack.c.bf16 %v1206_v50, %v1205_v49  ;;  %v1270_v46 = vrot.slane %v856_v54, 1 }
 0x24d   : > { %4289 = vmatprep.mubr.f32.mxu0 %v6600_v0  ;;  %4829 = vmatpush3.bf16.msra.mxu0 %v6331_v9  ;;  %v1626_v9 = vrot.slane %v851_v2, 2  ;;  %v1631_v21 = vrot.slane %v854_v47, 2  ;;  %v4838_v41 = vpack.c.bf16 %v1870_v28, %v1869_v3  ;;  %v1268_v2 = vrot.slane %v6588_v32, 1  ;;  %v2113_v3 = vld [vmem:[#allocation11 + $0x200] sm:$0xff]  ;;  %v2114_v28 = vld [vmem:[#allocation11 + $0x208] sm:$0xff] }
 0x24e   : > { %4767 = vmatprep.subr.bf16.mxu1 %v6334_v15  ;;  %4831 = vmatprep.subr.bf16.mxu0 %v6336_v23  ;;  %v1139_v14 = vadd.f32 3.0, %v6611_v35  ;;  %v1140_v49 = vadd.f32 3.0, %v6613_v24  ;;  %v6643_v50 = vadd.f32 %v3572_v6, %v1135_v40  ;;  %v6646_v47 = vsel %vm1231_vm2, %v1263_v43, %v1265_v29  ;;  %v3042_v40 = vld [vmem:[#allocation11 + $0x400] sm:$0xff]  ;;  %v3043_v43 = vld [vmem:[#allocation11 + $0x408] sm:$0xff] }
 0x24f   : > { %4178 = vmatmul.mubr.f32.gmra.mrb[46].mxu1 %v6617_v42  ;;  %4290 = vmatmul.mubr.f32.gmra.mrb[10].mxu0 %v6621_v52  ;;  %v6632_v57 = vsel %vm1595_vm4, %v1626_v9, %v1627_v10  ;;  %v1632_v39 = vrot.slane %v6588_v32, 2  ;;  %v6656_v6 = vsel %vm1231_vm2, %v1267_v33, %v1268_v2  ;;  %v6667_v33 = vsel %vm1231_vm2, %v1268_v2, %v1270_v46  ;;  %v3044_v46 = vld [vmem:[#allocation11 + $0x410] sm:$0xff]  ;;  %v3045_v2 = vld [vmem:[#allocation11 + $0x418] sm:$0xff] }
 0x250   : > { %4180 = vmatprep.mubr.f32.mxu1 %v6627_v18  ;;  %4769 = vmatpush3.bf16.msra.mxu1 %v6334_v15  ;;  %v1634_v15 = vrot.slane %v856_v54, 2  ;;  %v1142_v54 = vmax.f32 %v1139_v14, 0.0  ;;  %v1141_v9 = vadd.f32 3.0, %v6643_v50  ;;  %v7287_v14 = vld [vmem:[#allocation32_spill] sm:$0xff]  ;;  %v7294_v61 = vmov 0 }
 0x251   : > { %4292 = vmatprep.mubr.f32.mxu0 %v6632_v57  ;;  %4833 = vmatpush3.bf16.msra.mxu0 %v6336_v23  ;;  %v6650_v23 = vsel %vm1595_vm4, %v1627_v10, %v1629_v36  ;;  %v6661_v29 = vsel %vm1595_vm4, %v1631_v21, %v1632_v39  ;;  %v4842_v10 = vpack.c.bf16 %v2114_v28, %v2113_v3  ;;  %v1143_v36 = vmax.f32 %v1140_v49, 0.0  ;;  %v2116_v21 = vld [vmem:[#allocation11 + $0x218] sm:$0xff]  ;;  %v2117_v28 = vld [vmem:[#allocation11 + $0x220] sm:$0xff] }
 0x252   : > { %4771 = vmatprep.subr.bf16.mxu1 %v6344_v1  ;;  %4835 = vmatprep.subr.bf16.mxu0 %v4834_v38  ;;  %v6670_v45 = vsel %vm1595_vm4, %v1632_v39, %v1634_v15  ;;  %v1145_v49 = vmin.f32 %v1142_v54, 6.0  ;;  %v1144_v39 = vmax.f32 %v1141_v9, 0.0  ;;  %v6690_v3 = vpack.c.bf16 %v3045_v2, %v3044_v46  ;;  %v3047_v54 = vld [vmem:[#allocation11 + $0x428] sm:$0xff]  ;;  %v7292_v9 = vld [vmem:[#allocation37_spill] sm:$0xff] }
 0x253   : > { %4181 = vmatmul.mubr.f32.gmra.mrb[48].mxu1 %v6646_v47  ;;  %4293 = vmatmul.mubr.f32.gmra.mrb[12].mxu0 %v6650_v23  ;;  %v1146_v15 = vmin.f32 %v1143_v36, 6.0  ;;  %v1028_v36 = vstv %s6681_s29  ;;  %s3371_s29 = scalar_lea.sflag [#allocation5], %s6067_s22 }
 0x254   : > { %4183 = vmatprep.mubr.f32.mxu1 %v6656_v6  ;;  %4773 = vmatpush3.bf16.msra.mxu1 %v6344_v1  ;;  %v6672_v1 = vpack.c.bf16 %v3043_v43, %v3042_v40  ;;  %7290 = vst [vmem:[#allocation32_spill] sm:$0xff] %v6690_v3  ;;  %v7291_v40 = vld [vmem:[#allocation31_spill] sm:$0xff]  ;;  %v1147_v46 = vmin.f32 %v1144_v39, 6.0  ;;  %vm6707_vm8 = vcmp.eq.s32.totalorder %v1028_v36, 1  ;;  %v3051_v36 = vld [vmem:[#allocation11 + $0x448] sm:$0xff] }
 0x255   : > { %4295 = vmatprep.mubr.f32.mxu0 %v6661_v29  ;;  %4837 = vmatpush3.bf16.msra.mxu0 %v4834_v38  ;;  %v2115_v38 = vld [vmem:[#allocation11 + $0x210] sm:$0xff]  ;;  %v3046_v43 = vld [vmem:[#allocation11 + $0x420] sm:$0xff]  ;;  %v7295_v61 = vsel %vm6707_vm8, 4294967295, %v7294_v61  ;;  %vm6728_vm9 = vmand %vm469_vm1, %vm6707_vm8 }
 0x256   : > { %4775 = vmatprep.subr.bf16.mxu1 %v4774_v16  ;;  %4839 = vmatprep.subr.bf16.mxu0 %v4838_v41  ;;  %7286 = vst [vmem:[#allocation41_spill] sm:$0xff] %v6672_v1  ;;  %7296 = vst [vmem:[#allocation34_spill] sm:$0xff] %v7295_v61 }
 0x257   : > { %4184 = vmatmul.mubr.f32.gmra.mrb[50].mxu1 %v6667_v33  ;;  %4296 = vmatmul.mubr.f32.gmra.mrb[14].mxu0 %v6670_v45  ;;  %vm1032_vm10 = vmand %vm474_vm3, %vm6707_vm8 }
 0x258   : > { %4777 = vmatpush3.bf16.msra.mxu1 %v4774_v16  ;;  %4218 = vmatprep.mubr.msk.f32.mxu1 %vm6383_vm6, %v6375_v44  ;;  %v4846_v16 = vpack.c.bf16 %v2116_v21, %v2115_v38  ;;  %v1148_v38 = vmul.f32 %v1145_v49, %v6611_v35  ;;  %v1149_v21 = vmul.f32 %v1146_v15, %v6613_v24  ;;  %v2120_v44 = vld [vmem:[#allocation11 + $0x238] sm:$0xff]  ;;  %v3048_v35 = vld [vmem:[#allocation11 + $0x430] sm:$0xff] }
 0x259   : > { %4841 = vmatpush3.bf16.msra.mxu0 %v4838_v41  ;;  %4330 = vmatprep.mubr.msk.f32.mxu0 %vm469_vm1, %v7287_v14  ;;  %v2118_v41 = vld [vmem:[#allocation11 + $0x228] sm:$0xff]  ;;  %v3049_v24 = vld [vmem:[#allocation11 + $0x438] sm:$0xff]  ;;  %v1150_v15 = vmul.f32 %v1147_v46, %v6643_v50  ;;  %v2121_v50 = vld [vmem:[#allocation11 + $0x240] sm:$0xff] }
 0x25a   : > { %4843 = vmatprep.subr.bf16.mxu0 %v4842_v10  ;;  %5002 = vmatprep.subr.bf16.mxu1 %v6672_v1  ;;  %v4850_v2 = vpack.c.bf16 %v2118_v41, %v2117_v28  ;;  %v6720_v49 = vmul.f32 0.16666667, %v1149_v21  ;;  %v7299_v28 = vmov 0  ;;  %v7302_v41 = vld [vmem:[#allocation33_spill] sm:$0xff] }
 0x25b   : > { %4219 = vmatmul.mubr.msk.f32.vlgmr.msra.gmra.mrb[36].mxu1 %vm888_vm5, %v7288_v59  ;;  %v2119_v59 = vld [vmem:[#allocation11 + $0x230] sm:$0xff]  ;;  %v7300_v28 = vsel %vm6728_vm9, 4294967295, %v7299_v28  ;;  %v1153_v46 = vmul.f32 0.16666667, %v1150_v15  ;;  %v2124_v15 = vld [vmem:[#allocation11 + $0x258] sm:$0xff] }
 0x25c   : > { %4331 = vmatmul.mubr.f32.vlgmr.msra.gmra.mrb[0].mxu0 %v7291_v40  ;;  %4221 = vmatprep.mubr.msk.f32.mxu1 %vm469_vm1, %v7287_v14  ;;  %v6705_v14 = vpack.c.bf16 %v3047_v54, %v3046_v43  ;;  %7298 = vst [vmem:[#allocation37_spill] sm:$0xff] %v6720_v49  ;;  %v4854_v39 = vpack.c.bf16 %v2120_v44, %v2119_v59  ;;  %7301 = vst [vmem:[#allocation42_spill] sm:$0xff] %v7300_v28  ;;  %v2122_v43 = vld [vmem:[#allocation11 + $0x248] sm:$0xff]  ;;  %v3050_v54 = vld [vmem:[#allocation11 + $0x440] sm:$0xff]  ;;  %v6752_v21 = vsel %vm6707_vm8, %v6720_v49, 0.0 }
 0x25d   : > { %4333 = vmatprep.mubr.msk.f32.mxu0 %vm469_vm1, %v7292_v9  ;;  %4845 = vmatpush3.bf16.msra.mxu0 %v4842_v10  ;;  %v6718_v10 = vmul.f32 0.16666667, %v1148_v38  ;;  %v7303_v59 = vld [vmem:[#allocation36_spill] sm:$0xff]  ;;  %v2125_v28 = vld [vmem:[#allocation11 + $0x260] sm:$0xff]  ;;  %v7313_v60 = vld [vmem:[#allocation41_spill] sm:$0xff] }
 0x25e   : > { %5010 = vmatpush3.bf16.msra.mxu1 %v6672_v1  ;;  %4847 = vmatprep.subr.bf16.mxu0 %v4846_v16  ;;  %7293 = vst [vmem:[#allocation38_spill] sm:$0xff] %v6705_v14  ;;  %v732_v44 = vadd.f32 3.0, %v7303_v59 }
 0x25f   : > { %4222 = vmatmul.mubr.f32.gmra.mrb[38].mxu1 %v7291_v40  ;;  %5003 = vmatprep.subr.bf16.mxu1 %v6690_v3  ;;  %7297 = vst [vmem:[#allocation31_spill] sm:$0xff] %v6718_v10  ;;  %v6735_v40 = vpack.c.bf16 %v3049_v24, %v3048_v35  ;;  %v6747_v38 = vsel %vm6728_vm9, %v6718_v10, 0.0  ;;  %v4858_v35 = vpack.c.bf16 %v2122_v43, %v2121_v50  ;;  %v3052_v50 = vld [vmem:[#allocation11 + $0x450] sm:$0xff]  ;;  %v3053_v43 = vld [vmem:[#allocation11 + $0x458] sm:$0xff]  ;;  %v2126_v10 = vld [vmem:[#allocation11 + $0x268] sm:$0xff] }
 0x260   : > { %4334 = vmatmul.mubr.f32.gmra.mrb[2].mxu0 %v6342_v48  ;;  %4224 = vmatprep.mubr.msk.f32.mxu1 %vm469_vm1, %v7292_v9  ;;  %v6762_v24 = vpack.c.bf16 %v3051_v36, %v3050_v54  ;;  %v6773_v54 = vsel %vm1032_vm10, %v1153_v46, 0.0  ;;  %v756_v36 = vmax.f32 %v732_v44, 0.0  ;;  %v6778_v49 = vpack.c.bf16 %v3053_v43, %v3052_v50  ;;  %v3055_v46 = vld [vmem:[#allocation11 + $0x468] sm:$0xff] }
 0x261   : > { %4336 = vmatprep.mubr.msk.f32.mxu0 %vm469_vm1, %v6359_v58  ;;  %4849 = vmatpush3.bf16.msra.mxu0 %v4846_v16  ;;  %v731_v16 = vadd.f32 3.0, %v7302_v41  ;;  %v2789_v44 = vrot.slane %v6773_v54, 1 }
 0x262   : > { %5011 = vmatpush3.bf16.msra.mxu1 %v6690_v3  ;;  %4851 = vmatprep.subr.bf16.mxu0 %v4850_v2  ;;  %v2123_v3 = vld [vmem:[#allocation11 + $0x250] sm:$0xff] }
 0x263   : > { %4225 = vmatmul.mubr.f32.gmra.mrb[40].mxu1 %v6342_v48  ;;  %5004 = vmatprep.subr.bf16.mxu1 %v6705_v14  ;;  %v4862_v1 = vpack.c.bf16 %v2124_v15, %v2123_v3  ;;  %v4866_v15 = vpack.c.bf16 %v2126_v10, %v2125_v28 }
 0x264   : > { %4337 = vmatmul.mubr.f32.gmra.mrb[4].mxu0 %v6353_v56  ;;  %4227 = vmatprep.mubr.msk.f32.mxu1 %vm469_vm1, %v6359_v58 }
 0x265   : > { %4339 = vmatprep.mubr.msk.f32.mxu0 %vm469_vm1, %v6397_v63  ;;  %4853 = vmatpush3.bf16.msra.mxu0 %v4850_v2  ;;  %v755_v2 = vmax.f32 %v731_v16, 0.0  ;;  %v2787_v16 = vrot.slane %v6752_v21, 1 }
 0x266   : > { %5012 = vmatpush3.bf16.msra.mxu1 %v6705_v14  ;;  %4855 = vmatprep.subr.bf16.mxu0 %v4854_v39  ;;  %v2786_v14 = vrot.slane %v6747_v38, 1 }
 0x267   : > { %4228 = vmatmul.mubr.f32.gmra.mrb[42].mxu1 %v6353_v56  ;;  %5005 = vmatprep.subr.bf16.mxu1 %v6735_v40  ;;  %v779_v61 = vmin.f32 %v755_v2, 6.0  ;;  %v780_v2 = vmin.f32 %v756_v36, 6.0  ;;  %v3057_v36 = vld [vmem:[#allocation11 + $0x478] sm:$0xff]  ;;  %v6802_v10 = vsel %vm1231_vm2, %v2787_v16, %v2789_v44  ;;  %v2347_v44 = vld [vmem:[#allocation11 + $0x280] sm:$0xff] }
 0x268   : > { %4340 = vmatmul.mubr.f32.gmra.mrb[6].mxu0 %v6461_v12  ;;  %4230 = vmatprep.mubr.msk.f32.mxu1 %vm469_vm1, %v6397_v63  ;;  %v6786_v3 = vsel %vm1231_vm2, %v2786_v14, %v2787_v16  ;;  %v2127_v14 = vld [vmem:[#allocation11 + $0x270] sm:$0xff]  ;;  %7305 = vst [vmem:[#allocation36_spill] sm:$0xff] %v6802_v10  ;;  %v2348_v10 = vld [vmem:[#allocation11 + $0x288] sm:$0xff] }
 0x269   : > { %4342 = vmatprep.mubr.msk.f32.mxu0 %vm469_vm1, %v6473_v13  ;;  %4857 = vmatpush3.bf16.msra.mxu0 %v4854_v39  ;;  %v3054_v39 = vld [vmem:[#allocation11 + $0x460] sm:$0xff]  ;;  %7304 = vst [vmem:[#allocation33_spill] sm:$0xff] %v6786_v3  ;;  %v803_v50 = vmul.f32 %v779_v61, %v7302_v41  ;;  %v2128_v3 = vld [vmem:[#allocation11 + $0x278] sm:$0xff]  ;;  %v804_v41 = vmul.f32 %v780_v2, %v7303_v59  ;;  %v2349_v2 = vld [vmem:[#allocation11 + $0x290] sm:$0xff] }
 0x26a   : > { %5013 = vmatpush3.bf16.msra.mxu1 %v6735_v40  ;;  %4859 = vmatprep.subr.bf16.mxu0 %v4858_v35  ;;  %v6795_v43 = vpack.c.bf16 %v3055_v46, %v3054_v39  ;;  %v7306_v61 = vld [vmem:[#allocation35_spill] sm:$0xff]  ;;  %v4870_v39 = vpack.c.bf16 %v2128_v3, %v2127_v14  ;;  %v4874_v3 = vpack.c.bf16 %v2348_v10, %v2347_v44 }
 0x26b   : > { %4231 = vmatmul.mubr.f32.gmra.mrb[44].mxu1 %v6461_v12  ;;  %5006 = vmatprep.subr.bf16.mxu1 %v6762_v24  ;;  %v733_v28 = vadd.f32 3.0, %v7306_v61  ;;  %v6810_v46 = vmul.f32 0.16666667, %v803_v50  ;;  %v6823_v59 = vmul.f32 0.16666667, %v804_v41  ;;  %v2350_v50 = vld [vmem:[#allocation11 + $0x298] sm:$0xff] }
 0x26c   : > { %4343 = vmatmul.mubr.f32.gmra.mrb[8].mxu0 %v6468_v62  ;;  %4233 = vmatprep.mubr.msk.f32.mxu1 %vm469_vm1, %v6473_v13  ;;  %v2354_v41 = vld [vmem:[#allocation11 + $0x2b8] sm:$0xff]  ;;  %v2355_v44 = vld [vmem:[#allocation11 + $0x2c0] sm:$0xff] }
 0x26d   : > { %4345 = vmatprep.mubr.msk.f32.mxu0 %vm469_vm1, %v6531_v25  ;;  %4861 = vmatpush3.bf16.msra.mxu0 %v4858_v35  ;;  %v3056_v35 = vld [vmem:[#allocation11 + $0x470] sm:$0xff] }
 0x26e   : > { %5014 = vmatpush3.bf16.msra.mxu1 %v6762_v24  ;;  %4863 = vmatprep.subr.bf16.mxu0 %v4862_v1  ;;  %v6814_v16 = vpack.c.bf16 %v3057_v36, %v3056_v35  ;;  %v2351_v35 = vld [vmem:[#allocation11 + $0x2a0] sm:$0xff]  ;;  %v2352_v36 = vld [vmem:[#allocation11 + $0x2a8] sm:$0xff] }
 0x26f   : > { %4234 = vmatmul.mubr.f32.gmra.mrb[46].mxu1 %v6468_v62  ;;  %5007 = vmatprep.subr.bf16.mxu1 %v6778_v49 }
 0x270   : > { %4346 = vmatmul.mubr.f32.gmra.mrb[10].mxu0 %v6545_v51  ;;  %4236 = vmatprep.mubr.msk.f32.mxu1 %vm469_vm1, %v6531_v25 }
 0x271   : > { %4348 = vmatprep.mubr.msk.f32.mxu0 %vm469_vm1, %v6554_v20  ;;  %4865 = vmatpush3.bf16.msra.mxu0 %v4862_v1  ;;  %v757_v1 = vmax.f32 %v733_v28, 0.0  ;;  %v4882_v28 = vpack.c.bf16 %v2352_v36, %v2351_v35  ;;  %v3021_v35 = vrot.slane %v6752_v21, 2 }
 0x272   : > { %5015 = vmatpush3.bf16.msra.mxu1 %v6778_v49  ;;  %4867 = vmatprep.subr.bf16.mxu0 %v4866_v15 }
 0x273   : > { %4237 = vmatmul.mubr.f32.gmra.mrb[48].mxu1 %v6545_v51  ;;  %5008 = vmatprep.subr.bf16.mxu1 %v6795_v43  ;;  %v781_v14 = vmin.f32 %v757_v1, 6.0  ;;  %v2356_v1 = vld [vmem:[#allocation11 + $0x2c8] sm:$0xff] }
 0x274   : > { %4349 = vmatmul.mubr.f32.gmra.mrb[12].mxu0 %v6588_v32  ;;  %4239 = vmatprep.mubr.msk.f32.mxu1 %vm469_vm1, %v6554_v20 }
 0x275   : > { %4351 = vmatprep.mubr.msk.f32.mxu0 %vm469_vm1, %v6810_v46  ;;  %4869 = vmatpush3.bf16.msra.mxu0 %v4866_v15  ;;  %v4878_v15 = vpack.c.bf16 %v2350_v50, %v2349_v2  ;;  %v805_v10 = vmul.f32 %v781_v14, %v7306_v61  ;;  %v857_v61 = vsel %vm469_vm1, %v6810_v46, 0.0  ;;  %v2326_v2 = vrot.slane %v6823_v59, 2 }
 0x276   : > { %5016 = vmatpush3.bf16.msra.mxu1 %v6795_v43  ;;  %4871 = vmatprep.subr.bf16.mxu0 %v4870_v39  ;;  %v2325_v50 = vrot.slane %v857_v61, 2  ;;  %v4890_v14 = vpack.c.bf16 %v2356_v1, %v2355_v44  ;;  %v2360_v44 = vld [vmem:[#allocation11 + $0x2e8] sm:$0xff]  ;;  %v2092_v1 = vrot.slane %v6823_v59, 1 }
 0x277   : > { %4240 = vmatmul.mubr.f32.gmra.mrb[50].mxu1 %v6588_v32  ;;  %5009 = vmatprep.subr.bf16.mxu1 %v6814_v16 }
 0x278   : > { %4352 = vmatmul.mubr.f32.gmra.mrb[14].mxu0 %v6823_v59  ;;  %4616 = vmatprep.mubr.f32.mxu1 %v6559_v7 }
 0x279   : > { %4873 = vmatpush3.bf16.msra.mxu0 %v4870_v39  ;;  %4386 = vmatprep.mubr.f32.mxu0 %v6226_v17  ;;  %v2353_v17 = vld [vmem:[#allocation11 + $0x2b0] sm:$0xff]  ;;  %v829_v39 = vmul.f32 0.16666667, %v805_v10  ;;  %v2358_v10 = vld [vmem:[#allocation11 + $0x2d8] sm:$0xff] }
 0x27a   : > { %5017 = vmatpush3.bf16.msra.mxu1 %v6814_v16  ;;  %4875 = vmatprep.subr.bf16.mxu0 %v4874_v3 }
 0x27c   : > { %4387 = vmatmul.mubr.f32.vlgmr.msra.gmra.mrb[0].mxu0 %v6239_v27  ;;  %v4886_v27 = vpack.c.bf16 %v2354_v41, %v2353_v17  ;;  %v3023_v17 = vrot.slane %v6773_v54, 2 }
 0x27d   : > { %4617 = vmatmul.mubr.f32.vlgmr.msra.gmra.mrb[52].mxu1 %v6578_v4  ;;  %4389 = vmatprep.mubr.f32.mxu0 %v6405_v31 }
 0x27e   : > { %4877 = vmatpush3.bf16.msra.mxu0 %v4874_v3  ;;  %4619 = vmatprep.mubr.f32.mxu1 %v6600_v0  ;;  %v859_v3 = vsel %vm474_vm3, %v829_v39, 0.0  ;;  %v2359_v39 = vld [vmem:[#allocation11 + $0x2e0] sm:$0xff] }
 0x27f   : > { %4879 = vmatprep.subr.bf16.mxu0 %v4878_v15  ;;  %v2328_v36 = vrot.slane %v859_v3, 2  ;;  %v4898_v54 = vpack.c.bf16 %v2360_v44, %v2359_v39  ;;  %v2554_v39 = vld [vmem:[#allocation11 + $0x320] sm:$0xff]  ;;  %v2555_v44 = vld [vmem:[#allocation11 + $0x328] sm:$0xff] }
 0x280   : > { %4390 = vmatmul.mubr.f32.gmra.mrb[2].mxu0 %v6492_v19 }
 0x281   : > { %4620 = vmatmul.mubr.f32.gmra.mrb[54].mxu1 %v6621_v52  ;;  %4392 = vmatprep.mubr.f32.mxu0 %v6511_v34  ;;  %v6864_v41 = vsel %vm1595_vm4, %v2326_v2, %v2328_v36  ;;  %v2094_v36 = vrot.slane %v859_v3, 1  ;;  %v2553_v3 = vld [vmem:[#allocation11 + $0x318] sm:$0xff] }
 0x282   : > { %4881 = vmatpush3.bf16.msra.mxu0 %v4878_v15  ;;  %4622 = vmatprep.mubr.f32.mxu1 %v6632_v57  ;;  %v3020_v15 = vrot.slane %v6747_v38, 2  ;;  %v4894_v38 = vpack.c.bf16 %v2358_v10, %v2357_v5  ;;  %v2551_v10 = vld [vmem:[#allocation11 + $0x308] sm:$0xff] }
 0x283   : > { %4883 = vmatprep.subr.bf16.mxu0 %v4882_v28 }
 0x284   : > { %4393 = vmatmul.mubr.f32.gmra.mrb[4].mxu0 %v6536_v55  ;;  %v3022_v21 = vsel %vm1595_vm4, %v3020_v15, %v3021_v35  ;;  %v2362_v15 = vld [vmem:[#allocation11 + $0x2f8] sm:$0xff] }
 0x285   : > { %4623 = vmatmul.mubr.f32.gmra.mrb[56].mxu1 %v6650_v23  ;;  %4395 = vmatprep.mubr.f32.mxu0 %v6551_v8 }
 0x286   : > { %4885 = vmatpush3.bf16.msra.mxu0 %v4882_v28  ;;  %4625 = vmatprep.mubr.f32.mxu1 %v6661_v29  ;;  %v6857_v28 = vsel %vm1595_vm4, %v2325_v50, %v2326_v2  ;;  %v2361_v50 = vld [vmem:[#allocation11 + $0x2f0] sm:$0xff]  ;;  %v2091_v2 = vrot.slane %v857_v61, 1 }
 0x287   : > { %4887 = vmatprep.subr.bf16.mxu0 %v4886_v27  ;;  %v4902_v5 = vpack.c.bf16 %v2362_v15, %v2361_v50  ;;  %v2552_v61 = vld [vmem:[#allocation11 + $0x310] sm:$0xff]  ;;  %v7307_v50 = vld [vmem:[#allocation39_spill] sm:$0xff] }
 0x288   : > { %4396 = vmatmul.mubr.f32.gmra.mrb[6].mxu0 %v6572_v53  ;;  %v2558_v15 = vld [vmem:[#allocation11 + $0x340] sm:$0xff] }
 0x289   : > { %4626 = vmatmul.mubr.f32.gmra.mrb[58].mxu1 %v6670_v45  ;;  %4398 = vmatprep.mubr.f32.mxu0 %v6593_v22 }
 0x28a   : > { %4889 = vmatpush3.bf16.msra.mxu0 %v4886_v27  ;;  %4628 = vmatprep.mubr.f32.mxu1 %v6857_v28  ;;  %v3024_v27 = vsel %vm1595_vm4, %v3021_v35, %v3023_v17  ;;  %v2550_v35 = vld [vmem:[#allocation11 + $0x300] sm:$0xff]  ;;  %v6878_v17 = vsel %vm1231_vm2, %v2092_v1, %v2094_v36  ;;  %v7308_v36 = vld [vmem:[#allocation40_spill] sm:$0xff] }
 0x28b   : > { %4891 = vmatprep.subr.bf16.mxu0 %v4890_v14 }
 0x28c   : > { %4399 = vmatmul.mubr.f32.gmra.mrb[8].mxu0 %v6617_v42 }
 0x28d   : > { %4629 = vmatmul.mubr.f32.gmra.mrb[60].mxu1 %v6864_v41  ;;  %4401 = vmatprep.mubr.f32.mxu0 %v6627_v18 }
 0x28e   : > { %4893 = vmatpush3.bf16.msra.mxu0 %v4890_v14  ;;  %4631 = vmatprep.mubr.f32.mxu1 %v3022_v21  ;;  %v6874_v14 = vsel %vm1231_vm2, %v2091_v2, %v2092_v1  ;;  %v4906_v21 = vpack.c.bf16 %v2551_v10, %v2550_v35  ;;  %v2557_v1 = vld [vmem:[#allocation11 + $0x338] sm:$0xff]  ;;  %v2559_v2 = vld [vmem:[#allocation11 + $0x348] sm:$0xff] }
 0x28f   : > { %4895 = vmatprep.subr.bf16.mxu0 %v4894_v38  ;;  %v2561_v35 = vld [vmem:[#allocation11 + $0x358] sm:$0xff] }
 0x290   : > { %4402 = vmatmul.mubr.f32.gmra.mrb[10].mxu0 %v6646_v47 }
 0x291   : > { %4404 = vmatprep.mubr.f32.mxu0 %v6656_v6  ;;  %4632 = vmatmul.mubr.f32.gmra.mrb[62].mxu1 %v3024_v27  ;;  %v4914_v27 = vpack.c.bf16 %v2555_v44, %v2554_v39  ;;  %v2809_v39 = vld [vmem:[#allocation11 + $0x388] sm:$0xff]  ;;  %v2811_v44 = vld [vmem:[#allocation11 + $0x398] sm:$0xff] }
 0x292   : > { %4897 = vmatpush3.bf16.msra.mxu0 %v4894_v38  ;;  %v4910_v38 = vpack.c.bf16 %v2553_v3, %v2552_v61  ;;  %v2563_v61 = vld [vmem:[#allocation11 + $0x368] sm:$0xff]  ;;  %v2564_v3 = vld [vmem:[#allocation11 + $0x370] sm:$0xff] }
 0x293   : > { %4899 = vmatprep.subr.bf16.mxu0 %v4898_v54 }
 0x294   : > { %4405 = vmatmul.mubr.f32.gmra.mrb[12].mxu0 %v6667_v33 }
 0x295   : > { %4407 = vmatprep.mubr.f32.mxu0 %v6874_v14 }
 0x296   : > { %4901 = vmatpush3.bf16.msra.mxu0 %v4898_v54  ;;  %v2556_v54 = vld [vmem:[#allocation11 + $0x330] sm:$0xff] }
 0x297   : > { %4903 = vmatprep.subr.bf16.mxu0 %v4902_v5 }
 0x298   : > { %4408 = vmatmul.mubr.f32.gmra.mrb[14].mxu0 %v6878_v17 }
 0x299   : > { %4442 = vmatprep.mubr.f32.mxu0 %v6236_v26  ;;  %v4918_v26 = vpack.c.bf16 %v2557_v1, %v2556_v54  ;;  %v2816_v54 = vld [vmem:[#allocation11 + $0x3c0] sm:$0xff]  ;;  %v2818_v1 = vld [vmem:[#allocation11 + $0x3d0] sm:$0xff] }
 0x29a   : > { %4905 = vmatpush3.bf16.msra.mxu0 %v4902_v5  ;;  %v2560_v5 = vld [vmem:[#allocation11 + $0x350] sm:$0xff] }
 0x29b   : > { %4907 = vmatprep.subr.bf16.mxu0 %v4906_v21  ;;  %v4926_v10 = vpack.c.bf16 %v2561_v35, %v2560_v5 }
 0x29d   : > { %4443 = vmatmul.mubr.f32.vlgmr.msra.gmra.mrb[0].mxu0 %v6245_v30  ;;  %v4922_v30 = vpack.c.bf16 %v2559_v2, %v2558_v15  ;;  %v2822_v15 = vld [vmem:[#allocation11 + $0x3f0] sm:$0xff] }
 0x29e   : > { %4445 = vmatprep.mubr.f32.mxu0 %v6481_v37  ;;  %4909 = vmatpush3.bf16.msra.mxu0 %v4906_v21  ;;  %v2562_v21 = vld [vmem:[#allocation11 + $0x360] sm:$0xff] }
 0x29f   : > { %4911 = vmatprep.subr.bf16.mxu0 %v4910_v38 }
 0x2a1   : > { %4446 = vmatmul.mubr.f32.gmra.mrb[2].mxu0 %v6498_v11 }
 0x2a2   : > { %4448 = vmatprep.mubr.f32.mxu0 %v7307_v50  ;;  %4913 = vmatpush3.bf16.msra.mxu0 %v4910_v38  ;;  %v2565_v38 = vld [vmem:[#allocation11 + $0x378] sm:$0xff] }
 0x2a3   : > { %4915 = vmatprep.subr.bf16.mxu0 %v4914_v27 }
 0x2a5   : > { %4449 = vmatmul.mubr.f32.gmra.mrb[4].mxu0 %v7308_v36 }
 0x2a6   : > { %4451 = vmatprep.mubr.f32.mxu0 %v6559_v7  ;;  %4917 = vmatpush3.bf16.msra.mxu0 %v4914_v27  ;;  %v4930_v7 = vpack.c.bf16 %v2563_v61, %v2562_v21  ;;  %v2813_v27 = vld [vmem:[#allocation11 + $0x3a8] sm:$0xff] }
 0x2a7   : > { %4919 = vmatprep.subr.bf16.mxu0 %v4918_v26 }
 0x2a9   : > { %4452 = vmatmul.mubr.f32.gmra.mrb[6].mxu0 %v6578_v4  ;;  %v4934_v4 = vpack.c.bf16 %v2565_v38, %v2564_v3 }
 0x2aa   : > { %4454 = vmatprep.mubr.f32.mxu0 %v6600_v0  ;;  %4921 = vmatpush3.bf16.msra.mxu0 %v4918_v26  ;;  %v2808_v0 = vld [vmem:[#allocation11 + $0x380] sm:$0xff] }
 0x2ab   : > { %4923 = vmatprep.subr.bf16.mxu0 %v4922_v30  ;;  %v2820_v26 = vld [vmem:[#allocation11 + $0x3e0] sm:$0xff] }
 0x2ad   : > { %4455 = vmatmul.mubr.f32.gmra.mrb[8].mxu0 %v6621_v52  ;;  %v4938_v52 = vpack.c.bf16 %v2809_v39, %v2808_v0  ;;  %v6994_v0 = vld [vmem:[%s7318_s21] ss:$0 sm:$0xff] }
 0x2ae   : > { %4457 = vmatprep.mubr.f32.mxu0 %v6632_v57  ;;  %4925 = vmatpush3.bf16.msra.mxu0 %v4922_v30  ;;  %v2810_v57 = vld [vmem:[#allocation11 + $0x390] sm:$0xff] }
 0x2af   : > { %4927 = vmatprep.subr.bf16.mxu0 %v4926_v10 }
 0x2b1   : > { %4458 = vmatmul.mubr.f32.gmra.mrb[10].mxu0 %v6650_v23  ;;  %v4942_v23 = vpack.c.bf16 %v2811_v44, %v2810_v57 }
 0x2b2   : > { %4460 = vmatprep.mubr.f32.mxu0 %v6661_v29  ;;  %4929 = vmatpush3.bf16.msra.mxu0 %v4926_v10  ;;  %v2812_v29 = vld [vmem:[#allocation11 + $0x3a0] sm:$0xff] }
 0x2b3   : > { %4931 = vmatprep.subr.bf16.mxu0 %v4930_v7 }
 0x2b5   : > { %4461 = vmatmul.mubr.f32.gmra.mrb[12].mxu0 %v6670_v45  ;;  %v4946_v45 = vpack.c.bf16 %v2813_v27, %v2812_v29 }
 0x2b6   : > { %4463 = vmatprep.mubr.f32.mxu0 %v6857_v28  ;;  %4933 = vmatpush3.bf16.msra.mxu0 %v4930_v7  ;;  %v2814_v28 = vld [vmem:[#allocation11 + $0x3b0] sm:$0xff] }
 0x2b7   : > { %4935 = vmatprep.subr.bf16.mxu0 %v4934_v4 }
 0x2b9   : > { %4464 = vmatmul.mubr.f32.gmra.mrb[14].mxu0 %v6864_v41  ;;  %v2815_v41 = vld [vmem:[#allocation11 + $0x3b8] sm:$0xff] }
 0x2ba   : > { %4937 = vmatpush3.bf16.msra.mxu0 %v4934_v4  ;;  %4498 = vmatprep.mubr.msk.f32.mxu0 %vm469_vm1, %v7292_v9  ;;  %v4950_v9 = vpack.c.bf16 %v2815_v41, %v2814_v28 }
 0x2bb   : > { %4939 = vmatprep.subr.bf16.mxu0 %v4938_v52 }
 0x2bd   : > { %4499 = vmatmul.mubr.f32.vlgmr.msra.gmra.mrb[0].mxu0 %v6342_v48  ;;  %v2817_v48 = vld [vmem:[#allocation11 + $0x3c8] sm:$0xff] }
 0x2be   : > { %4501 = vmatprep.mubr.msk.f32.mxu0 %vm469_vm1, %v6359_v58  ;;  %4941 = vmatpush3.bf16.msra.mxu0 %v4938_v52  ;;  %v4954_v58 = vpack.c.bf16 %v2817_v48, %v2816_v54 }
 0x2bf   : > { %4943 = vmatprep.subr.bf16.mxu0 %v4942_v23 }
 0x2c1   : > { %4502 = vmatmul.mubr.f32.gmra.mrb[2].mxu0 %v6353_v56  ;;  %v2819_v56 = vld [vmem:[#allocation11 + $0x3d8] sm:$0xff] }
 0x2c2   : > { %4504 = vmatprep.mubr.msk.f32.mxu0 %vm469_vm1, %v6397_v63  ;;  %4945 = vmatpush3.bf16.msra.mxu0 %v4942_v23  ;;  %v4958_v63 = vpack.c.bf16 %v2819_v56, %v2818_v1 }
 0x2c3   : > { %4947 = vmatprep.subr.bf16.mxu0 %v4946_v45 }
 0x2c5   : > { %4505 = vmatmul.mubr.f32.gmra.mrb[4].mxu0 %v6461_v12  ;;  %v2821_v12 = vld [vmem:[#allocation11 + $0x3e8] sm:$0xff] }
 0x2c6   : > { %4507 = vmatprep.mubr.msk.f32.mxu0 %vm469_vm1, %v6473_v13  ;;  %4949 = vmatpush3.bf16.msra.mxu0 %v4946_v45  ;;  %v4962_v13 = vpack.c.bf16 %v2821_v12, %v2820_v26 }
 0x2c7   : > { %4951 = vmatprep.subr.bf16.mxu0 %v4950_v9 }
 0x2c9   : > { %4508 = vmatmul.mubr.f32.gmra.mrb[6].mxu0 %v6468_v62  ;;  %v2823_v62 = vld [vmem:[#allocation11 + $0x3f8] sm:$0xff] }
 0x2ca   : > { %4510 = vmatprep.mubr.msk.f32.mxu0 %vm469_vm1, %v6531_v25  ;;  %4953 = vmatpush3.bf16.msra.mxu0 %v4950_v9  ;;  %v4966_v25 = vpack.c.bf16 %v2823_v62, %v2822_v15 }
 0x2cb   : > { %4955 = vmatprep.subr.bf16.mxu0 %v4954_v58 }
 0x2cd   : > { %4511 = vmatmul.mubr.f32.gmra.mrb[8].mxu0 %v6545_v51  ;;  %v7309_v51 = vld [vmem:[#allocation31_spill] sm:$0xff] }
 0x2ce   : > { %4513 = vmatprep.mubr.msk.f32.mxu0 %vm469_vm1, %v6554_v20  ;;  %4957 = vmatpush3.bf16.msra.mxu0 %v4954_v58  ;;  %v7311_v20 = vld [vmem:[#allocation37_spill] sm:$0xff] }
 0x2cf   : > { %4959 = vmatprep.subr.bf16.mxu0 %v4958_v63 }
 0x2d1   : > { %4514 = vmatmul.mubr.f32.gmra.mrb[10].mxu0 %v6588_v32  ;;  %v7314_v32 = vld [vmem:[#allocation32_spill] sm:$0xff] }
 0x2d2   : > { %4516 = vmatprep.mubr.msk.f32.mxu0 %vm469_vm1, %v6810_v46  ;;  %4961 = vmatpush3.bf16.msra.mxu0 %v4958_v63  ;;  %v7315_v46 = vld [vmem:[#allocation38_spill] sm:$0xff] }
 0x2d3   : > { %4963 = vmatprep.subr.bf16.mxu0 %v4962_v13 }
 0x2d5   : > { %4517 = vmatmul.mubr.f32.gmra.mrb[12].mxu0 %v6823_v59 }
 0x2d6   : > { %4519 = vmatprep.mubr.msk.f32.mxu0 %vm6728_vm9, %v7309_v51  ;;  %4965 = vmatpush3.bf16.msra.mxu0 %v4962_v13 }
 0x2d7   : > { %4967 = vmatprep.subr.bf16.mxu0 %v4966_v25 }
 0x2d9   : > { %4520 = vmatmul.mubr.msk.f32.gmra.mrb[14].mxu0 %vm6707_vm8, %v7311_v20 }
 0x2da   : > { %4969 = vmatpush3.bf16.msra.mxu0 %v4966_v25  ;;  %4554 = vmatprep.mubr.f32.mxu0 %v6405_v31  ;;  %v7316_v31 = vld [vmem:[#allocation33_spill] sm:$0xff] }
 0x2db   : > { %4971 = vmatprep.subr.bf16.mxu0 %v7313_v60 }
 0x2dd   : > { %4555 = vmatmul.mubr.f32.vlgmr.msra.gmra.mrb[0].mxu0 %v6492_v19  ;;  %v7317_v19 = vld [vmem:[#allocation36_spill] sm:$0xff] }
 0x2de   : > { %4557 = vmatprep.mubr.f32.mxu0 %v6511_v34  ;;  %4973 = vmatpush3.bf16.msra.mxu0 %v7313_v60 }
 0x2df   : > { %4975 = vmatprep.subr.bf16.mxu0 %v7314_v32 }
 0x2e1   : > { %4558 = vmatmul.mubr.f32.gmra.mrb[2].mxu0 %v6536_v55 }
 0x2e2   : > { %4560 = vmatprep.mubr.f32.mxu0 %v6551_v8  ;;  %4977 = vmatpush3.bf16.msra.mxu0 %v7314_v32 }
 0x2e3   : > { %4979 = vmatprep.subr.bf16.mxu0 %v7315_v46 }
 0x2e5   : > { %4561 = vmatmul.mubr.f32.gmra.mrb[4].mxu0 %v6572_v53 }
 0x2e6   : > { %4563 = vmatprep.mubr.f32.mxu0 %v6593_v22  ;;  %4981 = vmatpush3.bf16.msra.mxu0 %v7315_v46 }
 0x2e7   : > { %4983 = vmatprep.subr.bf16.mxu0 %v6735_v40 }
 0x2e9   : > { %4564 = vmatmul.mubr.f32.gmra.mrb[6].mxu0 %v6617_v42 }
 0x2ea   : > { %4566 = vmatprep.mubr.f32.mxu0 %v6627_v18  ;;  %4985 = vmatpush3.bf16.msra.mxu0 %v6735_v40 }
 0x2eb   : > { %4987 = vmatprep.subr.bf16.mxu0 %v6762_v24 }
 0x2ed   : > { %4567 = vmatmul.mubr.f32.gmra.mrb[8].mxu0 %v6646_v47 }
 0x2ee   : > { %4569 = vmatprep.mubr.f32.mxu0 %v6656_v6  ;;  %4989 = vmatpush3.bf16.msra.mxu0 %v6762_v24 }
 0x2ef   : > { %4991 = vmatprep.subr.bf16.mxu0 %v6778_v49 }
 0x2f1   : > { %4570 = vmatmul.mubr.f32.gmra.mrb[10].mxu0 %v6667_v33 }
 0x2f2   : > { %4572 = vmatprep.mubr.f32.mxu0 %v6874_v14  ;;  %4993 = vmatpush3.bf16.msra.mxu0 %v6778_v49 }
 0x2f3   : > { %4995 = vmatprep.subr.bf16.mxu0 %v6795_v43 }
 0x2f5   : > { %4573 = vmatmul.mubr.f32.gmra.mrb[12].mxu0 %v6878_v17 }
 0x2f6   : > { %4575 = vmatprep.mubr.f32.mxu0 %v7316_v31  ;;  %4997 = vmatpush3.bf16.msra.mxu0 %v6795_v43 }
 0x2f7   : > { %4999 = vmatprep.subr.bf16.mxu0 %v6814_v16 }
 0x2f9   : > { %4576 = vmatmul.mubr.f32.gmra.mrb[14].mxu0 %v7317_v19 }
 0x2fa   : > { %5001 = vmatpush3.bf16.msra.mxu0 %v6814_v16  ;;  %4610 = vmatprep.mubr.f32.mxu0 %v6481_v37 }
 0x2fd   : > { %4611 = vmatmul.mubr.f32.vlgmr.msra.gmra.mrb[0].mxu0 %v6498_v11 }
 0x2fe   : > { %4613 = vmatprep.mubr.f32.mxu0 %v7307_v50 }
 0x301   : > { %4614 = vmatmul.mubr.f32.gmra.mrb[2].mxu0 %v7308_v36 }
 0x32e   : > { %v6967_v34 = vpop.f32.mrb[36].mxu1 }
 0x32f   : > { %v6969_v55 = vpop.f32.mrb[37].mxu1 }
 0x332   : > { %v6971_v8 = vpop.f32.mrb[38].mxu1 }
 0x333   : > { %v6973_v53 = vpop.f32.mrb[39].mxu1 }
 0x336   : > { %v4226_v22 = vpop.f32.mrb[40].mxu1 }
 0x337   : > { %v1536_v42 = vpop.f32.mrb[41].mxu1 }
 0x33a   : > { %v4229_v18 = vpop.f32.mrb[42].mxu1 }
 0x33b   : > { %v1546_v47 = vpop.f32.mrb[43].mxu1 }
 0x33e   : > { %v4232_v6 = vpop.f32.mrb[44].mxu1 }
 0x33f   : > { %v1556_v37 = vpop.f32.mrb[45].mxu1 }
 0x342   : > { %v4235_v33 = vpop.f32.mrb[46].mxu1 }
 0x343   : > { %v1566_v11 = vpop.f32.mrb[47].mxu1 }
 0x346   : > { %v6975_v49 = vpop.f32.mrb[48].mxu1 }
 0x347   : > { %v6977_v40 = vpop.f32.mrb[49].mxu1 }
 0x34a   : > { %v6979_v24 = vpop.f32.mrb[50].mxu1 }
 0x34b   : > { %v6981_v43 = vpop.f32.mrb[51].mxu1 }
 0x350   : > { %v4618_v16 = vpop.f32.mrb[52].mxu1 }
 0x351   : > { %v3144_v59 = vpop.f32.mrb[53].mxu1 }
 0x354   : > { %v4621_v14 = vpop.f32.mrb[54].mxu1 }
 0x355   : > { %v3154_v17 = vpop.f32.mrb[55].mxu1 }
 0x358   : > { %v4624_v50 = vpop.f32.mrb[56].mxu1 }
 0x359   : > { %v3164_v36 = vpop.f32.mrb[57].mxu1 }
 0x35c   : > { %v4627_v5 = vpop.f32.mrb[58].mxu1 }
 0x35d   : > { %v3174_v35 = vpop.f32.mrb[59].mxu1 }
 0x360   : > { %v6983_v10 = vpop.f32.mrb[60].mxu1 }
 0x361   : > { %v6985_v21 = vpop.f32.mrb[61].mxu1 }
 0x364   : > { %v6987_v61 = vpop.f32.mrb[62].mxu1 }
 0x365   : > { %v6989_v7 = vpop.f32.mrb[63].mxu1 }
 0x3b8   : > { %v4562_v3 = vpop.f32.mrb[4].mxu0 }
 0x3b9   : > { %v5022_v38 = vadd.f32 %v4562_v3, %v4226_v22  ;;  %v2910_v4 = vpop.f32.mrb[5].mxu0 }
 0x3ba   : > { %v5024_v39 = vadd.f32 %v2910_v4, %v1536_v42  ;;  %v3327_v42 = vld [vmem:[%s6071_s11 + $0x39] sm:$0xff] }
 0x3bb   : > { %v5023_v52 = vadd.f32 %v5022_v38, %v4618_v16 }
 0x3bc   : > { %v5025_v57 = vadd.f32 %v5024_v39, %v3144_v59  ;;  %v4565_v44 = vpop.f32.mrb[6].mxu0  ;;  %v3326_v59 = vld [vmem:[%s6071_s11 + $0x31] sm:$0xff] }
 0x3bd   : > { %v3231_v23 = vadd.f32 %v5023_v52, %v6994_v0  ;;  %v5026_v29 = vadd.f32 %v4565_v44, %v4229_v18  ;;  %v2920_v27 = vpop.f32.mrb[7].mxu0 }
 0x3be   : > { %v3230_v45 = vadd.f32 %v5025_v57, %v6994_v0  ;;  %v5028_v28 = vadd.f32 %v2920_v27, %v1546_v47 }
 0x3bf   : > { %v3247_v41 = vadd.f32 3.0, %v3231_v23  ;;  %v5027_v9 = vadd.f32 %v5026_v29, %v4621_v14  ;;  %v3329_v29 = vld [vmem:[%s6071_s11 + $0x51] sm:$0xff] }
 0x3c0   : > { %v3246_v54 = vadd.f32 3.0, %v3230_v45  ;;  %v5029_v48 = vadd.f32 %v5028_v28, %v3154_v17  ;;  %v4568_v58 = vpop.f32.mrb[8].mxu0 }
 0x3c1   : > { %v3263_v1 = vmax.f32 %v3247_v41, 0.0  ;;  %v3233_v56 = vadd.f32 %v5027_v9, %v6994_v0  ;;  %v5030_v63 = vadd.f32 %v4568_v58, %v4232_v6  ;;  %v2930_v26 = vpop.f32.mrb[9].mxu0 }
 0x3c2   : > { %v3262_v12 = vmax.f32 %v3246_v54, 0.0  ;;  %v3232_v13 = vadd.f32 %v5029_v48, %v6994_v0  ;;  %v5032_v15 = vadd.f32 %v2930_v26, %v1556_v37 }
 0x3c3   : > { %v3279_v62 = vmin.f32 %v3263_v1, 6.0  ;;  %v3249_v25 = vadd.f32 3.0, %v3233_v56  ;;  %v5031_v51 = vadd.f32 %v5030_v63, %v4624_v50 }
 0x3c4   : > { %v3278_v2 = vmin.f32 %v3262_v12, 6.0  ;;  %v3248_v20 = vadd.f32 3.0, %v3232_v13  ;;  %v5033_v30 = vadd.f32 %v5032_v15, %v3164_v36  ;;  %v4571_v60 = vpop.f32.mrb[10].mxu0 }
 0x3c5   : > { %v3295_v32 = vmul.f32 %v3279_v62, %v3231_v23  ;;  %v3265_v46 = vmax.f32 %v3249_v25, 0.0  ;;  %v3235_v31 = vadd.f32 %v5031_v51, %v6994_v0  ;;  %v5034_v19 = vadd.f32 %v4571_v60, %v4235_v33  ;;  %v2940_v22 = vpop.f32.mrb[11].mxu0  ;;  %v3331_v51 = vld [vmem:[%s6071_s11 + $0x69] sm:$0xff]  ;;  %v3330_v60 = vld [vmem:[%s6071_s11 + $0x61] sm:$0xff] }
 0x3c6   : > { %v3294_v18 = vmul.f32 %v3278_v2, %v3230_v45  ;;  %v3264_v47 = vmax.f32 %v3248_v20, 0.0  ;;  %v3234_v6 = vadd.f32 %v5033_v30, %v6994_v0  ;;  %v5036_v37 = vadd.f32 %v2940_v22, %v1566_v11 }
 0x3c7   : > { %v3311_v16 = vmul.f32 0.16666667, %v3295_v32  ;;  %v3281_v14 = vmin.f32 %v3265_v46, 6.0  ;;  %v3251_v17 = vadd.f32 3.0, %v3235_v31  ;;  %v5035_v50 = vadd.f32 %v5034_v19, %v4627_v5 }
 0x3c8   : > { %v3310_v36 = vmul.f32 0.16666667, %v3294_v18  ;;  %v3280_v3 = vmin.f32 %v3264_v47, 6.0  ;;  %v3250_v38 = vadd.f32 3.0, %v3234_v6  ;;  %v5037_v4 = vadd.f32 %v5036_v37, %v3174_v35  ;;  %v4574_v33 = vpop.f32.mrb[12].mxu0  ;;  %v3328_v35 = vld [vmem:[%s6071_s11 + $0x49] sm:$0xff] }
 0x3c9   : > { %v3343_v39 = vadd.f32 %v3327_v42, %v3311_v16  ;;  %v3297_v52 = vmul.f32 %v3281_v14, %v3233_v56  ;;  %v3267_v57 = vmax.f32 %v3251_v17, 0.0  ;;  %v3237_v44 = vadd.f32 %v5035_v50, %v6994_v0  ;;  %v2950_v23 = vpop.f32.mrb[13].mxu0 }
 0x3ca   : > { %v3342_v11 = vadd.f32 %v3326_v59, %v3310_v36  ;;  %v3296_v27 = vmul.f32 %v3280_v3, %v3232_v13  ;;  %v3266_v45 = vmax.f32 %v3250_v38, 0.0  ;;  %v3236_v28 = vadd.f32 %v5037_v4, %v6994_v0  ;;  %v3333_v59 = vld [vmem:[%s6071_s11 + $0x81] sm:$0xff]  ;;  %v3332_v36 = vld [vmem:[%s6071_s11 + $0x79] sm:$0xff] }
 0x3cb   : > { %3359 = vst [vmem:[%s7010_s23 + $0x28] sm:$0xff] %v3343_v39  ;;  %v3313_v5 = vmul.f32 0.16666667, %v3297_v52  ;;  %v3283_v41 = vmin.f32 %v3267_v57, 6.0  ;;  %v3253_v9 = vadd.f32 3.0, %v3237_v44  ;;  %v5038_v54 = vadd.f32 %v4574_v33, %v6975_v49 }
 0x3cc   : > { %3358 = vst [vmem:[%s7010_s23 + $0x20] sm:$0xff] %v3342_v11  ;;  %v3312_v48 = vmul.f32 0.16666667, %v3296_v27  ;;  %v3282_v58 = vmin.f32 %v3266_v45, 6.0  ;;  %v3252_v1 = vadd.f32 3.0, %v3236_v28  ;;  %v5040_v56 = vadd.f32 %v2950_v23, %v6977_v40  ;;  %v4577_v63 = vpop.f32.mrb[14].mxu0 }
 0x3cd   : > { %v3345_v26 = vadd.f32 %v3329_v29, %v3313_v5  ;;  %v3299_v12 = vmul.f32 %v3283_v41, %v3235_v31  ;;  %v3269_v13 = vmax.f32 %v3253_v9, 0.0  ;;  %v5039_v15 = vadd.f32 %v5038_v54, %v6983_v10  ;;  %v2960_v62 = vpop.f32.mrb[15].mxu0  ;;  %v3335_v41 = vld [vmem:[%s6071_s11 + $0x99] sm:$0xff] }
 0x3ce   : > { %v3344_v25 = vadd.f32 %v3328_v35, %v3312_v48  ;;  %v3298_v2 = vmul.f32 %v3282_v58, %v3234_v6  ;;  %v3268_v49 = vmax.f32 %v3252_v1, 0.0  ;;  %v5041_v20 = vadd.f32 %v5040_v56, %v6985_v21  ;;  %v3334_v56 = vld [vmem:[%s6071_s11 + $0x91] sm:$0xff] }
 0x3cf   : > { %3361 = vst [vmem:[%s7010_s23 + $0x38] sm:$0xff] %v3345_v26  ;;  %v3315_v30 = vmul.f32 0.16666667, %v3299_v12  ;;  %v3285_v32 = vmin.f32 %v3269_v13, 6.0  ;;  %v3239_v40 = vadd.f32 %v5039_v15, %v6994_v0  ;;  %v5042_v46 = vadd.f32 %v4577_v63, %v6979_v24 }
 0x3d0   : > { %3360 = vst [vmem:[%s7010_s23 + $0x30] sm:$0xff] %v3344_v25  ;;  %v3314_v31 = vmul.f32 0.16666667, %v3298_v2  ;;  %v3284_v10 = vmin.f32 %v3268_v49, 6.0  ;;  %v3238_v19 = vadd.f32 %v5041_v20, %v6994_v0  ;;  %v5044_v22 = vadd.f32 %v2960_v62, %v6981_v43  ;;  %v4612_v42 = vpop.f32.mrb[0].mxu0  ;;  %v3337_v20 = vld [vmem:[%s6071_s11 + $0xb1] sm:$0xff] }
 0x3d1   : > { %v3347_v21 = vadd.f32 %v3331_v51, %v3315_v30  ;;  %v3301_v18 = vmul.f32 %v3285_v32, %v3237_v44  ;;  %v3255_v47 = vadd.f32 3.0, %v3239_v40  ;;  %v5043_v6 = vadd.f32 %v5042_v46, %v6987_v61  ;;  %v3124_v37 = vpop.f32.mrb[1].mxu0  ;;  %v3336_v46 = vld [vmem:[%s6071_s11 + $0xa9] sm:$0xff] }
 0x3d2   : > { %v3346_v16 = vadd.f32 %v3330_v60, %v3314_v31  ;;  %v3300_v24 = vmul.f32 %v3284_v10, %v3236_v28  ;;  %v3254_v14 = vadd.f32 3.0, %v3238_v19  ;;  %v5045_v17 = vadd.f32 %v5044_v22, %v6989_v7 }
 0x3d3   : > { %3363 = vst [vmem:[%s7010_s23 + $0x48] sm:$0xff] %v3347_v21  ;;  %v3317_v50 = vmul.f32 0.16666667, %v3301_v18  ;;  %v3271_v3 = vmax.f32 %v3255_v47, 0.0  ;;  %v3241_v43 = vadd.f32 %v5043_v6, %v6994_v0  ;;  %v5018_v38 = vadd.f32 %v4612_v42, %v6967_v34  ;;  %v3322_v47 = vld [vmem:[%s6071_s11 + $0x1] sm:$0xff] }
 0x3d4   : > { %3362 = vst [vmem:[%s7010_s23 + $0x40] sm:$0xff] %v3346_v16  ;;  %v3316_v4 = vmul.f32 0.16666667, %v3300_v24  ;;  %v3270_v33 = vmax.f32 %v3254_v14, 0.0  ;;  %v3240_v61 = vadd.f32 %v5045_v17, %v6994_v0  ;;  %v5019_v39 = vadd.f32 %v3124_v37, %v6969_v55  ;;  %v4615_v52 = vpop.f32.mrb[2].mxu0 }
 0x3d5   : > { %v3349_v7 = vadd.f32 %v3333_v59, %v3317_v50  ;;  %v3287_v57 = vmin.f32 %v3271_v3, 6.0  ;;  %v3257_v44 = vadd.f32 3.0, %v3241_v43  ;;  %v3227_v23 = vadd.f32 %v5018_v38, %v6994_v0  ;;  %v3134_v11 = vpop.f32.mrb[3].mxu0  ;;  %v3325_v50 = vld [vmem:[%s6071_s11 + $0x21] sm:$0xff] }
 0x3d6   : > { %v3348_v29 = vadd.f32 %v3332_v36, %v3316_v4  ;;  %v3286_v34 = vmin.f32 %v3270_v33, 6.0  ;;  %v3256_v27 = vadd.f32 3.0, %v3240_v61  ;;  %v3226_v45 = vadd.f32 %v5019_v39, %v6994_v0 }
 0x3d7   : > { %3365 = vst [vmem:[%s7010_s23 + $0x58] sm:$0xff] %v3349_v7  ;;  %v3303_v28 = vmul.f32 %v3287_v57, %v3239_v40  ;;  %v3273_v5 = vmax.f32 %v3257_v44, 0.0  ;;  %v3243_v35 = vadd.f32 3.0, %v3227_v23  ;;  %v5020_v55 = vadd.f32 %v4615_v52, %v6971_v8 }
 0x3d8   : > { %3364 = vst [vmem:[%s7010_s23 + $0x50] sm:$0xff] %v3348_v29  ;;  %v3302_v9 = vmul.f32 %v3286_v34, %v3238_v19  ;;  %v3272_v54 = vmax.f32 %v3256_v27, 0.0  ;;  %v3242_v48 = vadd.f32 3.0, %v3226_v45  ;;  %v5021_v58 = vadd.f32 %v3134_v11, %v6973_v53  ;;  %v3323_v19 = vld [vmem:[%s6071_s11 + $0x9] sm:$0xff] }
 0x3d9   : > { %v3319_v1 = vmul.f32 0.16666667, %v3303_v28  ;;  %v3289_v63 = vmin.f32 %v3273_v5, 6.0  ;;  %v3259_v26 = vmax.f32 %v3243_v35, 0.0  ;;  %v3229_v12 = vadd.f32 %v5020_v55, %v6994_v0 }
 0x3da   : > { %v3318_v13 = vmul.f32 0.16666667, %v3302_v9  ;;  %v3288_v15 = vmin.f32 %v3272_v54, 6.0  ;;  %v3258_v62 = vmax.f32 %v3242_v48, 0.0  ;;  %v3228_v8 = vadd.f32 %v5021_v58, %v6994_v0 }
 0x3db   : > { %v3351_v25 = vadd.f32 %v3335_v41, %v3319_v1  ;;  %v3305_v51 = vmul.f32 %v3289_v63, %v3241_v43  ;;  %v3275_v2 = vmin.f32 %v3259_v26, 6.0  ;;  %v3245_v53 = vadd.f32 3.0, %v3229_v12  ;;  %v3324_v43 = vld [vmem:[%s6071_s11 + $0x19] sm:$0xff]  ;;  %s5638_s11 = smov [#allocation12]  }
 0x3dc   : > { %v3350_v49 = vadd.f32 %v3334_v56, %v3318_v13  ;;  %v3304_v30 = vmul.f32 %v3288_v15, %v3240_v61  ;;  %v3274_v60 = vmin.f32 %v3258_v62, 6.0  ;;  %v3244_v32 = vadd.f32 3.0, %v3228_v8  ;;  %s5472_s7 = sshll.u32 %s5638_s11, 4  ;;  %s5473_s7 = int_to_ptr.vmem [resolvable:$false] %s5472_s7 }
 0x3dd   : > { %3367 = vst [vmem:[%s7010_s23 + $0x68] sm:$0xff] %v3351_v25  ;;  %v3321_v40 = vmul.f32 0.16666667, %v3305_v51  ;;  %v3291_v31 = vmul.f32 %v3275_v2, %v3227_v23  ;;  %v3261_v10 = vmax.f32 %v3245_v53, 0.0  ;;  %s5474_s21 = scalar_lea.vmem %s5473_s7, 4096  ;;  %p5475_p8 = scmp.lt.s32.totalorder %s7062_s1, %s5473_s7 }
 0x3de   : > { %3366 = vst [vmem:[%s7010_s23 + $0x60] sm:$0xff] %v3350_v49  ;;  %v3320_v0 = vmul.f32 0.16666667, %v3304_v30  ;;  %v3290_v22 = vmul.f32 %v3274_v60, %v3226_v45  ;;  %v3260_v42 = vmax.f32 %v3244_v32, 0.0  ;;  %p5476_p5 = scmp.lt.s32.totalorder %s5474_s21, %s5468_s20 }
 0x3df   : > { %v3353_v21 = vadd.f32 %v3337_v20, %v3321_v40  ;;  %v3307_v18 = vmul.f32 0.16666667, %v3291_v31  ;;  %v3277_v6 = vmin.f32 %v3261_v10, 6.0 }
 0x3e0   : > { %v3352_v37 = vadd.f32 %v3336_v46, %v3320_v0  ;;  %v3306_v16 = vmul.f32 0.16666667, %v3290_v22  ;;  %v3276_v59 = vmin.f32 %v3260_v42, 6.0  ;;  %p5477_p10 = por %p5476_p5, %p5475_p8 }
 0x3e1   : > { %3369 = vst [vmem:[%s7010_s23 + $0x78] sm:$0xff] %v3353_v21  ;;  %v3339_v24 = vadd.f32 %v3323_v19, %v3307_v18  ;;  %v3293_v14 = vmul.f32 %v3277_v6, %v3229_v12 }
 0x3e2   : > { %3368 = vst [vmem:[%s7010_s23 + $0x70] sm:$0xff] %v3352_v37  ;;  %v3338_v17 = vadd.f32 %v3322_v47, %v3306_v16  ;;  %v3292_v36 = vmul.f32 %v3276_v59, %v3228_v8  ;;  %p5478_p9 = pnand %p5477_p10, %p5471_p3 }
 0x3e3   : > { %3355 = vst [vmem:[%s7010_s23 + $0x8] sm:$0xff] %v3339_v24  ;;  %v3309_v3 = vmul.f32 0.16666667, %v3293_v14 }
 0x3e4   : > { %3354 = vst [vmem:[%s7010_s23] sm:$0xff] %v3338_v17  ;;  %v3308_v38 = vmul.f32 0.16666667, %v3292_v36 }
 0x3e5   : > { %v3341_v4 = vadd.f32 %v3325_v50, %v3309_v3 }
 0x3e6   : > { %v3340_v33 = vadd.f32 %v3324_v43, %v3308_v38 }
 0x3e7   : > { %3357 = vst [vmem:[%s7010_s23 + $0x18] sm:$0xff] %v3341_v4 }
 0x3e8   : > { %3356 = vst [vmem:[%s7010_s23 + $0x10] sm:$0xff] %v3340_v33 }
 0x3e9   : > { %5481 = shalt.err (!%p5478_p9)
}
 0x3ea   : > { %s5482_s28 = scalar_lea.hbm %s7067_s16, 2048  ;;  %s5486_s6 = scalar_lea.hbm %s7320_s2, 8192 }
 0x3eb   : > { %p5483_p11 = scmp.ne.s32.totalorder %s7067_s16, %s5482_s28  ;;  %p5487_p6 = scmp.lt.u32.totalorder %s7067_s16, %s7320_s2 }
 0x3ec   : > { %p5488_p13 = scmp.lt.u32.totalorder %s5486_s6, %s5482_s28  ;;  %p5490_p2 = scmp.lt.u32.totalorder %s5482_s28, %s7067_s16 }
 0x3ed   : > { %p5484_p4 = pnand %p5483_p11, %p7321_p0 }
 0x3ee   : > { %p5489_p1 = por %p5488_p13, %p5487_p6 }
 0x3ef   : > { %p5485_p7 = pneg %p5484_p4 }
 0x3f0   : > { %p5491_p12 = por %p5490_p2, %p5489_p1 }
 0x3f2   : > { %p5492_p3 = pnand %p5491_p12, %p5485_p7 }
 0x3f4   : > { %5495 = shalt.err (!%p5492_p3)
}
 0x3f5   : > { %s5639_s19 = smov 128   ;;  %s5640_s24 = smov 8  }
 0x3f6   : > { %5172 = dma.vmem_to_hbm [thread:$0]  (%p7321_p0), %s7062_s1, 2048, %s7067_s16, %s3371_s29, %s5639_s19, %s5639_s19, %s5640_s24  }
 0x3f7 PF: > { %p5200_p8 = scmp.ge.s32.totalorder %s5626_s14, 2  ;;  %s3402_s4 = sand.u32 1, %s5598_s30  }
 0x3f8   : > { %p7322_p5 = scmp.ne.s32.totalorder %s7245_s17, 0  ;;  %s3403_s20 = scalar_lea.sflag [#allocation5], %s3402_s4 }
 0x3fa   : > { %p5192_p10 = pnand %p5200_p8, %p7322_p5 }
 0x3fc   : > { %5569 = dma.done.wait (!%p5192_p10), %s3403_s20, 2048  }
 0x3fd   : > { %5571 = vsyncadd (!%p5192_p10), %s3403_s20, 4294965248  ;;  %s27_s14 = sadd.s32 1, %s5626_s14   ;;  %s7324_s27 = sld [smem:[#allocation19_spill]] }
 0x3fe   : > { %p7100_p9 = scmp.ge.s32.totalorder %s27_s14, 6   ;;  %s7325_s28 = sld [smem:[#allocation20_spill]] }
 0x3ff   : > { %s7326_s29 = sld [smem:[#allocation29_spill]]  ;;  %s7327_s13 = sld [smem:[#allocation30_spill]] }
 0x400   : > { %s7328_s17 = sld [smem:[#allocation23_spill]]  ;;  %s7329_s22 = sld [smem:[#allocation25_spill]] }
 0x401   : > { %s7330_s1 = sld [smem:[#allocation26_spill]]  ;;  %s7332_s24 = smov %s5578_s25 }
 0x402   : > { %s7333_s25 = smov %s5582_s26  ;;  %s7334_s26 = smov %s6019_s5 }
 0x403   : > { %s7335_s30 = smov %s5602_s8  ;;  %s7336_s8 = smov %s5606_s9 }
 0x404   : > { %s7338_s10 = smov %s5618_s12  ;;  %26 = sbr.rel (!%p7100_p9) target bundleno = 21 (0x15), region = 136 }
 0x405   : > { %s7337_s9 = smov %s7327_s13 }
 0x406   : > { %s7339_s11 = smov %s7328_s17  ;;  %s7340_s12 = smov %s7329_s22 }
 0x407   : > { %s7341_s13 = smov %s7330_s1 }
 0x40b   :  { %3408 = vsyncpa [#allocation4], 1 }
 0x40c   :  { %3410 = vsyncpa [#allocation4 + $0x1], 1 }
 0x40d   :  { %3411 = vsyncpa [#allocation7], 1 }
 0x40e   :  { %3413 = vsyncpa [#allocation7 + $0x1], 1 }
 0x40f   :  { %3414 = vsyncpa [#allocation10], 1 }
 0x410   :  { %3415 = vsyncpa [#allocation5], 1 }
 0x411   :  { %3417 = vsyncpa [#allocation5 + $0x1], 1 }

// kernel: tpu_custom_call.1
= control target key start
LH: loop header
LB: loop body
LE: loop exit
PB: predicated region body
PF: predicated region fallthrough
CT: control target
= control target key end

     0   :  { %s7147_s0 = inlined_call_operand.hbm [shape: f32[2,16,24,128], index: 0, kind: input, shape index: {}]   ;;  %s7148_s1 = inlined_call_operand.hbm [shape: f32[2,16,24,128], index: 1, kind: input, shape index: {}]   ;;  %s7149_s2 = inlined_call_operand.hbm [shape: f32[2,16,24,128], index: 2, kind: input, shape index: {}]   ;;  %s7150_s3 = inlined_call_operand.hbm [shape: f32[128,128], index: 3, kind: input, shape index: {}]   ;;  %s7151_s4 = inlined_call_operand.vmem [shape: f32[1,128], index: 4, kind: input, shape index: {}]   ;;  %s7152_s5 = inlined_call_operand.hbm [shape: f32[3,3,128,128], index: 5, kind: input, shape index: {}]   ;;  %s7153_s6 = inlined_call_operand.vmem [shape: f32[1,128], index: 6, kind: input, shape index: {}]   ;;  %s7154_s7 = inlined_call_operand.hbm [shape: f32[2,16,16,128], index: 7, kind: output, shape index: {}]  }
   0x1   :  { %7206 = sst [smem:[#allocation43_spill]] %s7148_s1 }
   0x2   :  { %7207 = sst [smem:[#allocation44_spill]] %s7149_s2 }
   0x3   :  { %7208 = sst [smem:[#allocation45_spill]] %s7150_s3 }
   0x4   :  { %7209 = sst [smem:[#allocation46_spill]] %s7151_s4 }
   0x5   :  { %7210 = sst [smem:[#allocation47_spill]] %s7152_s5 }
   0x6   :  { %7211 = sst [smem:[#allocation48_spill]] %s7153_s6 }
   0x7   :  { %7212 = sst [smem:[#allocation49_spill]] %s7154_s7 }
   0x8   :  { %12 = vsyncpa [#allocation4], 0 }
   0x9   :  { %14 = vsyncpa [#allocation4 + $0x1], 0 }
   0xa   :  { %15 = vsyncpa [#allocation7], 0 }
   0xb   :  { %17 = vsyncpa [#allocation7 + $0x1], 0 }
   0xc   :  { %18 = vsyncpa [#allocation10], 0 }
   0xd   :  { %19 = vsyncpa [#allocation5], 0 }
   0xe   :  { %21 = vsyncpa [#allocation5 + $0x1], 0  ;;  %s5681_s24 = smov 0   ;;  %s5683_s25 = smov 0  }
   0xf   :  { %s5685_s26 = smov 0   ;;  %s5687_s27 = smov 0  }
  0x10   :  { %s5689_s28 = smov 0   ;;  %s5691_s29 = smov 0  }
  0x11   :  { %s5693_s30 = smov 0   ;;  %s5695_s8 = smov 0  }
  0x12   :  { %s5697_s9 = smov 0   ;;  %s5699_s10 = smov 0  }
  0x13   :  { %s5701_s11 = smov 0   ;;  %s5703_s12 = smov 0  }
  0x14   :  { %s5705_s13 = smov 0   ;;  %s5707_s14 = smov 0  }
  0x15 LB: > { %7213 = sst [smem:[#allocation18_spill]] %s5574_s24  ;;  %s5752_s15 = sadd.s32 4294967295, %s5626_s14   ;;  %s5626_s14 = sphi %s5707_s14, %s27_s14   ;;  %s5622_s13 = sphi %s5705_s13, %s7341_s13   ;;  %s5618_s12 = sphi %s5703_s12, %s7340_s12   ;;  %s5614_s11 = sphi %s5701_s11, %s7339_s11   ;;  %s5610_s10 = sphi %s5699_s10, %s7338_s10   ;;  %s5606_s9 = sphi %s5697_s9, %s7337_s9   ;;  %s5602_s8 = sphi %s5695_s8, %s7336_s8   ;;  %s5598_s30 = sphi %s5693_s30, %s7335_s30   ;;  %s5594_s29 = sphi %s5691_s29, %s7326_s29   ;;  %s5590_s28 = sphi %s5689_s28, %s7325_s28   ;;  %s5586_s27 = sphi %s5687_s27, %s7324_s27   ;;  %s5582_s26 = sphi %s5685_s26, %s7334_s26   ;;  %s5578_s25 = sphi %s5683_s25, %s7333_s25   ;;  %s5574_s24 = sphi %s5681_s24, %s7332_s24  }
  0x16   : > { %7214 = sst [smem:[#allocation19_spill]] %s5590_s28  ;;  %p3553_p0 = scmp.ge.s32.totalorder %s5626_s14, 1 }
  0x17   : > { %7215 = sst [smem:[#allocation20_spill]] %s5594_s29  ;;  %p7156_p1 = scmp.eq.s32.totalorder %s5752_s15, 0 }
  0x18   : > { %7216 = sst [smem:[#allocation21_spill]] %s5610_s10  ;;  %p256_p3 = scmp.lt.s32.totalorder %s5626_s14, 5 }
  0x19   : > { %7217 = sst [smem:[#allocation22_spill]] %s5614_s11  ;;  %s5628_s17 = smov [#allocation9]  }
  0x1a   : > { %7218 = sst [smem:[#allocation23_spill]] %s5622_s13  ;;  %p5758_p4 = pnand %p3553_p0, %p256_p3 }
  0x1b   : > { %s268_s18 = sshll.u32 %s5628_s17, 4  ;;  %s7222_s3 = sld [smem:[#allocation45_spill]]  ;;  %s269_s18 = int_to_ptr.vmem [resolvable:$true] %s268_s18 }
  0x1c   : > { %s7219_s16 = scalar_select %p5758_p4, 1, 0 }
  0x1d   : > { %p5174_p5 = pneg %p5758_p4 }
  0x1e   : > { %7220 = sst [smem:[#allocation24_spill]] %s7219_s16 }
  0x1f   : > { %p5766_p6 = pnand %p5174_p5, %p7156_p1 }
  0x21   : > { %s5322_s22 = scalar_lea.hbm %s7222_s3, 2048  ;;  %p7176_p8 = pneg %p5766_p6 }
  0x22   : > { %p5323_p7 = scmp.ne.s32.totalorder %s7222_s3, %s5322_s22  ;;  %p5329_p11 = scmp.lt.u32.totalorder %s5322_s22, %s7222_s3 }
  0x24   : > { %p5325_p9 = pnand %p7176_p8, %p5323_p7 }
  0x26   : > { %p5326_p10 = pneg %p5325_p9 }
  0x28   : > { %p5331_p12 = pnand %p5329_p11, %p5326_p10 }
  0x2a   : > { %5334 = shalt.err (!%p5331_p12)
}
  0x2b   : > { %s5335_s20 = scalar_lea.vmem %s269_s18, 2048  ;;  %p5343_p5 = scmp.lt.s32.totalorder %s269_s18, %s269_s18 }
  0x2c   : > { %p5336_p13 = scmp.ne.s32.totalorder %s269_s18, %s5335_s20  ;;  %p5344_p2 = scmp.lt.s32.totalorder %s5335_s20, %s5335_s20 }
  0x2e   : > { %p5338_p0 = pnand %p5336_p13, %p7176_p8  ;;  %p5345_p1 = por %p5344_p2, %p5343_p5 }
  0x30   : > { %p5339_p3 = pneg %p5338_p0 }
  0x32   : > { %p5346_p4 = pnand %p5345_p1, %p5339_p3 }
  0x34   : > { %5349 = shalt.err (!%p5346_p4)
}
  0x35   : > { %s7160_s7 = smov 128   ;;  %s7162_s11 = smov 8  }
  0x36   : > { %5177 = dma.hbm_to_vmem [thread:$0]  (!%p5766_p6), %s7222_s3, 2048, %s269_s18, [#allocation10], %s7160_s7, %s7160_s7, %s7162_s11  }
  0x37   : > { %s36_s23 = sadd.s32 1, %s5618_s12  ;;  %s39_s17 = sadd.s32 1, %s5622_s13 }
  0x38   : > { %p37_p1 = scmp.ge.s32.totalorder %s36_s23, 2  ;;  %p7175_p2 = scmp.eq.s32.totalorder %s5626_s14, 0 }
  0x39   : > { %s3547_s20 = sshll.u32 %s5618_s12, 3  ;;  %s84_s6 = sadd.s32 1, %s5594_s29 }
  0x3a   : > { %s7343_s23 = smov (%p37_p1, %s36_s23), 0  ;;  %s7345_s17 = smov (!%p37_p1, %s39_s17), %s5622_s13 }
  0x3b   : > { %7223 = sst [smem:[#allocation25_spill]] %s7343_s23  ;;  %s44_s10 = ssub.s32 %s5618_s12, %s7343_s23 }
  0x3c   : > { %s3548_s4 = sadd.s32 4294967295, %s3547_s20  ;;  %p41_p4 = scmp.ge.s32.totalorder %s7345_s17, 2 }
  0x3d   : > { %p73_p7 = scmp.gt.s32.totalorder %s3548_s4, 0  ;;  %s3549_s18 = sshll.u32 %s7343_s23, 3 }
  0x3e   : > { %p91_p9 = scmp.ne.s32.totalorder %s5594_s29, %s5590_s28  ;;  %s7347_s17 = smov (%p41_p4, %s7345_s17), 0 }
  0x3f   : > { %7224 = sst [smem:[#allocation26_spill]] %s7347_s17  ;;  %s7349_s4 = smov (!%p73_p7, %s3548_s4), 0 }
  0x40   : > { %s5812_s21 = ssub.s32 %s5622_s13, %s7347_s17  ;;  %s3550_s22 = sadd.s32 4294967295, %s3549_s18 }
  0x41   : > { %7225 = sst [smem:[#allocation27_spill]] %s5812_s21  ;;  %s5815_s7 = sor.u32 %s44_s10, %s5812_s21 }
  0x42   : > { %p77_p10 = scmp.gt.s32.totalorder %s3550_s22, 0  ;;  %p5820_p12 = por %p91_p9, %p7175_p2 }
  0x43   : > { %p97_p13 = scmp.ne.s32.totalorder %s5590_s28, %s5586_s27  ;;  %s5826_s3 = sadd.s32 8, %s3547_s20 }
  0x44   : > { %s7351_s22 = smov (!%p77_p10, %s3550_s22), 0  ;;  %p7227_p3 = scmp.eq.s32.totalorder %s5752_s15, 0 }
  0x45   : > { %s80_s10 = ssub.s32 %s7349_s4, %s7351_s22  ;;  %s5836_s16 = sadd.s32 8, %s3549_s18 }
  0x46   : > { %s81_s17 = sor.u32 %s80_s10, %s5812_s21  ;;  %p5832_p5 = por %p97_p13, %p7227_p3 }
  0x47   : > { %p82_p1 = scmp.eq.s32.totalorder %s81_s17, 0  ;;  %p7174_p7 = scmp.lt.s32.totalorder %s5626_s14, 4 }
  0x48   : > { %s7228_s23 = scalar_select %p5832_p5, 1, 0 }
  0x49   : > { %s5841_s2 = scalar_select %p82_p1, %s5594_s29, %s84_s6  }
  0x4a   : > { %7229 = sst [smem:[#allocation28_spill]] %s7228_s23  ;;  %s5844_s27 = smul.u32 48, %s5622_s13 }
  0x4b   : > { %7230 = sst [smem:[#allocation29_spill]] %s5841_s2  ;;  %s325_s20 = sand.u32 1, %s5626_s14  }
  0x4c   : > { %s327_s22 = sand.u32 1, %s5594_s29   ;;  %p5852_p9 = pnand %p7174_p7, %p5820_p12 }
  0x4d   : > { %s5149_s28 = smul.u32 24, %s327_s22  ;;  %s7232_s1 = sld [smem:[#allocation43_spill]] }
  0x4e   : > { %s5150_s17 = smul.u32 3, %s7349_s4  ;;  %s5631_s11 = smov [#allocation11]  }
  0x4f   : > { %s329_s23 = scalar_lea.vmem [#allocation6], %s5149_s28  ;;  %s5864_s22 = sshll.u32 %s5631_s11, 4  ;;  %s285_s22 = int_to_ptr.vmem [resolvable:$true] %s5864_s22 }
  0x50   : > { %s339_s18 = sadd.s32 %s5150_s17, %s5844_s27  ;;  %s342_s21 = sshll.u32 %s329_s23, 4  ;;  %s5857_s21 = int_to_ptr.vmem [resolvable:$true] %s342_s21 }
  0x51   : > { %s3562_s6 = sshll.u32 %s339_s18, 7  ;;  %s5866_s24 = scalar_lea.sflag [#allocation7], %s325_s20 }
  0x52   : > { %p5352_p12 = pneg %p5852_p9 }
  0x53   : > { %s5862_s29 = scalar_lea.hbm %s7232_s1, %s3562_s6  ;;  %s5355_s13 = scalar_lea.hbm %s7232_s1, 12288 }
  0x54   : > { %s5350_s4 = scalar_lea.hbm %s5862_s29, 384  ;;  %p5356_p1 = scmp.lt.u32.totalorder %s5862_s29, %s7232_s1 }
  0x55   : > { %p5351_p10 = scmp.ne.s32.totalorder %s5862_s29, %s5350_s4  ;;  %p5357_p4 = scmp.lt.u32.totalorder %s5355_s13, %s5350_s4 }
  0x56   : > { %p5359_p7 = scmp.lt.u32.totalorder %s5350_s4, %s5862_s29 }
  0x57   : > { %p5353_p13 = pnand %p5352_p12, %p5351_p10  ;;  %p5358_p0 = por %p5357_p4, %p5356_p1 }
  0x59   : > { %p5354_p3 = pneg %p5353_p13  ;;  %p5360_p2 = por %p5359_p7, %p5358_p0 }
  0x5b   : > { %p5361_p11 = pnand %p5360_p2, %p5354_p3 }
  0x5d   : > { %5364 = shalt.err (!%p5361_p11)
}
  0x5e   : > { %s5365_s20 = scalar_lea.vmem %s5857_s21, 384  ;;  %s5632_s18 = smov [#allocation6]  }
  0x5f   : > { %p5366_p10 = scmp.ne.s32.totalorder %s5857_s21, %s5365_s20  ;;  %s5370_s6 = sshll.u32 %s5632_s18, 4  ;;  %s5371_s6 = int_to_ptr.vmem [resolvable:$false] %s5370_s6 }
  0x60   : > { %s5372_s11 = scalar_lea.vmem %s5371_s6, 768  ;;  %p5373_p5 = scmp.lt.s32.totalorder %s5857_s21, %s5371_s6 }
  0x61   : > { %p5368_p13 = pnand %p5366_p10, %p5352_p12  ;;  %p5374_p4 = scmp.lt.s32.totalorder %s5372_s11, %s5365_s20 }
  0x63   : > { %p5369_p8 = pneg %p5368_p13  ;;  %p5375_p1 = por %p5374_p4, %p5373_p5 }
  0x65   : > { %p5376_p0 = pnand %p5375_p1, %p5369_p8 }
  0x67   : > { %5379 = shalt.err (!%p5376_p0)
}
  0x68   : > { %s7233_s4 = smov 8   ;;  %s7234_s2 = smov 128  }
  0x69   : > { %5187 = dma.hbm_to_vmem [thread:$0]  (!%p5852_p9), %s5862_s29, 384, %s5857_s21, %s5866_s24, %s7234_s2, %s7234_s2, %s7233_s4  }
  0x6a   : > { %s7235_s5 = sld [smem:[#allocation47_spill]]  ;;  %p7236_p2 = pneg %p5766_p6 }
  0x70   : > { %s5380_s23 = scalar_lea.hbm %s7235_s5, 18432 }
  0x71   : > { %p5381_p8 = scmp.ne.s32.totalorder %s7235_s5, %s5380_s23  ;;  %p5387_p7 = scmp.lt.u32.totalorder %s5380_s23, %s7235_s5 }
  0x73   : > { %p5383_p11 = pnand %p5381_p8, %p7236_p2 }
  0x75   : > { %p5384_p5 = pneg %p5383_p11 }
  0x77   : > { %p5389_p12 = pnand %p5387_p7, %p5384_p5 }
  0x79   : > { %5392 = shalt.err (!%p5389_p12)
}
  0x7a   : > { %s5393_s29 = scalar_lea.vmem %s285_s22, 18432  ;;  %p7237_p3 = pmov %p7236_p2 }
  0x7b   : > { %p5394_p9 = scmp.ne.s32.totalorder %s285_s22, %s5393_s29  ;;  %p5401_p4 = scmp.lt.s32.totalorder %s285_s22, %s285_s22 }
  0x7c   : > { %p5402_p1 = scmp.lt.s32.totalorder %s5393_s29, %s5393_s29 }
  0x7d   : > { %p5396_p10 = pnand %p5394_p9, %p7237_p3 }
  0x7e   : > { %p5403_p0 = por %p5402_p1, %p5401_p4 }
  0x7f   : > { %p5397_p13 = pneg %p5396_p10 }
  0x81   : > { %p5404_p2 = pnand %p5403_p0, %p5397_p13 }
  0x83   : > { %5407 = shalt.err (!%p5404_p2)
}
  0x84   : > { %5180 = dma.hbm_to_vmem [thread:$0]  (!%p5766_p6), %s7235_s5, 18432, %s285_s22, [#allocation10], %s7234_s2, %s7234_s2, %s7233_s4  }
  0x85   : > { %s3546_s19 = sadd.s32 4294967294, %s5626_s14   ;;  %s48_s11 = sadd.s32 1, %s5606_s9 }
  0x86   : > { %p55_p8 = scmp.ne.s32.totalorder %s5606_s9, %s5602_s8  ;;  %p7238_p11 = scmp.eq.s32.totalorder %s5815_s7, 0 }
  0x87   : > { %p7240_p5 = scmp.eq.s32.totalorder %s5626_s14, 0  ;;  %p61_p12 = scmp.ne.s32.totalorder %s5602_s8, %s5598_s30 }
  0x88   : > { %s5928_s28 = scalar_select %p7238_p11, %s5606_s9, %s48_s11  }
  0x89   : > { %p57_p7 = por %p7240_p5, %p55_p8  ;;  %p7241_p9 = scmp.eq.s32.totalorder %s5752_s15, 3 }
  0x8a   : > { %7239 = sst [smem:[#allocation30_spill]] %s5928_s28  ;;  %p249_p10 = scmp.eq.s32.totalorder %s3546_s19, 3 }
  0x8b   : > { %p5936_p3 = por %p7241_p9, %p55_p8  ;;  %p7243_p13 = scmp.eq.s32.totalorder %s5752_s15, 0 }
  0x8c   : > { %s301_s22 = sand.u32 1, %s5606_s9   ;;  %p5947_p6 = por %p249_p10, %p61_p12 }
  0x8d   : > { %s7242_s13 = scalar_select %p5936_p3, 1, 0 }
  0x8e   : > { %p5942_p4 = por %p7243_p13, %p61_p12  ;;  %s5146_s7 = smul.u32 192, %s301_s22 }
  0x8f   : > { %s7245_s17 = scalar_select %p5947_p6, 1, 0 }
  0x90   : > { %p7246_p1 = scmp.lt.s32.totalorder %s5626_s14, 4  ;;  %s5147_s10 = smul.u32 24, %s5618_s12 }
  0x91   : > { %s305_s29 = scalar_lea.vmem [#allocation3], %s5146_s7  ;;  %s5966_s5 = scalar_lea.sflag [#allocation4], %s301_s22 }
  0x92   : > { %p5953_p0 = pnand %p7246_p1, %p57_p7  ;;  %s312_s18 = sadd.s32 %s5844_s27, %s5147_s10 }
  0x93   : > { %s315_s21 = sshll.u32 %s305_s29, 4  ;;  %s3559_s6 = sshll.u32 %s312_s18, 7  ;;  %s5959_s21 = int_to_ptr.vmem [resolvable:$true] %s315_s21 }
  0x94   : > { %s5964_s1 = scalar_lea.hbm %s7147_s0, %s3559_s6  ;;  %p5410_p8 = pneg %p5953_p0 }
  0x95   : > { %s5408_s28 = scalar_lea.hbm %s5964_s1, 3072  ;;  %s5413_s18 = scalar_lea.hbm %s7147_s0, 12288 }
  0x96   : > { %p5409_p2 = scmp.ne.s32.totalorder %s5964_s1, %s5408_s28  ;;  %p5414_p7 = scmp.lt.u32.totalorder %s5964_s1, %s7147_s0 }
  0x97   : > { %p5415_p12 = scmp.lt.u32.totalorder %s5413_s18, %s5408_s28  ;;  %p5417_p10 = scmp.lt.u32.totalorder %s5408_s28, %s5964_s1 }
  0x98   : > { %p5411_p11 = pnand %p5410_p8, %p5409_p2 }
  0x99   : > { %p5416_p9 = por %p5415_p12, %p5414_p7 }
  0x9a   : > { %p5412_p5 = pneg %p5411_p11 }
  0x9b   : > { %p5418_p13 = por %p5417_p10, %p5416_p9 }
  0x9d   : > { %p5419_p1 = pnand %p5418_p13, %p5412_p5 }
  0x9f   : > { %5422 = shalt.err (!%p5419_p1)
}
  0xa0   : > { %s5423_s22 = scalar_lea.vmem %s5959_s21, 3072  ;;  %s5633_s19 = smov [#allocation3]  }
  0xa1   : > { %p5424_p2 = scmp.ne.s32.totalorder %s5959_s21, %s5423_s22  ;;  %s5428_s11 = sshll.u32 %s5633_s19, 4  ;;  %s5429_s11 = int_to_ptr.vmem [resolvable:$false] %s5428_s11 }
  0xa2   : > { %s5430_s7 = scalar_lea.vmem %s5429_s11, 6144  ;;  %p5431_p3 = scmp.lt.s32.totalorder %s5959_s21, %s5429_s11 }
  0xa3   : > { %p5426_p11 = pnand %p5424_p2, %p5410_p8  ;;  %p5432_p7 = scmp.lt.s32.totalorder %s5430_s7, %s5423_s22 }
  0xa5   : > { %p5427_p6 = pneg %p5426_p11  ;;  %p5433_p12 = por %p5432_p7, %p5431_p3 }
  0xa7   : > { %p5434_p9 = pnand %p5433_p12, %p5427_p6 }
  0xa9   : > { %5437 = shalt.err (!%p5434_p9)
}
  0xaa   : > { %s7248_s28 = sld [smem:[#allocation18_spill]]  ;;  %s7249_s10 = sld [smem:[#allocation27_spill]] }
  0xab   : > { %5184 = dma.hbm_to_vmem [thread:$0]  (!%p5953_p0), %s5964_s1, 3072, %s5959_s21, %s5966_s5, %s7234_s2, %s7234_s2, %s7233_s4  }
  0xac   : > { %p7250_p3 = scmp.lt.s32.totalorder %s5826_s3, 15  ;;  %p7251_p6 = scmp.lt.s32.totalorder %s5836_s16, 15 }
  0xad   : > { %s120_s20 = sadd.s32 1, %s5582_s26  ;;  %p127_p8 = scmp.ne.s32.totalorder %s5582_s26, %s5578_s25 }
  0xae   : > { %s7353_s3 = smov (!%p7250_p3, %s5826_s3), 15  ;;  %s7355_s16 = smov (!%p7251_p6, %s5836_s16), 15 }
  0xaf   : > { %s116_s18 = ssub.s32 %s7353_s3, %s7355_s16  ;;  %p7252_p10 = scmp.eq.s32.totalorder %s5626_s14, 0 }
  0xb0   : > { %p133_p5 = scmp.ne.s32.totalorder %s5578_s25, %s7248_s28  ;;  %s117_s29 = sor.u32 %s116_s18, %s7249_s10 }
  0xb1   : > { %p129_p13 = por %p127_p8, %p7252_p10  ;;  %p118_p1 = scmp.eq.s32.totalorder %s117_s29, 0 }
  0xb2   : > { %p7253_p2 = scmp.eq.s32.totalorder %s5752_s15, 0  ;;  %s354_s22 = sand.u32 1, %s5582_s26  }
  0xb3   : > { %s5153_s1 = smul.u32 3, %s7353_s3  ;;  %p7255_p0 = scmp.lt.s32.totalorder %s5626_s14, 4 }
  0xb4   : > { %p6013_p11 = por %p133_p5, %p7253_p2  ;;  %s5152_s21 = smul.u32 24, %s354_s22 }
  0xb5   : > { %s6019_s5 = scalar_select %p118_p1, %s5582_s26, %s120_s20  }
  0xb6   : > { %s7254_s6 = scalar_select %p6013_p11, 1, 0 }
  0xb7   : > { %s366_s19 = sadd.s32 %s5153_s1, %s5844_s27  ;;  %p6024_p7 = pnand %p7255_p0, %p129_p13 }
  0xb8   : > { %s3564_s11 = sshll.u32 %s366_s19, 7  ;;  %s7257_s10 = sld [smem:[#allocation44_spill]] }
  0xb9   : > { %s356_s3 = scalar_lea.vmem [#allocation8], %s5152_s21  ;;  %p5440_p9 = pneg %p6024_p7 }
  0xba   : > { %s369_s20 = sshll.u32 %s356_s3, 4  ;;  %s6033_s20 = int_to_ptr.vmem [resolvable:$true] %s369_s20 }
  0xbe   : > { %s7258_s18 = smov %s7257_s10  ;;  %s6031_s29 = scalar_lea.hbm %s7257_s10, %s3564_s11 }
  0xbf   : > { %s5438_s27 = scalar_lea.hbm %s6031_s29, 384  ;;  %s5443_s19 = scalar_lea.hbm %s7258_s18, 12288 }
  0xc0   : > { %p5439_p12 = scmp.ne.s32.totalorder %s6031_s29, %s5438_s27  ;;  %p5444_p8 = scmp.lt.u32.totalorder %s6031_s29, %s7258_s18 }
  0xc1   : > { %p5445_p5 = scmp.lt.u32.totalorder %s5443_s19, %s5438_s27  ;;  %p5447_p13 = scmp.lt.u32.totalorder %s5438_s27, %s6031_s29 }
  0xc2   : > { %p5441_p3 = pnand %p5440_p9, %p5439_p12 }
  0xc3   : > { %p5446_p10 = por %p5445_p5, %p5444_p8 }
  0xc4   : > { %p5442_p6 = pneg %p5441_p3 }
  0xc5   : > { %p5448_p1 = por %p5447_p13, %p5446_p10 }
  0xc7   : > { %p5449_p2 = pnand %p5448_p1, %p5442_p6 }
  0xc9   : > { %5452 = shalt.err (!%p5449_p2)
}
  0xca   : > { %s5453_s21 = scalar_lea.vmem %s6033_s20, 384  ;;  %s5634_s28 = smov [#allocation8]  }
  0xcb   : > { %p5454_p0 = scmp.ne.s32.totalorder %s6033_s20, %s5453_s21  ;;  %s5458_s10 = sshll.u32 %s5634_s28, 4  ;;  %s5459_s10 = int_to_ptr.vmem [resolvable:$false] %s5458_s10 }
  0xcc   : > { %s5460_s3 = scalar_lea.vmem %s5459_s10, 768  ;;  %p5461_p11 = scmp.lt.s32.totalorder %s6033_s20, %s5459_s10 }
  0xcd   : > { %p5456_p12 = pnand %p5454_p0, %p5440_p9  ;;  %p5462_p8 = scmp.lt.s32.totalorder %s5460_s3, %s5453_s21 }
  0xcf   : > { %p5457_p3 = pneg %p5456_p12  ;;  %p5463_p5 = por %p5462_p8, %p5461_p11 }
  0xd1   : > { %p5464_p10 = pnand %p5463_p5, %p5457_p3 }
  0xd3   : > { %5467 = shalt.err (!%p5464_p10)
}
  0xd4   : > { %5190 = dma.hbm_to_vmem [thread:$0]  (!%p6024_p7), %s6031_s29, 384, %s6033_s20, %s5866_s24, %s7234_s2, %s7234_s2, %s7233_s4  }
  0xd5   : > { %s7259_s27 = sld [smem:[#allocation24_spill]] }
  0xdb   : > { %p7260_p9 = scmp.ne.s32.totalorder %s7259_s27, 0 }
  0xdd   : > { %381 = sbr.rel (%p7260_p9) target bundleno = 1015 (0x3f7), region = 48 }
  0xe4   : > { %s6067_s22 = sand.u32 1, %s5602_s8  }
  0xe5   : > { %s5155_s1 = smul.u32 192, %s6067_s22  ;;  %s384_s19 = scalar_lea.sflag [#allocation4], %s6067_s22 }
  0xe7   : > { %s6071_s11 = scalar_lea.vmem [#allocation3], %s5155_s1 }
  0xe8   : > { %5553 = dma.done.wait (%p5942_p4), %s384_s19, 3072  }
  0xe9   : > { %5555 = vsyncadd (%p5942_p4), %s384_s19, 4294964224  ;;  %s7261_s24 = sld [smem:[#allocation19_spill]]  ;;  %s7262_s4 = sld [smem:[#allocation28_spill]] }
  0xea   : > { %s392_s2 = sand.u32 1, %s5752_s15  }
  0xeb   : > { %s393_s20 = scalar_lea.sflag [#allocation7], %s392_s2 }
  0xef   : > { %s394_s16 = sand.u32 1, %s7261_s24   ;;  %p7263_p11 = scmp.ne.s32.totalorder %s7262_s4, 0 }
  0xf0   : > { %s5156_s29 = smul.u32 24, %s394_s16 }
  0xf2   : > { %s6079_s7 = scalar_lea.vmem [#allocation6], %s5156_s29 }
  0xf3   : > { %5557 = dma.done.wait (%p7263_p11), %s393_s20, 384  }
  0xf4   : > { %5559 = vsyncadd (%p7263_p11), %s393_s20, 4294966912  ;;  %s403_s21 = sand.u32 1, %s5578_s25   ;;  %p7264_p4 = scmp.ne.s32.totalorder %s7254_s6, 0 }
  0xf5   : > { %s5157_s28 = smul.u32 24, %s403_s21 }
  0xf7   : > { %s6086_s23 = scalar_lea.vmem [#allocation8], %s5157_s28 }
  0xf8   : > { %5561 = dma.done.wait (%p7264_p4), %s393_s20, 384  }
  0xf9   : > { %5563 = vsyncadd (%p7264_p4), %s393_s20, 4294966912  ;;  %p7265_p7 = scmp.eq.s32.totalorder %s5752_s15, 0 }
  0xfb   : > { %5565 = dma.done.wait (%p7265_p7), [#allocation10], 20480   ;;  %p7266_p6 = pmov %p7265_p7 }
  0xfc   : > { %v502_v0 = vld [vmem:[#allocation9] sm:$0xff]  ;;  %v503_v1 = vld [vmem:[#allocation9 + $0x8] sm:$0xff]  ;;  %v504_v2 = vld [vmem:[#allocation9 + $0x10] sm:$0xff]  ;;  %v5635_v26 = vmov 0.0|0.0   ;;  %vm5636_vm0 = vmmov 0   ;;  %v5637_v49 = vmov 0.0  }
  0xfd   : > { %5567 = vsyncadd (%p7266_p6), [#allocation10], 4294946816  ;;  %v6096_v3 = vpack.c.bf16 %v503_v1, %v502_v0  ;;  %v505_v4 = vld [vmem:[#allocation9 + $0x18] sm:$0xff]  ;;  %v506_v6 = vld [vmem:[#allocation9 + $0x20] sm:$0xff]  ;;  %s7267_s10 = sld [smem:[#allocation46_spill]]  ;;  %vm1231_vm2 = vcmask 1046528  }
  0xfe   : > { %v6098_v5 = vpack.c.bf16 %v505_v4, %v504_v2  ;;  %v507_v7 = vld [vmem:[#allocation9 + $0x28] sm:$0xff]  ;;  %v478_v9 = vld [vmem:[%s6071_s11] sm:$0xff]  ;;  %v508_v10 = vld [vmem:[#allocation9 + $0x30] sm:$0xff]  ;;  %vm1595_vm4 = vcmask 1045504   ;;  %s7271_s27 = sld [smem:[#allocation21_spill]]  ;;  %s7318_s21 = sld [smem:[#allocation48_spill]] }
  0xff   : > { %4635 = vmatprep.subr.bf16.mxu1 %v6096_v3  ;;  %v6103_v8 = vpack.c.bf16 %v507_v7, %v506_v6  ;;  %v509_v11 = vld [vmem:[#allocation9 + $0x38] sm:$0xff]  ;;  %4012 = vmatprep.mubr.f32.mxu1 %v478_v9  ;;  %v510_v13 = vld [vmem:[#allocation9 + $0x40] sm:$0xff]  ;;  %v511_v14 = vld [vmem:[#allocation9 + $0x48] sm:$0xff]  ;;  %s3568_s28 = sshll.u32 %s6067_s22, 7  ;;  %s7319_s15 = sld [smem:[#allocation22_spill]] }
 0x100   : > { %4637 = vmatpush3.bf16.msra.mxu1 %v6096_v3  ;;  %v6108_v12 = vpack.c.bf16 %v509_v11, %v508_v10  ;;  %v6112_v15 = vpack.c.bf16 %v511_v14, %v510_v13  ;;  %v512_v16 = vld [vmem:[#allocation9 + $0x50] sm:$0xff]  ;;  %v513_v17 = vld [vmem:[#allocation9 + $0x58] sm:$0xff]  ;;  %v514_v19 = vld [vmem:[#allocation9 + $0x60] sm:$0xff]  ;;  %s7320_s2 = sld [smem:[#allocation49_spill]]  ;;  %p7321_p0 = scmp.ne.s32.totalorder %s7242_s13, 0 }
 0x101   : > { %4639 = vmatprep.subr.bf16.mxu1 %v6098_v5  ;;  %v6116_v18 = vpack.c.bf16 %v513_v17, %v512_v16  ;;  %v515_v20 = vld [vmem:[#allocation9 + $0x68] sm:$0xff]  ;;  %v516_v22 = vld [vmem:[#allocation9 + $0x70] sm:$0xff]  ;;  %v517_v23 = vld [vmem:[#allocation9 + $0x78] sm:$0xff] }
 0x102   : > { %v6120_v21 = vpack.c.bf16 %v515_v20, %v514_v19  ;;  %v6124_v24 = vpack.c.bf16 %v517_v23, %v516_v22  ;;  %v479_v25 = vld [vmem:[%s6071_s11 + $0x8] sm:$0xff]  ;;  %v480_v27 = vld [vmem:[%s6071_s11 + $0x10] sm:$0xff]  ;;  %v481_v28 = vld [vmem:[%s6071_s11 + $0x18] sm:$0xff] }
 0x103   : > { %v482_v29 = vld [vmem:[%s6071_s11 + $0x20] sm:$0xff]  ;;  %v483_v30 = vld [vmem:[%s6071_s11 + $0x28] sm:$0xff]  ;;  %v484_v31 = vld [vmem:[%s6071_s11 + $0x30] sm:$0xff]  ;;  %s7268_s3 = smov %s7267_s10 }
 0x104   : > { %4641 = vmatpush3.bf16.msra.mxu1 %v6098_v5  ;;  %v485_v32 = vld [vmem:[%s6071_s11 + $0x38] sm:$0xff]  ;;  %v486_v33 = vld [vmem:[%s6071_s11 + $0x40] sm:$0xff]  ;;  %v487_v34 = vld [vmem:[%s6071_s11 + $0x48] sm:$0xff]  ;;  %s3569_s1 = sshll.u32 %s7271_s27, 3  ;;  %s3587_s6 = sshll.u32 %s7271_s27, 4 }
 0x105   : > { %4643 = vmatprep.subr.bf16.mxu1 %v6103_v8  ;;  %v488_v35 = vld [vmem:[%s6071_s11 + $0x50] sm:$0xff]  ;;  %v489_v36 = vld [vmem:[%s6071_s11 + $0x58] sm:$0xff]  ;;  %v490_v37 = vld [vmem:[%s6071_s11 + $0x60] sm:$0xff]  ;;  %p6273_p13 = scmp.gt.s32.totalorder %s3569_s1, 0  ;;  %s6639_s16 = sadd.s32 8, %s3569_s1 }
 0x106   : > { %v491_v38 = vld [vmem:[%s6071_s11 + $0x68] sm:$0xff]  ;;  %v492_v39 = vld [vmem:[%s6071_s11 + $0x70] sm:$0xff]  ;;  %v493_v40 = vld [vmem:[%s6071_s11 + $0x78] sm:$0xff]  ;;  %p1026_p1 = scmp.lt.s32.totalorder %s6639_s16, 16 }
 0x107   : > { %v494_v41 = vld [vmem:[%s6071_s11 + $0x80] sm:$0xff]  ;;  %v495_v42 = vld [vmem:[%s6071_s11 + $0x88] sm:$0xff]  ;;  %v496_v43 = vld [vmem:[%s6071_s11 + $0x90] sm:$0xff]  ;;  %s886_s24 = scalar_select %p6273_p13, 1, 0 }
 0x108   : > { %4645 = vmatpush3.bf16.msra.mxu1 %v6103_v8  ;;  %v497_v44 = vld [vmem:[%s6071_s11 + $0x98] sm:$0xff]  ;;  %v498_v45 = vld [vmem:[%s6071_s11 + $0xa0] sm:$0xff]  ;;  %v499_v46 = vld [vmem:[%s6071_s11 + $0xa8] sm:$0xff]  ;;  %s6681_s29 = scalar_select %p1026_p1, 1, 0 }
 0x109   : > { %4647 = vmatprep.subr.bf16.mxu1 %v6108_v12  ;;  %v500_v47 = vld [vmem:[%s6071_s11 + $0xb0] sm:$0xff]  ;;  %v501_v48 = vld [vmem:[%s6071_s11 + $0xb8] sm:$0xff]  ;;  %v893_v51 = vld [vmem:[%s6079_s7 + $0x8] sm:$0xff] }
 0x10a   : > { %v892_v50 = vld [vmem:[%s6079_s7] sm:$0xff]  ;;  %v894_v52 = vld [vmem:[%s6079_s7 + $0x10] sm:$0xff]  ;;  %v1034_v54 = vld [vmem:[%s6086_s23 + $0x8] sm:$0xff] }
 0x10b   : > { %v1033_v53 = vld [vmem:[%s6086_s23] sm:$0xff]  ;;  %v1035_v55 = vld [vmem:[%s6086_s23 + $0x10] sm:$0xff]  ;;  %s7010_s23 = scalar_lea.vmem [#allocation12], %s3568_s28 }
 0x10c   : > { %4649 = vmatpush3.bf16.msra.mxu1 %v6108_v12  ;;  %v1289_v56 = vld [vmem:[#allocation11 + $0x80] sm:$0xff]  ;;  %v1290_v57 = vld [vmem:[#allocation11 + $0x88] sm:$0xff]  ;;  %v1291_v62 = vld [vmem:[#allocation11 + $0x90] sm:$0xff]  ;;  %s3387_s1 = sshll.u32 %s7010_s23, 4  ;;  %s7062_s1 = int_to_ptr.vmem [resolvable:$true] %s3387_s1 }
 0x10d   : > { %4651 = vmatprep.subr.bf16.mxu1 %v6112_v15  ;;  %v1653_v58 = vld [vmem:[#allocation11 + $0x100] sm:$0xff]  ;;  %v4714_v59 = vpack.c.bf16 %v1290_v57, %v1289_v56  ;;  %v1654_v60 = vld [vmem:[#allocation11 + $0x108] sm:$0xff]  ;;  %v1292_v63 = vld [vmem:[#allocation11 + $0x98] sm:$0xff]  ;;  %s5468_s20 = scalar_lea.vmem %s7062_s1, 2048 }
 0x10e   : > { %v4778_v61 = vpack.c.bf16 %v1654_v60, %v1653_v58  ;;  %v1655_v0 = vld [vmem:[#allocation11 + $0x110] sm:$0xff]  ;;  %v4718_v1 = vpack.c.bf16 %v1292_v63, %v1291_v62  ;;  %v1656_v2 = vld [vmem:[#allocation11 + $0x118] sm:$0xff]  ;;  %v1293_v4 = vld [vmem:[#allocation11 + $0xa0] sm:$0xff]  ;;  %p5469_p2 = scmp.ne.s32.totalorder %s7062_s1, %s5468_s20 }
 0x10f   : > { %v1657_v6 = vld [vmem:[#allocation11 + $0x120] sm:$0xff]  ;;  %v1295_v10 = vld [vmem:[#allocation11 + $0xb0] sm:$0xff]  ;;  %v1296_v11 = vld [vmem:[#allocation11 + $0xb8] sm:$0xff] }
 0x110   : > { %4653 = vmatpush3.bf16.msra.mxu1 %v6112_v15  ;;  %4779 = vmatprep.subr.bf16.mxu0 %v4778_v61  ;;  %v4726_v13 = vpack.c.bf16 %v1296_v11, %v1295_v10  ;;  %v1660_v14 = vld [vmem:[#allocation11 + $0x138] sm:$0xff]  ;;  %v1297_v16 = vld [vmem:[#allocation11 + $0xc0] sm:$0xff]  ;;  %v1298_v17 = vld [vmem:[#allocation11 + $0xc8] sm:$0xff]  ;;  %p5470_p12 = pnand %p5469_p2, %p7321_p0 }
 0x111   : > { %4655 = vmatprep.subr.bf16.mxu1 %v6116_v18  ;;  %4781 = vmatpush3.bf16.msra.mxu0 %v4778_v61  ;;  %v4730_v19 = vpack.c.bf16 %v1298_v17, %v1297_v16  ;;  %v1662_v20 = vld [vmem:[#allocation11 + $0x148] sm:$0xff]  ;;  %v1299_v22 = vld [vmem:[#allocation11 + $0xd0] sm:$0xff]  ;;  %v1300_v23 = vld [vmem:[#allocation11 + $0xd8] sm:$0xff] }
 0x112   : > { %p5471_p3 = pneg %p5470_p12 }
 0x114   : > { %4657 = vmatpush3.bf16.msra.mxu1 %v6116_v18 }
 0x115   : > { %4659 = vmatprep.subr.bf16.mxu1 %v6120_v21 }
 0x118   : > { %4661 = vmatpush3.bf16.msra.mxu1 %v6120_v21 }
 0x119   : > { %4663 = vmatprep.subr.bf16.mxu1 %v6124_v24 }
 0x11c   : > { %4665 = vmatpush3.bf16.msra.mxu1 %v6124_v24 }
 0x11d   : > { %4666 = vmatprep.subr.bf16.mxu1 %v5635_v26 }
 0x11f   : > { %4013 = vmatmul.mubr.f32.vlgmr.msra.gmra.mrb[0].mxu1 %v479_v25  ;;  %v4734_v25 = vpack.c.bf16 %v1300_v23, %v1299_v22 }
 0x120   : > { %4668 = vmatpush3.bf16.msra.mxu1 %v6096_v3  ;;  %4015 = vmatprep.mubr.f32.mxu1 %v480_v27 }
 0x121   : > { %4669 = vmatprep.subr.bf16.mxu1 %v5635_v26 }
 0x123   : > { %4016 = vmatmul.mubr.f32.gmra.mrb[2].mxu1 %v481_v28  ;;  %v1301_v28 = vld [vmem:[#allocation11 + $0xe0] sm:$0xff] }
 0x124   : > { %4018 = vmatprep.mubr.f32.mxu1 %v482_v29  ;;  %4671 = vmatpush3.bf16.msra.mxu1 %v6098_v5  ;;  %v1302_v29 = vld [vmem:[#allocation11 + $0xe8] sm:$0xff] }
 0x125   : > { %4672 = vmatprep.subr.bf16.mxu1 %v5635_v26 }
 0x127   : > { %4019 = vmatmul.mubr.f32.gmra.mrb[4].mxu1 %v483_v30  ;;  %v1665_v30 = vld [vmem:[#allocation11 + $0x160] sm:$0xff] }
 0x128   : > { %4021 = vmatprep.mubr.f32.mxu1 %v484_v31  ;;  %4674 = vmatpush3.bf16.msra.mxu1 %v6103_v8  ;;  %v4738_v31 = vpack.c.bf16 %v1302_v29, %v1301_v28 }
 0x129   : > { %4675 = vmatprep.subr.bf16.mxu1 %v5635_v26 }
 0x12b   : > { %4022 = vmatmul.mubr.f32.gmra.mrb[6].mxu1 %v485_v32  ;;  %v1666_v32 = vld [vmem:[#allocation11 + $0x168] sm:$0xff] }
 0x12c   : > { %4024 = vmatprep.mubr.f32.mxu1 %v486_v33  ;;  %4677 = vmatpush3.bf16.msra.mxu1 %v6108_v12  ;;  %v4802_v33 = vpack.c.bf16 %v1666_v32, %v1665_v30 }
 0x12d   : > { %4678 = vmatprep.subr.bf16.mxu1 %v5635_v26 }
 0x12f   : > { %4025 = vmatmul.mubr.f32.gmra.mrb[8].mxu1 %v487_v34  ;;  %v1303_v34 = vld [vmem:[#allocation11 + $0xf0] sm:$0xff] }
 0x130   : > { %4027 = vmatprep.mubr.f32.mxu1 %v488_v35  ;;  %4680 = vmatpush3.bf16.msra.mxu1 %v6112_v15  ;;  %v1304_v35 = vld [vmem:[#allocation11 + $0xf8] sm:$0xff] }
 0x131   : > { %4681 = vmatprep.subr.bf16.mxu1 %v5635_v26 }
 0x133   : > { %4028 = vmatmul.mubr.f32.gmra.mrb[10].mxu1 %v489_v36  ;;  %v1667_v36 = vld [vmem:[#allocation11 + $0x170] sm:$0xff] }
 0x134   : > { %4030 = vmatprep.mubr.f32.mxu1 %v490_v37  ;;  %4683 = vmatpush3.bf16.msra.mxu1 %v6116_v18  ;;  %v4742_v37 = vpack.c.bf16 %v1304_v35, %v1303_v34 }
 0x135   : > { %4684 = vmatprep.subr.bf16.mxu1 %v5635_v26 }
 0x137   : > { %4031 = vmatmul.mubr.f32.gmra.mrb[12].mxu1 %v491_v38  ;;  %v1668_v38 = vld [vmem:[#allocation11 + $0x178] sm:$0xff] }
 0x138   : > { %4033 = vmatprep.mubr.f32.mxu1 %v492_v39  ;;  %4686 = vmatpush3.bf16.msra.mxu1 %v6120_v21  ;;  %v4806_v39 = vpack.c.bf16 %v1668_v38, %v1667_v36 }
 0x139   : > { %4687 = vmatprep.subr.bf16.mxu1 %v5635_v26 }
 0x13b   : > { %4034 = vmatmul.mubr.f32.gmra.mrb[14].mxu1 %v493_v40  ;;  %v1191_v40 = vld [vmem:[#allocation11] sm:$0xff] }
 0x13c   : > { %4036 = vmatprep.mubr.f32.mxu1 %v494_v41  ;;  %4689 = vmatpush3.bf16.msra.mxu1 %v6124_v24  ;;  %v1192_v41 = vld [vmem:[#allocation11 + $0x8] sm:$0xff] }
 0x13d   : > { %4690 = vmatprep.subr.bf16.mxu1 %v5635_v26 }
 0x13f   : > { %4037 = vmatmul.mubr.f32.gmra.mrb[16].mxu1 %v495_v42  ;;  %v1855_v42 = vld [vmem:[#allocation11 + $0x180] sm:$0xff] }
 0x140   : > { %4039 = vmatprep.mubr.f32.mxu1 %v496_v43  ;;  %v6196_v43 = vpack.c.bf16 %v1192_v41, %v1191_v40 }
 0x143   : > { %4040 = vmatmul.mubr.f32.gmra.mrb[18].mxu1 %v497_v44  ;;  %v1856_v44 = vld [vmem:[#allocation11 + $0x188] sm:$0xff] }
 0x144   : > { %4042 = vmatprep.mubr.f32.mxu1 %v498_v45  ;;  %v6198_v45 = vpack.c.bf16 %v1856_v44, %v1855_v42 }
 0x147   : > { %4043 = vmatmul.mubr.f32.gmra.mrb[20].mxu1 %v499_v46  ;;  %v6205_v46 = vld [vmem:[%s7267_s10] ss:$0 sm:$0xff]  ;;  %s3577_s10 = sshll.u32 %s7319_s15, 5 }
 0x148   : > { %4045 = vmatprep.mubr.f32.mxu1 %v500_v47  ;;  %s3384_s27 = sadd.s32 %s3587_s6, %s3577_s10 }
 0x149   : > { %s3578_s19 = sshll.u32 %s3384_s27, 7 }
 0x14a   : > { %s7067_s16 = scalar_lea.hbm %s7320_s2, %s3578_s19 }
 0x14b   : > { %4046 = vmatmul.mubr.f32.gmra.mrb[22].mxu1 %v501_v48 }
 0x14c   : > { %4080 = vmatprep.mubr.msk.f32.mxu1 %vm5636_vm0, %v5637_v49 }
 0x14f   : > { %4081 = vmatmul.mubr.f32.vlgmr.msra.gmra.mrb[24].mxu1 %v892_v50 }
 0x150   : > { %4083 = vmatprep.mubr.msk.f32.mxu1 %vm5636_vm0, %v5637_v49  ;;  %4692 = vmatpush3.bf16.msra.mxu1 %v6096_v3  ;;  %v4782_v3 = vpack.c.bf16 %v1656_v2, %v1655_v0 }
 0x151   : > { %4693 = vmatprep.subr.bf16.mxu1 %v5635_v26 }
 0x152   : > { %4783 = vmatprep.subr.bf16.mxu0 %v4782_v3 }
 0x153   : > { %4084 = vmatmul.mubr.f32.gmra.mrb[26].mxu1 %v893_v51  ;;  %4785 = vmatpush3.bf16.msra.mxu0 %v4782_v3 }
 0x154   : > { %4086 = vmatprep.mubr.msk.f32.mxu1 %vm5636_vm0, %v5637_v49  ;;  %4695 = vmatpush3.bf16.msra.mxu1 %v6098_v5  ;;  %v1294_v5 = vld [vmem:[#allocation11 + $0xa8] sm:$0xff] }
 0x155   : > { %4696 = vmatprep.subr.bf16.mxu1 %v5635_v26  ;;  %v4722_v7 = vpack.c.bf16 %v1294_v5, %v1293_v4 }
 0x157   : > { %4087 = vmatmul.mubr.f32.gmra.mrb[28].mxu1 %v894_v52  ;;  %v465_v52 = vlaneseq }
 0x158   : > { %4698 = vmatpush3.bf16.msra.mxu1 %v6103_v8  ;;  %4121 = vmatprep.mubr.msk.f32.mxu1 %vm5636_vm0, %v5637_v49  ;;  %v1658_v8 = vld [vmem:[#allocation11 + $0x128] sm:$0xff] }
 0x159   : > { %4699 = vmatprep.subr.bf16.mxu1 %v5635_v26  ;;  %v4786_v9 = vpack.c.bf16 %v1658_v8, %v1657_v6  ;;  %v6210_v60 = vshrl.u32 %v465_v52, 7 }
 0x15b   : > { %4787 = vmatprep.subr.bf16.mxu0 %v4786_v9  ;;  %v6215_v5 = vadd.s32 16, %v6210_v60  ;;  %vm469_vm1 = vcmp.ge.s32.totalorder %v6210_v60, 1 }
 0x15c   : > { %4701 = vmatpush3.bf16.msra.mxu1 %v6108_v12  ;;  %v1659_v12 = vld [vmem:[#allocation11 + $0x130] sm:$0xff]  ;;  %4789 = vmatpush3.bf16.msra.mxu0 %v4786_v9 }
 0x15d   : > { %4702 = vmatprep.subr.bf16.mxu1 %v5635_v26  ;;  %vm474_vm3 = vcmp.le.s32.totalorder %v6215_v5, 16  ;;  %v2357_v5 = vld [vmem:[#allocation11 + $0x2d0] sm:$0xff] }
 0x160   : > { %4704 = vmatpush3.bf16.msra.mxu1 %v6112_v15  ;;  %v4790_v15 = vpack.c.bf16 %v1660_v14, %v1659_v12 }
 0x161   : > { %4705 = vmatprep.subr.bf16.mxu1 %v5635_v26 }
 0x162   : > { %4791 = vmatprep.subr.bf16.mxu0 %v4790_v15 }
 0x163   : > { %4793 = vmatpush3.bf16.msra.mxu0 %v4790_v15 }
 0x164   : > { %4707 = vmatpush3.bf16.msra.mxu1 %v6116_v18  ;;  %v1661_v18 = vld [vmem:[#allocation11 + $0x140] sm:$0xff] }
 0x165   : > { %4708 = vmatprep.subr.bf16.mxu1 %v5635_v26 }
 0x168   : > { %4710 = vmatpush3.bf16.msra.mxu1 %v6120_v21  ;;  %v4794_v21 = vpack.c.bf16 %v1662_v20, %v1661_v18 }
 0x169   : > { %4711 = vmatprep.subr.bf16.mxu1 %v5635_v26  ;;  %v1664_v26 = vld [vmem:[#allocation11 + $0x158] sm:$0xff] }
 0x16a   : > { %4795 = vmatprep.subr.bf16.mxu0 %v4794_v21 }
 0x16b   : > { %4797 = vmatpush3.bf16.msra.mxu0 %v4794_v21 }
 0x16c   : > { %4713 = vmatpush3.bf16.msra.mxu1 %v6124_v24  ;;  %v1663_v24 = vld [vmem:[#allocation11 + $0x150] sm:$0xff] }
 0x16d   : > { %4715 = vmatprep.subr.bf16.mxu1 %v4714_v59  ;;  %v4798_v27 = vpack.c.bf16 %v1664_v26, %v1663_v24 }
 0x16f   : > { %4122 = vmatmul.mubr.f32.vlgmr.msra.gmra.mrb[30].mxu1 %v1033_v53  ;;  %4799 = vmatprep.subr.bf16.mxu0 %v4798_v27 }
 0x170   : > { %4124 = vmatprep.mubr.msk.f32.mxu1 %vm5636_vm0, %v5637_v49  ;;  %4717 = vmatpush3.bf16.msra.mxu1 %v4714_v59 }
 0x171   : > { %4719 = vmatprep.subr.bf16.mxu1 %v4718_v1  ;;  %4801 = vmatpush3.bf16.msra.mxu0 %v4798_v27 }
 0x172   : > { %4803 = vmatprep.subr.bf16.mxu0 %v4802_v33 }
 0x173   : > { %4125 = vmatmul.mubr.f32.gmra.mrb[32].mxu1 %v1034_v54 }
 0x174   : > { %4127 = vmatprep.mubr.msk.f32.mxu1 %vm5636_vm0, %v5637_v49  ;;  %4721 = vmatpush3.bf16.msra.mxu1 %v4718_v1 }
 0x175   : > { %4723 = vmatprep.subr.bf16.mxu1 %v4722_v7  ;;  %4805 = vmatpush3.bf16.msra.mxu0 %v4802_v33 }
 0x176   : > { %4807 = vmatprep.subr.bf16.mxu0 %v4806_v39 }
 0x177   : > { %4128 = vmatmul.mubr.f32.gmra.mrb[34].mxu1 %v1035_v55 }
 0x178   : > { %4725 = vmatpush3.bf16.msra.mxu1 %v4722_v7 }
 0x179   : > { %4727 = vmatprep.subr.bf16.mxu1 %v4726_v13  ;;  %4809 = vmatpush3.bf16.msra.mxu0 %v4806_v39 }
 0x17a   : > { %4811 = vmatprep.subr.bf16.mxu0 %v6198_v45 }
 0x17c   : > { %4729 = vmatpush3.bf16.msra.mxu1 %v4726_v13 }
 0x17d   : > { %4731 = vmatprep.subr.bf16.mxu1 %v4730_v19 }
 0x180   : > { %4733 = vmatpush3.bf16.msra.mxu1 %v4730_v19 }
 0x181   : > { %4735 = vmatprep.subr.bf16.mxu1 %v4734_v25 }
 0x184   : > { %4737 = vmatpush3.bf16.msra.mxu1 %v4734_v25 }
 0x185   : > { %4739 = vmatprep.subr.bf16.mxu1 %v4738_v31 }
 0x188   : > { %4741 = vmatpush3.bf16.msra.mxu1 %v4738_v31 }
 0x189   : > { %4743 = vmatprep.subr.bf16.mxu1 %v4742_v37 }
 0x18c   : > { %4745 = vmatpush3.bf16.msra.mxu1 %v4742_v37 }
 0x18d   : > { %4747 = vmatprep.subr.bf16.mxu1 %v6196_v43 }
 0x1f2   : > { %v4014_v47 = vpop.f32.mrb[0].mxu1 }
 0x1f3   : > { %v597_v48 = vadd.f32 %v4014_v47, %v6205_v46  ;;  %v591_v49 = vpop.f32.mrb[1].mxu1 }
 0x1f4   : > { %v592_v50 = vadd.f32 %v6205_v46, %v591_v49 }
 0x1f5   : > { %v711_v51 = vadd.f32 3.0, %v597_v48 }
 0x1f6   : > { %v710_v53 = vadd.f32 3.0, %v592_v50  ;;  %v4017_v54 = vpop.f32.mrb[2].mxu1 }
 0x1f7   : > { %v735_v55 = vmax.f32 %v711_v51, 0.0  ;;  %v601_v56 = vpop.f32.mrb[3].mxu1  ;;  %v607_v34 = vadd.f32 %v4017_v54, %v6205_v46 }
 0x1f8   : > { %v734_v57 = vmax.f32 %v710_v53, 0.0  ;;  %v602_v58 = vadd.f32 %v6205_v46, %v601_v56  ;;  %v1193_v56 = vld [vmem:[#allocation11 + $0x10] sm:$0xff] }
 0x1f9   : > { %v759_v59 = vmin.f32 %v735_v55, 6.0  ;;  %v713_v40 = vadd.f32 3.0, %v607_v34 }
 0x1fa   : > { %v758_v61 = vmin.f32 %v734_v57, 6.0  ;;  %v712_v62 = vadd.f32 3.0, %v602_v58  ;;  %v4020_v63 = vpop.f32.mrb[4].mxu1  ;;  %v1194_v57 = vld [vmem:[#allocation11 + $0x18] sm:$0xff] }
 0x1fb   : > { %v783_v0 = vmul.f32 %v759_v59, %v597_v48  ;;  %v611_v1 = vpop.f32.mrb[5].mxu1  ;;  %v617_v29 = vadd.f32 %v4020_v63, %v6205_v46  ;;  %v1858_v63 = vld [vmem:[#allocation11 + $0x198] sm:$0xff] }
 0x1fc   : > { %v782_v2 = vmul.f32 %v758_v61, %v592_v50  ;;  %v736_v3 = vmax.f32 %v712_v62, 0.0  ;;  %v6255_v36 = vadd.f32 %v6205_v46, %v611_v1  ;;  %v737_v50 = vmax.f32 %v713_v40, 0.0  ;;  %v1857_v62 = vld [vmem:[#allocation11 + $0x190] sm:$0xff]  ;;  %v1199_v40 = vld [vmem:[#allocation11 + $0x40] sm:$0xff] }
 0x1fd   : > { %v6212_v4 = vmul.f32 0.16666667, %v783_v0  ;;  %v715_v33 = vadd.f32 3.0, %v617_v29  ;;  %v1195_v0 = vld [vmem:[#allocation11 + $0x20] sm:$0xff] }
 0x1fe   : > { %v6218_v6 = vmul.f32 0.16666667, %v782_v2  ;;  %v760_v7 = vmin.f32 %v736_v3, 6.0  ;;  %v4023_v8 = vpop.f32.mrb[6].mxu1  ;;  %v714_v44 = vadd.f32 3.0, %v6255_v36  ;;  %v1196_v2 = vld [vmem:[#allocation11 + $0x28] sm:$0xff] }
 0x1ff   : > { %7269 = vst [vmem:[#allocation31_spill] sm:$0xff] %v6212_v4  ;;  %v621_v9 = vpop.f32.mrb[7].mxu1  ;;  %v1238_v13 = vrot.slane %v6212_v4, 1  ;;  %v1602_v24 = vrot.slane %v6212_v4, 2  ;;  %v739_v38 = vmax.f32 %v715_v33, 0.0  ;;  %v6261_v39 = vadd.f32 %v4023_v8, %v6205_v46  ;;  %v1859_v3 = vld [vmem:[#allocation11 + $0x1a0] sm:$0xff] }
 0x200   : > { %7270 = vst [vmem:[#allocation32_spill] sm:$0xff] %v6218_v6  ;;  %v784_v10 = vmul.f32 %v760_v7, %v602_v58  ;;  %v836_v11 = vsel %vm469_vm1, %v6218_v6, 0.0  ;;  %v6264_v41 = vadd.f32 %v6205_v46, %v621_v9  ;;  %v738_v54 = vmax.f32 %v714_v44, 0.0  ;;  %v1860_v7 = vld [vmem:[#allocation11 + $0x1a8] sm:$0xff] }
 0x201   : > { %v1237_v12 = vrot.slane %v836_v11, 1  ;;  %v1601_v21 = vrot.slane %v836_v11, 2  ;;  %v763_v48 = vmin.f32 %v739_v38, 6.0  ;;  %v717_v49 = vadd.f32 3.0, %v6261_v39  ;;  %v1200_v44 = vld [vmem:[#allocation11 + $0x48] sm:$0xff] }
 0x202   : > { %v808_v14 = vmul.f32 0.16666667, %v784_v10  ;;  %v4026_v15 = vpop.f32.mrb[8].mxu1  ;;  %v716_v51 = vadd.f32 3.0, %v6264_v41  ;;  %v761_v8 = vmin.f32 %v737_v50, 6.0  ;;  %v6309_v50 = vpack.c.bf16 %v1196_v2, %v1195_v0 }
 0x203   : > { %v631_v16 = vpop.f32.mrb[9].mxu1  ;;  %v6226_v17 = vsel %vm1231_vm2, %v1237_v12, %v1238_v13  ;;  %v6236_v26 = vsel %vm1595_vm4, %v1601_v21, %v1602_v24  ;;  %v787_v58 = vmul.f32 %v763_v48, %v617_v29  ;;  %v6287_v59 = vadd.f32 %v4026_v15, %v6205_v46  ;;  %v1863_v48 = vld [vmem:[#allocation11 + $0x1c0] sm:$0xff] }
 0x204   : > { %v838_v18 = vsel %vm474_vm3, %v808_v14, 0.0  ;;  %v6280_v52 = vadd.f32 %v6205_v46, %v631_v16  ;;  %v741_v1 = vmax.f32 %v717_v49, 0.0  ;;  %v740_v9 = vmax.f32 %v716_v51, 0.0  ;;  %v1198_v14 = vld [vmem:[#allocation11 + $0x38] sm:$0xff] }
 0x205   : > { %v1240_v19 = vrot.slane %v838_v18, 1  ;;  %v1604_v23 = vrot.slane %v838_v18, 2  ;;  %v762_v15 = vmin.f32 %v738_v54, 6.0  ;;  %v6296_v18 = vstv %s886_s24  ;;  %v1864_v54 = vld [vmem:[#allocation11 + $0x1c8] sm:$0xff] }
 0x206   : > { %v4029_v20 = vpop.f32.mrb[10].mxu1  ;;  %v718_v10 = vadd.f32 3.0, %v6280_v52  ;;  %7274 = vst [vmem:[#allocation34_spill] sm:$0xff] %v6296_v18  ;;  %v6300_v21 = vpack.c.bf16 %v1858_v63, %v1857_v62  ;;  %v811_v29 = vmul.f32 0.16666667, %v787_v58  ;;  %v719_v33 = vadd.f32 3.0, %v6287_v59 }
 0x207   : > { %v6230_v22 = vpop.f32.mrb[11].mxu1  ;;  %v6239_v27 = vsel %vm1231_vm2, %v1238_v13, %v1240_v19  ;;  %v6245_v30 = vsel %vm1595_vm4, %v1602_v24, %v1604_v23  ;;  %v6294_v11 = vadd.f32 %v4029_v20, %v6205_v46  ;;  %v1197_v13 = vld [vmem:[#allocation11 + $0x30] sm:$0xff]  ;;  %v6298_v19 = vpack.c.bf16 %v1194_v57, %v1193_v56  ;;  %v1862_v24 = vld [vmem:[#allocation11 + $0x1b8] sm:$0xff] }
 0x208   : > { %v1861_v23 = vld [vmem:[#allocation11 + $0x1b0] sm:$0xff]  ;;  %v765_v49 = vmin.f32 %v741_v1, 6.0  ;;  %v6311_v51 = vpack.c.bf16 %v1860_v7, %v1859_v3  ;;  %v1202_v57 = vld [vmem:[#allocation11 + $0x58] sm:$0xff]  ;;  %v785_v58 = vmul.f32 %v761_v8, %v607_v34  ;;  %v764_v62 = vmin.f32 %v740_v9, 6.0 }
 0x209   : > { %v1201_v56 = vld [vmem:[#allocation11 + $0x50] sm:$0xff]  ;;  %v742_v63 = vmax.f32 %v718_v10, 0.0  ;;  %vm888_vm5 = vcmp.eq.s32.totalorder %v6296_v18, 1  ;;  %v6319_v2 = vpack.c.bf16 %v1862_v24, %v1861_v23  ;;  %v6321_v3 = vpack.c.bf16 %v1200_v44, %v1199_v40  ;;  %v1204_v10 = vld [vmem:[#allocation11 + $0x68] sm:$0xff] }
 0x20a   : > { %v6233_v25 = vpop.f32.mrb[12].mxu1  ;;  %v6325_v34 = vsel %vm474_vm3, %v811_v29, 0.0  ;;  %v743_v7 = vmax.f32 %v719_v33, 0.0  ;;  %v6329_v8 = vadd.f32 %v6205_v46, %v6230_v22  ;;  %v6331_v9 = vpack.c.bf16 %v1864_v54, %v1863_v48  ;;  %vm6383_vm6 = vmand %vm469_vm1, %vm888_vm5 }
 0x20b   : > { %v6241_v28 = vpop.f32.mrb[13].mxu1  ;;  %v6338_v24 = vmul.f32 0.16666667, %v785_v58  ;;  %v788_v29 = vmul.f32 %v764_v62, %v6264_v41  ;;  %v766_v33 = vmin.f32 %v742_v63, 6.0  ;;  %vm891_vm7 = vmand %vm474_vm3, %vm888_vm5 }
 0x20d   : > { %7277 = vst [vmem:[#allocation37_spill] sm:$0xff] %v6338_v24  ;;  %v6359_v58 = vmul.f32 0.16666667, %v788_v29  ;;  %v790_v62 = vmul.f32 %v766_v33, %v6280_v52 }
 0x20e   : > { %v6247_v31 = vpop.f32.mrb[14].mxu1 }
 0x20f   : > { %v6249_v32 = vpop.f32.mrb[15].mxu1 }
 0x212   : > { %v6252_v35 = vpop.f32.mrb[16].mxu1 }
 0x213   : > { %v6257_v37 = vpop.f32.mrb[17].mxu1 }
 0x216   : > { %v6266_v42 = vpop.f32.mrb[18].mxu1 }
 0x217   : > { %v6269_v47 = vpop.f32.mrb[19].mxu1 }
 0x21a   : > { %v4044_v53 = vpop.f32.mrb[20].mxu1 }
 0x21b   : > { %v6282_v55 = vpop.f32.mrb[21].mxu1  ;;  %v6290_v61 = vadd.f32 %v4044_v53, %v6205_v46  ;;  %v6313_v53 = vpack.c.bf16 %v1198_v14, %v1197_v13  ;;  %v789_v13 = vmul.f32 %v765_v49, %v6261_v39  ;;  %v767_v39 = vmin.f32 %v743_v7, 6.0 }
 0x21c   : > { %v720_v49 = vadd.f32 3.0, %v6329_v8 }
 0x21d   : > { %7273 = vst [vmem:[#allocation33_spill] sm:$0xff] %v6290_v61  ;;  %v786_v61 = vmul.f32 %v762_v15, %v6255_v36  ;;  %v1203_v36 = vld [vmem:[#allocation11 + $0x60] sm:$0xff]  ;;  %v6334_v15 = vpack.c.bf16 %v1202_v57, %v1201_v56  ;;  %v6353_v56 = vmul.f32 0.16666667, %v789_v13 }
 0x21e   : > { %v4047_v12 = vpop.f32.mrb[22].mxu1  ;;  %v744_v29 = vmax.f32 %v720_v49, 0.0 }
 0x21f   : > { %v701_v16 = vpop.f32.mrb[23].mxu1  ;;  %v6304_v38 = vadd.f32 %v4047_v12, %v6205_v46  ;;  %v721_v12 = vadd.f32 3.0, %v6294_v11  ;;  %v6342_v48 = vmul.f32 0.16666667, %v786_v61  ;;  %v6357_v61 = vadd.f32 %v6205_v46, %v6241_v28 }
 0x220   : > { %v6307_v20 = vadd.f32 %v6205_v46, %v701_v16  ;;  %v6370_v28 = vsel %vm469_vm1, %v6338_v24, 0.0  ;;  %v6438_v24 = vadd.f32 %v6266_v42, %v6205_v46 }
 0x221   : > { %7275 = vst [vmem:[#allocation35_spill] sm:$0xff] %v6304_v38  ;;  %v1865_v38 = vld [vmem:[#allocation11 + $0x1d0] sm:$0xff]  ;;  %v745_v40 = vmax.f32 %v721_v12, 0.0  ;;  %v1242_v49 = vrot.slane %v6370_v28, 1 }
 0x222   : > { %7276 = vst [vmem:[#allocation36_spill] sm:$0xff] %v6307_v20  ;;  %v984_v16 = vpop.f32.mrb[24].mxu1  ;;  %v1866_v20 = vld [vmem:[#allocation11 + $0x1d8] sm:$0xff] }
 0x223   : > { %v985_v0 = vadd.f32 %v6205_v46, %v984_v16  ;;  %v4082_v1 = vpop.f32.mrb[25].mxu1  ;;  %v6336_v23 = vpack.c.bf16 %v1866_v20, %v1865_v38  ;;  %v6349_v38 = vadd.f32 %v6233_v25, %v6205_v46  ;;  %v769_v63 = vmin.f32 %v745_v40, 6.0 }
 0x224   : > { %v6344_v1 = vpack.c.bf16 %v1204_v10, %v1203_v36  ;;  %v6364_v25 = vadd.f32 %v6205_v46, %v6249_v32  ;;  %v722_v40 = vadd.f32 3.0, %v6357_v61 }
 0x225   : > { %v998_v14 = vadd.f32 3.0, %v985_v0  ;;  %v723_v52 = vadd.f32 3.0, %v6349_v38 }
 0x226   : > { %v989_v44 = vpop.f32.mrb[26].mxu1  ;;  %v746_v20 = vmax.f32 %v722_v40, 0.0 }
 0x227   : > { %v1001_v54 = vmax.f32 %v998_v14, 0.0  ;;  %v4085_v16 = vpop.f32.mrb[27].mxu1  ;;  %v990_v41 = vadd.f32 %v6205_v46, %v989_v44  ;;  %v791_v14 = vmul.f32 %v767_v39, %v6287_v59 }
 0x228   : > { %v793_v16 = vmul.f32 %v769_v63, %v6294_v11  ;;  %v6395_v11 = vadd.f32 %v6252_v35, %v6205_v46 }
 0x229   : > { %v1004_v57 = vmin.f32 %v1001_v54, 6.0  ;;  %v999_v12 = vadd.f32 3.0, %v990_v41  ;;  %v814_v54 = vmul.f32 0.16666667, %v790_v62  ;;  %v6397_v63 = vmul.f32 0.16666667, %v791_v14 }
 0x22a   : > { %v994_v7 = vpop.f32.mrb[28].mxu1  ;;  %v817_v14 = vmul.f32 0.16666667, %v793_v16 }
 0x22b   : > { %v1007_v36 = vmul.f32 %v1004_v57, %v985_v0  ;;  %v995_v10 = vadd.f32 %v6205_v46, %v994_v7  ;;  %v4088_v13 = vpop.f32.mrb[29].mxu1  ;;  %v1002_v33 = vmax.f32 %v999_v12, 0.0  ;;  %v7183_v0 = vrot.slane %v6342_v48, 1 }
 0x22c   : > { %v6390_v57 = vadd.f32 %v6247_v31, %v6205_v46  ;;  %v724_v12 = vadd.f32 3.0, %v6364_v25  ;;  %v768_v7 = vmin.f32 %v744_v29, 6.0  ;;  %v6409_v35 = vsel %vm474_vm3, %v814_v54, 0.0 }
 0x22d   : > { %v6375_v44 = vmul.f32 0.16666667, %v1007_v36  ;;  %v1000_v32 = vadd.f32 3.0, %v995_v10  ;;  %v1005_v39 = vmin.f32 %v1002_v33, 6.0  ;;  %v747_v36 = vmax.f32 %v723_v52, 0.0 }
 0x22e   : > { %v6405_v31 = vsel %vm1231_vm2, %v1242_v49, %v7183_v0  ;;  %v6413_v29 = vadd.f32 %v6205_v46, %v6257_v37  ;;  %v725_v52 = vadd.f32 3.0, %v6390_v57  ;;  %v748_v40 = vmax.f32 %v724_v12, 0.0 }
 0x22f   : > { %v1003_v62 = vmax.f32 %v1000_v32, 0.0  ;;  %v1008_v13 = vmul.f32 %v1005_v39, %v990_v41  ;;  %v1019_v33 = vsel %vm6383_vm6, %v6375_v44, 0.0  ;;  %v727_v32 = vadd.f32 3.0, %v6395_v11 }
 0x230   : > { %v6421_v49 = vadd.f32 %v6205_v46, %v6269_v47  ;;  %v6425_v54 = vadd.f32 %v6205_v46, %v6282_v55  ;;  %v1232_v16 = vrot.slane %v1019_v33, 1  ;;  %v792_v47 = vmul.f32 %v768_v7, %v6329_v8 }
 0x231   : > { %v1006_v22 = vmin.f32 %v1003_v62, 6.0  ;;  %v6415_v41 = vmul.f32 0.16666667, %v1008_v13  ;;  %v771_v13 = vmin.f32 %v747_v36, 6.0  ;;  %v770_v0 = vmin.f32 %v746_v20, 6.0 }
 0x232   : > { %v726_v55 = vadd.f32 3.0, %v6413_v29  ;;  %v749_v6 = vmax.f32 %v725_v52, 0.0  ;;  %v1250_v8 = vrot.slane %v6409_v35, 1  ;;  %v772_v20 = vmin.f32 %v748_v40, 6.0 }
 0x233   : > { %7280 = vst [vmem:[#allocation38_spill] sm:$0xff] %v6415_v41  ;;  %v1009_v39 = vmul.f32 %v1006_v22, %v995_v10  ;;  %v1020_v37 = vsel %vm888_vm5, %v6415_v41, 0.0  ;;  %v1596_v10 = vrot.slane %v1019_v33, 2  ;;  %v751_v7 = vmax.f32 %v727_v32, 0.0 }
 0x234   : > { %v1233_v12 = vrot.slane %v1020_v37, 1  ;;  %v1597_v62 = vrot.slane %v1020_v37, 2  ;;  %v730_v36 = vadd.f32 3.0, %v6425_v54  ;;  %v1614_v46 = vrot.slane %v6409_v35, 2 }
 0x235   : > { %v1012_v22 = vmul.f32 0.16666667, %v1009_v39  ;;  %v728_v39 = vadd.f32 3.0, %v6421_v49  ;;  %v795_v42 = vmul.f32 %v771_v13, %v6349_v38  ;;  %v773_v40 = vmin.f32 %v749_v6, 6.0 }
 0x236   : > { %v1234_v18 = vsel %vm1231_vm2, %v1232_v16, %v1233_v12  ;;  %v1598_v41 = vsel %vm1595_vm4, %v1596_v10, %v1597_v62  ;;  %v1607_v38 = vrot.slane %v6342_v48, 2  ;;  %v754_v10 = vmax.f32 %v730_v36, 0.0 }
 0x237   : > { %v1021_v4 = vsel %vm891_vm7, %v1012_v22, 0.0  ;;  %4162 = vmatprep.mubr.f32.mxu1 %v1234_v18  ;;  %4274 = vmatprep.mubr.f32.mxu0 %v1598_v41  ;;  %v6451_v22 = vsel %vm474_vm3, %v817_v14, 0.0  ;;  %v750_v18 = vmax.f32 %v726_v55, 0.0  ;;  %v729_v41 = vadd.f32 3.0, %v6438_v24 }
 0x238   : > { %v1235_v33 = vrot.slane %v1021_v4, 1  ;;  %v1599_v37 = vrot.slane %v1021_v4, 2  ;;  %v794_v4 = vmul.f32 %v770_v0, %v6357_v61  ;;  %v752_v32 = vmax.f32 %v728_v39, 0.0 }
 0x239   : > { %v842_v14 = vsel %vm469_vm1, %v6359_v58, 0.0  ;;  %v796_v61 = vmul.f32 %v772_v20, %v6364_v25  ;;  %v775_v0 = vmin.f32 %v751_v7, 6.0  ;;  %v1255_v6 = vrot.slane %v6451_v22, 1 }
 0x23a   : > { %v1236_v16 = vsel %vm1231_vm2, %v1233_v12, %v1235_v33  ;;  %v1600_v52 = vsel %vm1595_vm4, %v1597_v62, %v1599_v37  ;;  %v6461_v12 = vmul.f32 0.16666667, %v792_v47  ;;  %v6468_v62 = vmul.f32 0.16666667, %v795_v42  ;;  %v7288_v59 = vld [vmem:[#allocation38_spill] sm:$0xff] }
 0x23b   : > { %4163 = vmatmul.mubr.f32.vlgmr.msra.gmra.mrb[36].mxu1 %v1236_v16  ;;  %4275 = vmatmul.mubr.f32.vlgmr.msra.gmra.mrb[0].mxu0 %v1600_v52  ;;  %v1606_v47 = vrot.slane %v6370_v28, 2  ;;  %v6473_v13 = vmul.f32 0.16666667, %v794_v4  ;;  %v774_v25 = vmin.f32 %v750_v18, 6.0  ;;  %v753_v55 = vmax.f32 %v729_v41, 0.0 }
 0x23c   : > { %4165 = vmatprep.mubr.f32.mxu1 %v6226_v17  ;;  %4749 = vmatpush3.bf16.msra.mxu1 %v6196_v43  ;;  %v1619_v43 = vrot.slane %v6451_v22, 2  ;;  %v797_v39 = vmul.f32 %v773_v40, %v6390_v57  ;;  %v776_v33 = vmin.f32 %v752_v32, 6.0  ;;  %v1611_v28 = vrot.slane %v842_v14, 2 }
 0x23d   : > { %4277 = vmatprep.mubr.f32.mxu0 %v6236_v26  ;;  %4813 = vmatpush3.bf16.msra.mxu0 %v6198_v45  ;;  %v1247_v45 = vrot.slane %v842_v14, 1  ;;  %v6481_v37 = vsel %vm1595_vm4, %v1606_v47, %v1607_v38  ;;  %v820_v20 = vmul.f32 0.16666667, %v796_v61  ;;  %v799_v7 = vmul.f32 %v775_v0, %v6395_v11 }
 0x23e   : > { %4751 = vmatprep.subr.bf16.mxu1 %v6298_v19  ;;  %4815 = vmatprep.subr.bf16.mxu0 %v6300_v21  ;;  %v778_v36 = vmin.f32 %v754_v10, 6.0  ;;  %v1248_v42 = vrot.slane %v6353_v56, 1  ;;  %v7281_v57 = vrot.slane %v6325_v34, 1  ;;  %v7282_v16 = vrot.slane %v6342_v48, 1 }
 0x23f   : > { %4166 = vmatmul.mubr.f32.gmra.mrb[38].mxu1 %v6239_v27  ;;  %4278 = vmatmul.mubr.f32.gmra.mrb[2].mxu0 %v6245_v30  ;;  %v7283_v52 = vrot.slane %v6325_v34, 2  ;;  %v845_v4 = vsel %vm469_vm1, %v6397_v63, 0.0  ;;  %v798_v41 = vmul.f32 %v774_v25, %v6413_v29  ;;  %v777_v40 = vmin.f32 %v753_v55, 6.0 }
 0x240   : > { %4168 = vmatprep.mubr.f32.mxu1 %v6405_v31  ;;  %4753 = vmatpush3.bf16.msra.mxu1 %v6298_v19  ;;  %v6492_v19 = vsel %vm1231_vm2, %v7282_v16, %v7281_v57  ;;  %v6511_v34 = vsel %vm1231_vm2, %v1247_v45, %v1248_v42  ;;  %v1253_v32 = vrot.slane %v6461_v12, 1  ;;  %v800_v14 = vmul.f32 %v776_v33, %v6421_v49 }
 0x241   : > { %4280 = vmatprep.mubr.f32.mxu0 %v6481_v37  ;;  %4817 = vmatpush3.bf16.msra.mxu0 %v6300_v21  ;;  %v6498_v11 = vsel %vm1595_vm4, %v1607_v38, %v7283_v52  ;;  %v1612_v21 = vrot.slane %v6353_v56, 2  ;;  %v1617_v29 = vrot.slane %v6461_v12, 2  ;;  %v848_v0 = vsel %vm469_vm1, %v6473_v13, 0.0 }
 0x242   : > { %4755 = vmatprep.subr.bf16.mxu1 %v6309_v50  ;;  %4819 = vmatprep.subr.bf16.mxu0 %v6311_v51  ;;  %v6505_v18 = vpop.f32.mrb[30].mxu1  ;;  %v6526_v10 = vsel %vm474_vm3, %v820_v20, 0.0  ;;  %v823_v47 = vmul.f32 0.16666667, %v799_v7  ;;  %v802_v49 = vmul.f32 %v778_v36, %v6425_v54  ;;  %v6531_v25 = vmul.f32 0.16666667, %v797_v39 }
 0x243   : > { %4169 = vmatmul.mubr.f32.gmra.mrb[40].mxu1 %v6492_v19  ;;  %4281 = vmatmul.mubr.f32.gmra.mrb[4].mxu0 %v6498_v11  ;;  %v4123_v38 = vpop.f32.mrb[31].mxu1  ;;  %v6518_v61 = vsel %vm1595_vm4, %v1611_v28, %v1612_v21  ;;  %v6536_v55 = vsel %vm1231_vm2, %v1248_v42, %v1250_v8  ;;  %v6542_v45 = vsel %vm1595_vm4, %v1612_v21, %v1614_v46  ;;  %v1616_v54 = vrot.slane %v845_v4, 2  ;;  %v1867_v36 = vld [vmem:[#allocation11 + $0x1e0] sm:$0xff]  ;;  %v1868_v42 = vld [vmem:[#allocation11 + $0x1e8] sm:$0xff] }
 0x244   : > { %4171 = vmatprep.mubr.f32.mxu1 %v6511_v34  ;;  %4757 = vmatpush3.bf16.msra.mxu1 %v6309_v50  ;;  %7284 = vst [vmem:[#allocation39_spill] sm:$0xff] %v6518_v61  ;;  %v1252_v50 = vrot.slane %v845_v4, 1  ;;  %7285 = vst [vmem:[#allocation40_spill] sm:$0xff] %v6542_v45  ;;  %v801_v39 = vmul.f32 %v777_v40, %v6438_v24  ;;  %v1257_v28 = vrot.slane %v848_v0, 1  ;;  %v1260_v46 = vrot.slane %v6526_v10, 1 }
 0x245   : > { %4283 = vmatprep.mubr.f32.mxu0 %v6518_v61  ;;  %4821 = vmatpush3.bf16.msra.mxu0 %v6311_v51  ;;  %v6545_v51 = vmul.f32 0.16666667, %v798_v41  ;;  %v6554_v20 = vmul.f32 0.16666667, %v800_v14  ;;  %v6559_v7 = vsel %vm1595_vm4, %v1616_v54, %v1617_v29  ;;  %v1621_v24 = vrot.slane %v848_v0, 2 }
 0x246   : > { %4759 = vmatprep.subr.bf16.mxu1 %v6313_v53  ;;  %4823 = vmatprep.subr.bf16.mxu0 %v6319_v2  ;;  %v1130_v33 = vpop.f32.mrb[32].mxu1  ;;  %v6551_v8 = vsel %vm1231_vm2, %v1252_v50, %v1253_v32  ;;  %v1624_v57 = vrot.slane %v6526_v10, 2  ;;  %v6564_v16 = vsel %vm474_vm3, %v823_v47, 0.0  ;;  %v826_v52 = vmul.f32 0.16666667, %v802_v49  ;;  %v1205_v49 = vld [vmem:[#allocation11 + $0x70] sm:$0xff] }
 0x247   : > { %4172 = vmatmul.mubr.f32.gmra.mrb[42].mxu1 %v6536_v55  ;;  %4284 = vmatmul.mubr.f32.gmra.mrb[6].mxu0 %v6542_v45  ;;  %v4126_v35 = vpop.f32.mrb[33].mxu1  ;;  %v1258_v21 = vrot.slane %v6468_v62, 1  ;;  %v6578_v4 = vsel %vm1595_vm4, %v1617_v29, %v1619_v43  ;;  %v1622_v41 = vrot.slane %v6468_v62, 2  ;;  %v1263_v43 = vrot.slane %v6545_v51, 1  ;;  %v1206_v50 = vld [vmem:[#allocation11 + $0x78] sm:$0xff] }
 0x248   : > { %4174 = vmatprep.mubr.f32.mxu1 %v6551_v8  ;;  %4761 = vmatpush3.bf16.msra.mxu1 %v6313_v53  ;;  %v6572_v53 = vsel %vm1231_vm2, %v1253_v32, %v1255_v6  ;;  %v3572_v6 = vld [vmem:[%s7268_s3] ss:$0 sm:$0xff]  ;;  %v6588_v32 = vmul.f32 0.16666667, %v801_v39  ;;  %v4834_v38 = vpack.c.bf16 %v1868_v42, %v1867_v36  ;;  %v1265_v29 = vrot.slane %v6564_v16, 1 }
 0x249   : > { %4286 = vmatprep.mubr.f32.mxu0 %v6559_v7  ;;  %4825 = vmatpush3.bf16.msra.mxu0 %v6319_v2  ;;  %v851_v2 = vsel %vm469_vm1, %v6531_v25, 0.0  ;;  %v6593_v22 = vsel %vm1231_vm2, %v1257_v28, %v1258_v21  ;;  %v6600_v0 = vsel %vm1595_vm4, %v1621_v24, %v1622_v41  ;;  %v1627_v10 = vrot.slane %v6545_v51, 2  ;;  %v1870_v28 = vld [vmem:[#allocation11 + $0x1f8] sm:$0xff] }
 0x24a   : > { %4763 = vmatprep.subr.bf16.mxu1 %v6321_v3  ;;  %4827 = vmatprep.subr.bf16.mxu0 %v6331_v9  ;;  %v1135_v40 = vpop.f32.mrb[34].mxu1  ;;  %v854_v47 = vsel %vm469_vm1, %v6554_v20, 0.0  ;;  %v856_v54 = vsel %vm474_vm3, %v826_v52, 0.0  ;;  %v1262_v39 = vrot.slane %v851_v2, 1  ;;  %v6611_v35 = vadd.f32 %v3572_v6, %v6505_v18 }
 0x24b   : > { %4175 = vmatmul.mubr.f32.gmra.mrb[44].mxu1 %v6572_v53  ;;  %4287 = vmatmul.mubr.f32.gmra.mrb[8].mxu0 %v6578_v4  ;;  %v4129_v14 = vpop.f32.mrb[35].mxu1  ;;  %v6613_v24 = vadd.f32 %v3572_v6, %v1130_v33  ;;  %v1629_v36 = vrot.slane %v6564_v16, 2  ;;  %v6617_v42 = vsel %vm1231_vm2, %v1258_v21, %v1260_v46  ;;  %v6621_v52 = vsel %vm1595_vm4, %v1622_v41, %v1624_v57 }
 0x24c   : > { %4177 = vmatprep.mubr.f32.mxu1 %v6593_v22  ;;  %4765 = vmatpush3.bf16.msra.mxu1 %v6321_v3  ;;  %v1869_v3 = vld [vmem:[#allocation11 + $0x1f0] sm:$0xff]  ;;  %v6627_v18 = vsel %vm1231_vm2, %v1262_v39, %v1263_v43  ;;  %v1267_v33 = vrot.slane %v854_v47, 1  ;;  %v4774_v16 = vpack.c.bf16 %v1206_v50, %v1205_v49  ;;  %v1270_v46 = vrot.slane %v856_v54, 1 }
 0x24d   : > { %4289 = vmatprep.mubr.f32.mxu0 %v6600_v0  ;;  %4829 = vmatpush3.bf16.msra.mxu0 %v6331_v9  ;;  %v1626_v9 = vrot.slane %v851_v2, 2  ;;  %v1631_v21 = vrot.slane %v854_v47, 2  ;;  %v4838_v41 = vpack.c.bf16 %v1870_v28, %v1869_v3  ;;  %v1268_v2 = vrot.slane %v6588_v32, 1  ;;  %v2113_v3 = vld [vmem:[#allocation11 + $0x200] sm:$0xff]  ;;  %v2114_v28 = vld [vmem:[#allocation11 + $0x208] sm:$0xff] }
 0x24e   : > { %4767 = vmatprep.subr.bf16.mxu1 %v6334_v15  ;;  %4831 = vmatprep.subr.bf16.mxu0 %v6336_v23  ;;  %v1139_v14 = vadd.f32 3.0, %v6611_v35  ;;  %v1140_v49 = vadd.f32 3.0, %v6613_v24  ;;  %v6643_v50 = vadd.f32 %v3572_v6, %v1135_v40  ;;  %v6646_v47 = vsel %vm1231_vm2, %v1263_v43, %v1265_v29  ;;  %v3042_v40 = vld [vmem:[#allocation11 + $0x400] sm:$0xff]  ;;  %v3043_v43 = vld [vmem:[#allocation11 + $0x408] sm:$0xff] }
 0x24f   : > { %4178 = vmatmul.mubr.f32.gmra.mrb[46].mxu1 %v6617_v42  ;;  %4290 = vmatmul.mubr.f32.gmra.mrb[10].mxu0 %v6621_v52  ;;  %v6632_v57 = vsel %vm1595_vm4, %v1626_v9, %v1627_v10  ;;  %v1632_v39 = vrot.slane %v6588_v32, 2  ;;  %v6656_v6 = vsel %vm1231_vm2, %v1267_v33, %v1268_v2  ;;  %v6667_v33 = vsel %vm1231_vm2, %v1268_v2, %v1270_v46  ;;  %v3044_v46 = vld [vmem:[#allocation11 + $0x410] sm:$0xff]  ;;  %v3045_v2 = vld [vmem:[#allocation11 + $0x418] sm:$0xff] }
 0x250   : > { %4180 = vmatprep.mubr.f32.mxu1 %v6627_v18  ;;  %4769 = vmatpush3.bf16.msra.mxu1 %v6334_v15  ;;  %v1634_v15 = vrot.slane %v856_v54, 2  ;;  %v1142_v54 = vmax.f32 %v1139_v14, 0.0  ;;  %v1141_v9 = vadd.f32 3.0, %v6643_v50  ;;  %v7287_v14 = vld [vmem:[#allocation32_spill] sm:$0xff]  ;;  %v7294_v61 = vmov 0 }
 0x251   : > { %4292 = vmatprep.mubr.f32.mxu0 %v6632_v57  ;;  %4833 = vmatpush3.bf16.msra.mxu0 %v6336_v23  ;;  %v6650_v23 = vsel %vm1595_vm4, %v1627_v10, %v1629_v36  ;;  %v6661_v29 = vsel %vm1595_vm4, %v1631_v21, %v1632_v39  ;;  %v4842_v10 = vpack.c.bf16 %v2114_v28, %v2113_v3  ;;  %v1143_v36 = vmax.f32 %v1140_v49, 0.0  ;;  %v2116_v21 = vld [vmem:[#allocation11 + $0x218] sm:$0xff]  ;;  %v2117_v28 = vld [vmem:[#allocation11 + $0x220] sm:$0xff] }
 0x252   : > { %4771 = vmatprep.subr.bf16.mxu1 %v6344_v1  ;;  %4835 = vmatprep.subr.bf16.mxu0 %v4834_v38  ;;  %v6670_v45 = vsel %vm1595_vm4, %v1632_v39, %v1634_v15  ;;  %v1145_v49 = vmin.f32 %v1142_v54, 6.0  ;;  %v1144_v39 = vmax.f32 %v1141_v9, 0.0  ;;  %v6690_v3 = vpack.c.bf16 %v3045_v2, %v3044_v46  ;;  %v3047_v54 = vld [vmem:[#allocation11 + $0x428] sm:$0xff]  ;;  %v7292_v9 = vld [vmem:[#allocation37_spill] sm:$0xff] }
 0x253   : > { %4181 = vmatmul.mubr.f32.gmra.mrb[48].mxu1 %v6646_v47  ;;  %4293 = vmatmul.mubr.f32.gmra.mrb[12].mxu0 %v6650_v23  ;;  %v1146_v15 = vmin.f32 %v1143_v36, 6.0  ;;  %v1028_v36 = vstv %s6681_s29  ;;  %s3371_s29 = scalar_lea.sflag [#allocation5], %s6067_s22 }
 0x254   : > { %4183 = vmatprep.mubr.f32.mxu1 %v6656_v6  ;;  %4773 = vmatpush3.bf16.msra.mxu1 %v6344_v1  ;;  %v6672_v1 = vpack.c.bf16 %v3043_v43, %v3042_v40  ;;  %7290 = vst [vmem:[#allocation32_spill] sm:$0xff] %v6690_v3  ;;  %v7291_v40 = vld [vmem:[#allocation31_spill] sm:$0xff]  ;;  %v1147_v46 = vmin.f32 %v1144_v39, 6.0  ;;  %vm6707_vm8 = vcmp.eq.s32.totalorder %v1028_v36, 1  ;;  %v3051_v36 = vld [vmem:[#allocation11 + $0x448] sm:$0xff] }
 0x255   : > { %4295 = vmatprep.mubr.f32.mxu0 %v6661_v29  ;;  %4837 = vmatpush3.bf16.msra.mxu0 %v4834_v38  ;;  %v2115_v38 = vld [vmem:[#allocation11 + $0x210] sm:$0xff]  ;;  %v3046_v43 = vld [vmem:[#allocation11 + $0x420] sm:$0xff]  ;;  %v7295_v61 = vsel %vm6707_vm8, 4294967295, %v7294_v61  ;;  %vm6728_vm9 = vmand %vm469_vm1, %vm6707_vm8 }
 0x256   : > { %4775 = vmatprep.subr.bf16.mxu1 %v4774_v16  ;;  %4839 = vmatprep.subr.bf16.mxu0 %v4838_v41  ;;  %7286 = vst [vmem:[#allocation41_spill] sm:$0xff] %v6672_v1  ;;  %7296 = vst [vmem:[#allocation34_spill] sm:$0xff] %v7295_v61 }
 0x257   : > { %4184 = vmatmul.mubr.f32.gmra.mrb[50].mxu1 %v6667_v33  ;;  %4296 = vmatmul.mubr.f32.gmra.mrb[14].mxu0 %v6670_v45  ;;  %vm1032_vm10 = vmand %vm474_vm3, %vm6707_vm8 }
 0x258   : > { %4777 = vmatpush3.bf16.msra.mxu1 %v4774_v16  ;;  %4218 = vmatprep.mubr.msk.f32.mxu1 %vm6383_vm6, %v6375_v44  ;;  %v4846_v16 = vpack.c.bf16 %v2116_v21, %v2115_v38  ;;  %v1148_v38 = vmul.f32 %v1145_v49, %v6611_v35  ;;  %v1149_v21 = vmul.f32 %v1146_v15, %v6613_v24  ;;  %v2120_v44 = vld [vmem:[#allocation11 + $0x238] sm:$0xff]  ;;  %v3048_v35 = vld [vmem:[#allocation11 + $0x430] sm:$0xff] }
 0x259   : > { %4841 = vmatpush3.bf16.msra.mxu0 %v4838_v41  ;;  %4330 = vmatprep.mubr.msk.f32.mxu0 %vm469_vm1, %v7287_v14  ;;  %v2118_v41 = vld [vmem:[#allocation11 + $0x228] sm:$0xff]  ;;  %v3049_v24 = vld [vmem:[#allocation11 + $0x438] sm:$0xff]  ;;  %v1150_v15 = vmul.f32 %v1147_v46, %v6643_v50  ;;  %v2121_v50 = vld [vmem:[#allocation11 + $0x240] sm:$0xff] }
 0x25a   : > { %4843 = vmatprep.subr.bf16.mxu0 %v4842_v10  ;;  %5002 = vmatprep.subr.bf16.mxu1 %v6672_v1  ;;  %v4850_v2 = vpack.c.bf16 %v2118_v41, %v2117_v28  ;;  %v6720_v49 = vmul.f32 0.16666667, %v1149_v21  ;;  %v7299_v28 = vmov 0  ;;  %v7302_v41 = vld [vmem:[#allocation33_spill] sm:$0xff] }
 0x25b   : > { %4219 = vmatmul.mubr.msk.f32.vlgmr.msra.gmra.mrb[36].mxu1 %vm888_vm5, %v7288_v59  ;;  %v2119_v59 = vld [vmem:[#allocation11 + $0x230] sm:$0xff]  ;;  %v7300_v28 = vsel %vm6728_vm9, 4294967295, %v7299_v28  ;;  %v1153_v46 = vmul.f32 0.16666667, %v1150_v15  ;;  %v2124_v15 = vld [vmem:[#allocation11 + $0x258] sm:$0xff] }
 0x25c   : > { %4331 = vmatmul.mubr.f32.vlgmr.msra.gmra.mrb[0].mxu0 %v7291_v40  ;;  %4221 = vmatprep.mubr.msk.f32.mxu1 %vm469_vm1, %v7287_v14  ;;  %v6705_v14 = vpack.c.bf16 %v3047_v54, %v3046_v43  ;;  %7298 = vst [vmem:[#allocation37_spill] sm:$0xff] %v6720_v49  ;;  %v4854_v39 = vpack.c.bf16 %v2120_v44, %v2119_v59  ;;  %7301 = vst [vmem:[#allocation42_spill] sm:$0xff] %v7300_v28  ;;  %v2122_v43 = vld [vmem:[#allocation11 + $0x248] sm:$0xff]  ;;  %v3050_v54 = vld [vmem:[#allocation11 + $0x440] sm:$0xff]  ;;  %v6752_v21 = vsel %vm6707_vm8, %v6720_v49, 0.0 }
 0x25d   : > { %4333 = vmatprep.mubr.msk.f32.mxu0 %vm469_vm1, %v7292_v9  ;;  %4845 = vmatpush3.bf16.msra.mxu0 %v4842_v10  ;;  %v6718_v10 = vmul.f32 0.16666667, %v1148_v38  ;;  %v7303_v59 = vld [vmem:[#allocation36_spill] sm:$0xff]  ;;  %v2125_v28 = vld [vmem:[#allocation11 + $0x260] sm:$0xff]  ;;  %v7313_v60 = vld [vmem:[#allocation41_spill] sm:$0xff] }
 0x25e   : > { %5010 = vmatpush3.bf16.msra.mxu1 %v6672_v1  ;;  %4847 = vmatprep.subr.bf16.mxu0 %v4846_v16  ;;  %7293 = vst [vmem:[#allocation38_spill] sm:$0xff] %v6705_v14  ;;  %v732_v44 = vadd.f32 3.0, %v7303_v59 }
 0x25f   : > { %4222 = vmatmul.mubr.f32.gmra.mrb[38].mxu1 %v7291_v40  ;;  %5003 = vmatprep.subr.bf16.mxu1 %v6690_v3  ;;  %7297 = vst [vmem:[#allocation31_spill] sm:$0xff] %v6718_v10  ;;  %v6735_v40 = vpack.c.bf16 %v3049_v24, %v3048_v35  ;;  %v6747_v38 = vsel %vm6728_vm9, %v6718_v10, 0.0  ;;  %v4858_v35 = vpack.c.bf16 %v2122_v43, %v2121_v50  ;;  %v3052_v50 = vld [vmem:[#allocation11 + $0x450] sm:$0xff]  ;;  %v3053_v43 = vld [vmem:[#allocation11 + $0x458] sm:$0xff]  ;;  %v2126_v10 = vld [vmem:[#allocation11 + $0x268] sm:$0xff] }
 0x260   : > { %4334 = vmatmul.mubr.f32.gmra.mrb[2].mxu0 %v6342_v48  ;;  %4224 = vmatprep.mubr.msk.f32.mxu1 %vm469_vm1, %v7292_v9  ;;  %v6762_v24 = vpack.c.bf16 %v3051_v36, %v3050_v54  ;;  %v6773_v54 = vsel %vm1032_vm10, %v1153_v46, 0.0  ;;  %v756_v36 = vmax.f32 %v732_v44, 0.0  ;;  %v6778_v49 = vpack.c.bf16 %v3053_v43, %v3052_v50  ;;  %v3055_v46 = vld [vmem:[#allocation11 + $0x468] sm:$0xff] }
 0x261   : > { %4336 = vmatprep.mubr.msk.f32.mxu0 %vm469_vm1, %v6359_v58  ;;  %4849 = vmatpush3.bf16.msra.mxu0 %v4846_v16  ;;  %v731_v16 = vadd.f32 3.0, %v7302_v41  ;;  %v2789_v44 = vrot.slane %v6773_v54, 1 }
 0x262   : > { %5011 = vmatpush3.bf16.msra.mxu1 %v6690_v3  ;;  %4851 = vmatprep.subr.bf16.mxu0 %v4850_v2  ;;  %v2123_v3 = vld [vmem:[#allocation11 + $0x250] sm:$0xff] }
 0x263   : > { %4225 = vmatmul.mubr.f32.gmra.mrb[40].mxu1 %v6342_v48  ;;  %5004 = vmatprep.subr.bf16.mxu1 %v6705_v14  ;;  %v4862_v1 = vpack.c.bf16 %v2124_v15, %v2123_v3  ;;  %v4866_v15 = vpack.c.bf16 %v2126_v10, %v2125_v28 }
 0x264   : > { %4337 = vmatmul.mubr.f32.gmra.mrb[4].mxu0 %v6353_v56  ;;  %4227 = vmatprep.mubr.msk.f32.mxu1 %vm469_vm1, %v6359_v58 }
 0x265   : > { %4339 = vmatprep.mubr.msk.f32.mxu0 %vm469_vm1, %v6397_v63  ;;  %4853 = vmatpush3.bf16.msra.mxu0 %v4850_v2  ;;  %v755_v2 = vmax.f32 %v731_v16, 0.0  ;;  %v2787_v16 = vrot.slane %v6752_v21, 1 }
 0x266   : > { %5012 = vmatpush3.bf16.msra.mxu1 %v6705_v14  ;;  %4855 = vmatprep.subr.bf16.mxu0 %v4854_v39  ;;  %v2786_v14 = vrot.slane %v6747_v38, 1 }
 0x267   : > { %4228 = vmatmul.mubr.f32.gmra.mrb[42].mxu1 %v6353_v56  ;;  %5005 = vmatprep.subr.bf16.mxu1 %v6735_v40  ;;  %v779_v61 = vmin.f32 %v755_v2, 6.0  ;;  %v780_v2 = vmin.f32 %v756_v36, 6.0  ;;  %v3057_v36 = vld [vmem:[#allocation11 + $0x478] sm:$0xff]  ;;  %v6802_v10 = vsel %vm1231_vm2, %v2787_v16, %v2789_v44  ;;  %v2347_v44 = vld [vmem:[#allocation11 + $0x280] sm:$0xff] }
 0x268   : > { %4340 = vmatmul.mubr.f32.gmra.mrb[6].mxu0 %v6461_v12  ;;  %4230 = vmatprep.mubr.msk.f32.mxu1 %vm469_vm1, %v6397_v63  ;;  %v6786_v3 = vsel %vm1231_vm2, %v2786_v14, %v2787_v16  ;;  %v2127_v14 = vld [vmem:[#allocation11 + $0x270] sm:$0xff]  ;;  %7305 = vst [vmem:[#allocation36_spill] sm:$0xff] %v6802_v10  ;;  %v2348_v10 = vld [vmem:[#allocation11 + $0x288] sm:$0xff] }
 0x269   : > { %4342 = vmatprep.mubr.msk.f32.mxu0 %vm469_vm1, %v6473_v13  ;;  %4857 = vmatpush3.bf16.msra.mxu0 %v4854_v39  ;;  %v3054_v39 = vld [vmem:[#allocation11 + $0x460] sm:$0xff]  ;;  %7304 = vst [vmem:[#allocation33_spill] sm:$0xff] %v6786_v3  ;;  %v803_v50 = vmul.f32 %v779_v61, %v7302_v41  ;;  %v2128_v3 = vld [vmem:[#allocation11 + $0x278] sm:$0xff]  ;;  %v804_v41 = vmul.f32 %v780_v2, %v7303_v59  ;;  %v2349_v2 = vld [vmem:[#allocation11 + $0x290] sm:$0xff] }
 0x26a   : > { %5013 = vmatpush3.bf16.msra.mxu1 %v6735_v40  ;;  %4859 = vmatprep.subr.bf16.mxu0 %v4858_v35  ;;  %v6795_v43 = vpack.c.bf16 %v3055_v46, %v3054_v39  ;;  %v7306_v61 = vld [vmem:[#allocation35_spill] sm:$0xff]  ;;  %v4870_v39 = vpack.c.bf16 %v2128_v3, %v2127_v14  ;;  %v4874_v3 = vpack.c.bf16 %v2348_v10, %v2347_v44 }
 0x26b   : > { %4231 = vmatmul.mubr.f32.gmra.mrb[44].mxu1 %v6461_v12  ;;  %5006 = vmatprep.subr.bf16.mxu1 %v6762_v24  ;;  %v733_v28 = vadd.f32 3.0, %v7306_v61  ;;  %v6810_v46 = vmul.f32 0.16666667, %v803_v50  ;;  %v6823_v59 = vmul.f32 0.16666667, %v804_v41  ;;  %v2350_v50 = vld [vmem:[#allocation11 + $0x298] sm:$0xff] }
 0x26c   : > { %4343 = vmatmul.mubr.f32.gmra.mrb[8].mxu0 %v6468_v62  ;;  %4233 = vmatprep.mubr.msk.f32.mxu1 %vm469_vm1, %v6473_v13  ;;  %v2354_v41 = vld [vmem:[#allocation11 + $0x2b8] sm:$0xff]  ;;  %v2355_v44 = vld [vmem:[#allocation11 + $0x2c0] sm:$0xff] }
 0x26d   : > { %4345 = vmatprep.mubr.msk.f32.mxu0 %vm469_vm1, %v6531_v25  ;;  %4861 = vmatpush3.bf16.msra.mxu0 %v4858_v35  ;;  %v3056_v35 = vld [vmem:[#allocation11 + $0x470] sm:$0xff] }
 0x26e   : > { %5014 = vmatpush3.bf16.msra.mxu1 %v6762_v24  ;;  %4863 = vmatprep.subr.bf16.mxu0 %v4862_v1  ;;  %v6814_v16 = vpack.c.bf16 %v3057_v36, %v3056_v35  ;;  %v2351_v35 = vld [vmem:[#allocation11 + $0x2a0] sm:$0xff]  ;;  %v2352_v36 = vld [vmem:[#allocation11 + $0x2a8] sm:$0xff] }
 0x26f   : > { %4234 = vmatmul.mubr.f32.gmra.mrb[46].mxu1 %v6468_v62  ;;  %5007 = vmatprep.subr.bf16.mxu1 %v6778_v49 }
 0x270   : > { %4346 = vmatmul.mubr.f32.gmra.mrb[10].mxu0 %v6545_v51  ;;  %4236 = vmatprep.mubr.msk.f32.mxu1 %vm469_vm1, %v6531_v25 }
 0x271   : > { %4348 = vmatprep.mubr.msk.f32.mxu0 %vm469_vm1, %v6554_v20  ;;  %4865 = vmatpush3.bf16.msra.mxu0 %v4862_v1  ;;  %v757_v1 = vmax.f32 %v733_v28, 0.0  ;;  %v4882_v28 = vpack.c.bf16 %v2352_v36, %v2351_v35  ;;  %v3021_v35 = vrot.slane %v6752_v21, 2 }
 0x272   : > { %5015 = vmatpush3.bf16.msra.mxu1 %v6778_v49  ;;  %4867 = vmatprep.subr.bf16.mxu0 %v4866_v15 }
 0x273   : > { %4237 = vmatmul.mubr.f32.gmra.mrb[48].mxu1 %v6545_v51  ;;  %5008 = vmatprep.subr.bf16.mxu1 %v6795_v43  ;;  %v781_v14 = vmin.f32 %v757_v1, 6.0  ;;  %v2356_v1 = vld [vmem:[#allocation11 + $0x2c8] sm:$0xff] }
 0x274   : > { %4349 = vmatmul.mubr.f32.gmra.mrb[12].mxu0 %v6588_v32  ;;  %4239 = vmatprep.mubr.msk.f32.mxu1 %vm469_vm1, %v6554_v20 }
 0x275   : > { %4351 = vmatprep.mubr.msk.f32.mxu0 %vm469_vm1, %v6810_v46  ;;  %4869 = vmatpush3.bf16.msra.mxu0 %v4866_v15  ;;  %v4878_v15 = vpack.c.bf16 %v2350_v50, %v2349_v2  ;;  %v805_v10 = vmul.f32 %v781_v14, %v7306_v61  ;;  %v857_v61 = vsel %vm469_vm1, %v6810_v46, 0.0  ;;  %v2326_v2 = vrot.slane %v6823_v59, 2 }
 0x276   : > { %5016 = vmatpush3.bf16.msra.mxu1 %v6795_v43  ;;  %4871 = vmatprep.subr.bf16.mxu0 %v4870_v39  ;;  %v2325_v50 = vrot.slane %v857_v61, 2  ;;  %v4890_v14 = vpack.c.bf16 %v2356_v1, %v2355_v44  ;;  %v2360_v44 = vld [vmem:[#allocation11 + $0x2e8] sm:$0xff]  ;;  %v2092_v1 = vrot.slane %v6823_v59, 1 }
 0x277   : > { %4240 = vmatmul.mubr.f32.gmra.mrb[50].mxu1 %v6588_v32  ;;  %5009 = vmatprep.subr.bf16.mxu1 %v6814_v16 }
 0x278   : > { %4352 = vmatmul.mubr.f32.gmra.mrb[14].mxu0 %v6823_v59  ;;  %4616 = vmatprep.mubr.f32.mxu1 %v6559_v7 }
 0x279   : > { %4873 = vmatpush3.bf16.msra.mxu0 %v4870_v39  ;;  %4386 = vmatprep.mubr.f32.mxu0 %v6226_v17  ;;  %v2353_v17 = vld [vmem:[#allocation11 + $0x2b0] sm:$0xff]  ;;  %v829_v39 = vmul.f32 0.16666667, %v805_v10  ;;  %v2358_v10 = vld [vmem:[#allocation11 + $0x2d8] sm:$0xff] }
 0x27a   : > { %5017 = vmatpush3.bf16.msra.mxu1 %v6814_v16  ;;  %4875 = vmatprep.subr.bf16.mxu0 %v4874_v3 }
 0x27c   : > { %4387 = vmatmul.mubr.f32.vlgmr.msra.gmra.mrb[0].mxu0 %v6239_v27  ;;  %v4886_v27 = vpack.c.bf16 %v2354_v41, %v2353_v17  ;;  %v3023_v17 = vrot.slane %v6773_v54, 2 }
 0x27d   : > { %4617 = vmatmul.mubr.f32.vlgmr.msra.gmra.mrb[52].mxu1 %v6578_v4  ;;  %4389 = vmatprep.mubr.f32.mxu0 %v6405_v31 }
 0x27e   : > { %4877 = vmatpush3.bf16.msra.mxu0 %v4874_v3  ;;  %4619 = vmatprep.mubr.f32.mxu1 %v6600_v0  ;;  %v859_v3 = vsel %vm474_vm3, %v829_v39, 0.0  ;;  %v2359_v39 = vld [vmem:[#allocation11 + $0x2e0] sm:$0xff] }
 0x27f   : > { %4879 = vmatprep.subr.bf16.mxu0 %v4878_v15  ;;  %v2328_v36 = vrot.slane %v859_v3, 2  ;;  %v4898_v54 = vpack.c.bf16 %v2360_v44, %v2359_v39  ;;  %v2554_v39 = vld [vmem:[#allocation11 + $0x320] sm:$0xff]  ;;  %v2555_v44 = vld [vmem:[#allocation11 + $0x328] sm:$0xff] }
 0x280   : > { %4390 = vmatmul.mubr.f32.gmra.mrb[2].mxu0 %v6492_v19 }
 0x281   : > { %4620 = vmatmul.mubr.f32.gmra.mrb[54].mxu1 %v6621_v52  ;;  %4392 = vmatprep.mubr.f32.mxu0 %v6511_v34  ;;  %v6864_v41 = vsel %vm1595_vm4, %v2326_v2, %v2328_v36  ;;  %v2094_v36 = vrot.slane %v859_v3, 1  ;;  %v2553_v3 = vld [vmem:[#allocation11 + $0x318] sm:$0xff] }
 0x282   : > { %4881 = vmatpush3.bf16.msra.mxu0 %v4878_v15  ;;  %4622 = vmatprep.mubr.f32.mxu1 %v6632_v57  ;;  %v3020_v15 = vrot.slane %v6747_v38, 2  ;;  %v4894_v38 = vpack.c.bf16 %v2358_v10, %v2357_v5  ;;  %v2551_v10 = vld [vmem:[#allocation11 + $0x308] sm:$0xff] }
 0x283   : > { %4883 = vmatprep.subr.bf16.mxu0 %v4882_v28 }
 0x284   : > { %4393 = vmatmul.mubr.f32.gmra.mrb[4].mxu0 %v6536_v55  ;;  %v3022_v21 = vsel %vm1595_vm4, %v3020_v15, %v3021_v35  ;;  %v2362_v15 = vld [vmem:[#allocation11 + $0x2f8] sm:$0xff] }
 0x285   : > { %4623 = vmatmul.mubr.f32.gmra.mrb[56].mxu1 %v6650_v23  ;;  %4395 = vmatprep.mubr.f32.mxu0 %v6551_v8 }
 0x286   : > { %4885 = vmatpush3.bf16.msra.mxu0 %v4882_v28  ;;  %4625 = vmatprep.mubr.f32.mxu1 %v6661_v29  ;;  %v6857_v28 = vsel %vm1595_vm4, %v2325_v50, %v2326_v2  ;;  %v2361_v50 = vld [vmem:[#allocation11 + $0x2f0] sm:$0xff]  ;;  %v2091_v2 = vrot.slane %v857_v61, 1 }
 0x287   : > { %4887 = vmatprep.subr.bf16.mxu0 %v4886_v27  ;;  %v4902_v5 = vpack.c.bf16 %v2362_v15, %v2361_v50  ;;  %v2552_v61 = vld [vmem:[#allocation11 + $0x310] sm:$0xff]  ;;  %v7307_v50 = vld [vmem:[#allocation39_spill] sm:$0xff] }
 0x288   : > { %4396 = vmatmul.mubr.f32.gmra.mrb[6].mxu0 %v6572_v53  ;;  %v2558_v15 = vld [vmem:[#allocation11 + $0x340] sm:$0xff] }
 0x289   : > { %4626 = vmatmul.mubr.f32.gmra.mrb[58].mxu1 %v6670_v45  ;;  %4398 = vmatprep.mubr.f32.mxu0 %v6593_v22 }
 0x28a   : > { %4889 = vmatpush3.bf16.msra.mxu0 %v4886_v27  ;;  %4628 = vmatprep.mubr.f32.mxu1 %v6857_v28  ;;  %v3024_v27 = vsel %vm1595_vm4, %v3021_v35, %v3023_v17  ;;  %v2550_v35 = vld [vmem:[#allocation11 + $0x300] sm:$0xff]  ;;  %v6878_v17 = vsel %vm1231_vm2, %v2092_v1, %v2094_v36  ;;  %v7308_v36 = vld [vmem:[#allocation40_spill] sm:$0xff] }
 0x28b   : > { %4891 = vmatprep.subr.bf16.mxu0 %v4890_v14 }
 0x28c   : > { %4399 = vmatmul.mubr.f32.gmra.mrb[8].mxu0 %v6617_v42 }
 0x28d   : > { %4629 = vmatmul.mubr.f32.gmra.mrb[60].mxu1 %v6864_v41  ;;  %4401 = vmatprep.mubr.f32.mxu0 %v6627_v18 }
 0x28e   : > { %4893 = vmatpush3.bf16.msra.mxu0 %v4890_v14  ;;  %4631 = vmatprep.mubr.f32.mxu1 %v3022_v21  ;;  %v6874_v14 = vsel %vm1231_vm2, %v2091_v2, %v2092_v1  ;;  %v4906_v21 = vpack.c.bf16 %v2551_v10, %v2550_v35  ;;  %v2557_v1 = vld [vmem:[#allocation11 + $0x338] sm:$0xff]  ;;  %v2559_v2 = vld [vmem:[#allocation11 + $0x348] sm:$0xff] }
 0x28f   : > { %4895 = vmatprep.subr.bf16.mxu0 %v4894_v38  ;;  %v2561_v35 = vld [vmem:[#allocation11 + $0x358] sm:$0xff] }
 0x290   : > { %4402 = vmatmul.mubr.f32.gmra.mrb[10].mxu0 %v6646_v47 }
 0x291   : > { %4404 = vmatprep.mubr.f32.mxu0 %v6656_v6  ;;  %4632 = vmatmul.mubr.f32.gmra.mrb[62].mxu1 %v3024_v27  ;;  %v4914_v27 = vpack.c.bf16 %v2555_v44, %v2554_v39  ;;  %v2809_v39 = vld [vmem:[#allocation11 + $0x388] sm:$0xff]  ;;  %v2811_v44 = vld [vmem:[#allocation11 + $0x398] sm:$0xff] }
 0x292   : > { %4897 = vmatpush3.bf16.msra.mxu0 %v4894_v38  ;;  %v4910_v38 = vpack.c.bf16 %v2553_v3, %v2552_v61  ;;  %v2563_v61 = vld [vmem:[#allocation11 + $0x368] sm:$0xff]  ;;  %v2564_v3 = vld [vmem:[#allocation11 + $0x370] sm:$0xff] }
 0x293   : > { %4899 = vmatprep.subr.bf16.mxu0 %v4898_v54 }
 0x294   : > { %4405 = vmatmul.mubr.f32.gmra.mrb[12].mxu0 %v6667_v33 }
 0x295   : > { %4407 = vmatprep.mubr.f32.mxu0 %v6874_v14 }
 0x296   : > { %4901 = vmatpush3.bf16.msra.mxu0 %v4898_v54  ;;  %v2556_v54 = vld [vmem:[#allocation11 + $0x330] sm:$0xff] }
 0x297   : > { %4903 = vmatprep.subr.bf16.mxu0 %v4902_v5 }
 0x298   : > { %4408 = vmatmul.mubr.f32.gmra.mrb[14].mxu0 %v6878_v17 }
 0x299   : > { %4442 = vmatprep.mubr.f32.mxu0 %v6236_v26  ;;  %v4918_v26 = vpack.c.bf16 %v2557_v1, %v2556_v54  ;;  %v2816_v54 = vld [vmem:[#allocation11 + $0x3c0] sm:$0xff]  ;;  %v2818_v1 = vld [vmem:[#allocation11 + $0x3d0] sm:$0xff] }
 0x29a   : > { %4905 = vmatpush3.bf16.msra.mxu0 %v4902_v5  ;;  %v2560_v5 = vld [vmem:[#allocation11 + $0x350] sm:$0xff] }
 0x29b   : > { %4907 = vmatprep.subr.bf16.mxu0 %v4906_v21  ;;  %v4926_v10 = vpack.c.bf16 %v2561_v35, %v2560_v5 }
 0x29d   : > { %4443 = vmatmul.mubr.f32.vlgmr.msra.gmra.mrb[0].mxu0 %v6245_v30  ;;  %v4922_v30 = vpack.c.bf16 %v2559_v2, %v2558_v15  ;;  %v2822_v15 = vld [vmem:[#allocation11 + $0x3f0] sm:$0xff] }
 0x29e   : > { %4445 = vmatprep.mubr.f32.mxu0 %v6481_v37  ;;  %4909 = vmatpush3.bf16.msra.mxu0 %v4906_v21  ;;  %v2562_v21 = vld [vmem:[#allocation11 + $0x360] sm:$0xff] }
 0x29f   : > { %4911 = vmatprep.subr.bf16.mxu0 %v4910_v38 }
 0x2a1   : > { %4446 = vmatmul.mubr.f32.gmra.mrb[2].mxu0 %v6498_v11 }
 0x2a2   : > { %4448 = vmatprep.mubr.f32.mxu0 %v7307_v50  ;;  %4913 = vmatpush3.bf16.msra.mxu0 %v4910_v38  ;;  %v2565_v38 = vld [vmem:[#allocation11 + $0x378] sm:$0xff] }
 0x2a3   : > { %4915 = vmatprep.subr.bf16.mxu0 %v4914_v27 }
 0x2a5   : > { %4449 = vmatmul.mubr.f32.gmra.mrb[4].mxu0 %v7308_v36 }
 0x2a6   : > { %4451 = vmatprep.mubr.f32.mxu0 %v6559_v7  ;;  %4917 = vmatpush3.bf16.msra.mxu0 %v4914_v27  ;;  %v4930_v7 = vpack.c.bf16 %v2563_v61, %v2562_v21  ;;  %v2813_v27 = vld [vmem:[#allocation11 + $0x3a8] sm:$0xff] }
 0x2a7   : > { %4919 = vmatprep.subr.bf16.mxu0 %v4918_v26 }
 0x2a9   : > { %4452 = vmatmul.mubr.f32.gmra.mrb[6].mxu0 %v6578_v4  ;;  %v4934_v4 = vpack.c.bf16 %v2565_v38, %v2564_v3 }
 0x2aa   : > { %4454 = vmatprep.mubr.f32.mxu0 %v6600_v0  ;;  %4921 = vmatpush3.bf16.msra.mxu0 %v4918_v26  ;;  %v2808_v0 = vld [vmem:[#allocation11 + $0x380] sm:$0xff] }
 0x2ab   : > { %4923 = vmatprep.subr.bf16.mxu0 %v4922_v30  ;;  %v2820_v26 = vld [vmem:[#allocation11 + $0x3e0] sm:$0xff] }
 0x2ad   : > { %4455 = vmatmul.mubr.f32.gmra.mrb[8].mxu0 %v6621_v52  ;;  %v4938_v52 = vpack.c.bf16 %v2809_v39, %v2808_v0  ;;  %v6994_v0 = vld [vmem:[%s7318_s21] ss:$0 sm:$0xff] }
 0x2ae   : > { %4457 = vmatprep.mubr.f32.mxu0 %v6632_v57  ;;  %4925 = vmatpush3.bf16.msra.mxu0 %v4922_v30  ;;  %v2810_v57 = vld [vmem:[#allocation11 + $0x390] sm:$0xff] }
 0x2af   : > { %4927 = vmatprep.subr.bf16.mxu0 %v4926_v10 }
 0x2b1   : > { %4458 = vmatmul.mubr.f32.gmra.mrb[10].mxu0 %v6650_v23  ;;  %v4942_v23 = vpack.c.bf16 %v2811_v44, %v2810_v57 }
 0x2b2   : > { %4460 = vmatprep.mubr.f32.mxu0 %v6661_v29  ;;  %4929 = vmatpush3.bf16.msra.mxu0 %v4926_v10  ;;  %v2812_v29 = vld [vmem:[#allocation11 + $0x3a0] sm:$0xff] }
 0x2b3   : > { %4931 = vmatprep.subr.bf16.mxu0 %v4930_v7 }
 0x2b5   : > { %4461 = vmatmul.mubr.f32.gmra.mrb[12].mxu0 %v6670_v45  ;;  %v4946_v45 = vpack.c.bf16 %v2813_v27, %v2812_v29 }
 0x2b6   : > { %4463 = vmatprep.mubr.f32.mxu0 %v6857_v28  ;;  %4933 = vmatpush3.bf16.msra.mxu0 %v4930_v7  ;;  %v2814_v28 = vld [vmem:[#allocation11 + $0x3b0] sm:$0xff] }
 0x2b7   : > { %4935 = vmatprep.subr.bf16.mxu0 %v4934_v4 }
 0x2b9   : > { %4464 = vmatmul.mubr.f32.gmra.mrb[14].mxu0 %v6864_v41  ;;  %v2815_v41 = vld [vmem:[#allocation11 + $0x3b8] sm:$0xff] }
 0x2ba   : > { %4937 = vmatpush3.bf16.msra.mxu0 %v4934_v4  ;;  %4498 = vmatprep.mubr.msk.f32.mxu0 %vm469_vm1, %v7292_v9  ;;  %v4950_v9 = vpack.c.bf16 %v2815_v41, %v2814_v28 }
 0x2bb   : > { %4939 = vmatprep.subr.bf16.mxu0 %v4938_v52 }
 0x2bd   : > { %4499 = vmatmul.mubr.f32.vlgmr.msra.gmra.mrb[0].mxu0 %v6342_v48  ;;  %v2817_v48 = vld [vmem:[#allocation11 + $0x3c8] sm:$0xff] }
 0x2be   : > { %4501 = vmatprep.mubr.msk.f32.mxu0 %vm469_vm1, %v6359_v58  ;;  %4941 = vmatpush3.bf16.msra.mxu0 %v4938_v52  ;;  %v4954_v58 = vpack.c.bf16 %v2817_v48, %v2816_v54 }
 0x2bf   : > { %4943 = vmatprep.subr.bf16.mxu0 %v4942_v23 }
 0x2c1   : > { %4502 = vmatmul.mubr.f32.gmra.mrb[2].mxu0 %v6353_v56  ;;  %v2819_v56 = vld [vmem:[#allocation11 + $0x3d8] sm:$0xff] }
 0x2c2   : > { %4504 = vmatprep.mubr.msk.f32.mxu0 %vm469_vm1, %v6397_v63  ;;  %4945 = vmatpush3.bf16.msra.mxu0 %v4942_v23  ;;  %v4958_v63 = vpack.c.bf16 %v2819_v56, %v2818_v1 }
 0x2c3   : > { %4947 = vmatprep.subr.bf16.mxu0 %v4946_v45 }
 0x2c5   : > { %4505 = vmatmul.mubr.f32.gmra.mrb[4].mxu0 %v6461_v12  ;;  %v2821_v12 = vld [vmem:[#allocation11 + $0x3e8] sm:$0xff] }
 0x2c6   : > { %4507 = vmatprep.mubr.msk.f32.mxu0 %vm469_vm1, %v6473_v13  ;;  %4949 = vmatpush3.bf16.msra.mxu0 %v4946_v45  ;;  %v4962_v13 = vpack.c.bf16 %v2821_v12, %v2820_v26 }
 0x2c7   : > { %4951 = vmatprep.subr.bf16.mxu0 %v4950_v9 }
 0x2c9   : > { %4508 = vmatmul.mubr.f32.gmra.mrb[6].mxu0 %v6468_v62  ;;  %v2823_v62 = vld [vmem:[#allocation11 + $0x3f8] sm:$0xff] }
 0x2ca   : > { %4510 = vmatprep.mubr.msk.f32.mxu0 %vm469_vm1, %v6531_v25  ;;  %4953 = vmatpush3.bf16.msra.mxu0 %v4950_v9  ;;  %v4966_v25 = vpack.c.bf16 %v2823_v62, %v2822_v15 }
 0x2cb   : > { %4955 = vmatprep.subr.bf16.mxu0 %v4954_v58 }
 0x2cd   : > { %4511 = vmatmul.mubr.f32.gmra.mrb[8].mxu0 %v6545_v51  ;;  %v7309_v51 = vld [vmem:[#allocation31_spill] sm:$0xff] }
 0x2ce   : > { %4513 = vmatprep.mubr.msk.f32.mxu0 %vm469_vm1, %v6554_v20  ;;  %4957 = vmatpush3.bf16.msra.mxu0 %v4954_v58  ;;  %v7311_v20 = vld [vmem:[#allocation37_spill] sm:$0xff] }
 0x2cf   : > { %4959 = vmatprep.subr.bf16.mxu0 %v4958_v63 }
 0x2d1   : > { %4514 = vmatmul.mubr.f32.gmra.mrb[10].mxu0 %v6588_v32  ;;  %v7314_v32 = vld [vmem:[#allocation32_spill] sm:$0xff] }
 0x2d2   : > { %4516 = vmatprep.mubr.msk.f32.mxu0 %vm469_vm1, %v6810_v46  ;;  %4961 = vmatpush3.bf16.msra.mxu0 %v4958_v63  ;;  %v7315_v46 = vld [vmem:[#allocation38_spill] sm:$0xff] }
 0x2d3   : > { %4963 = vmatprep.subr.bf16.mxu0 %v4962_v13 }
 0x2d5   : > { %4517 = vmatmul.mubr.f32.gmra.mrb[12].mxu0 %v6823_v59 }
 0x2d6   : > { %4519 = vmatprep.mubr.msk.f32.mxu0 %vm6728_vm9, %v7309_v51  ;;  %4965 = vmatpush3.bf16.msra.mxu0 %v4962_v13 }
 0x2d7   : > { %4967 = vmatprep.subr.bf16.mxu0 %v4966_v25 }
 0x2d9   : > { %4520 = vmatmul.mubr.msk.f32.gmra.mrb[14].mxu0 %vm6707_vm8, %v7311_v20 }
 0x2da   : > { %4969 = vmatpush3.bf16.msra.mxu0 %v4966_v25  ;;  %4554 = vmatprep.mubr.f32.mxu0 %v6405_v31  ;;  %v7316_v31 = vld [vmem:[#allocation33_spill] sm:$0xff] }
 0x2db   : > { %4971 = vmatprep.subr.bf16.mxu0 %v7313_v60 }
 0x2dd   : > { %4555 = vmatmul.mubr.f32.vlgmr.msra.gmra.mrb[0].mxu0 %v6492_v19  ;;  %v7317_v19 = vld [vmem:[#allocation36_spill] sm:$0xff] }
 0x2de   : > { %4557 = vmatprep.mubr.f32.mxu0 %v6511_v34  ;;  %4973 = vmatpush3.bf16.msra.mxu0 %v7313_v60 }
 0x2df   : > { %4975 = vmatprep.subr.bf16.mxu0 %v7314_v32 }
 0x2e1   : > { %4558 = vmatmul.mubr.f32.gmra.mrb[2].mxu0 %v6536_v55 }
 0x2e2   : > { %4560 = vmatprep.mubr.f32.mxu0 %v6551_v8  ;;  %4977 = vmatpush3.bf16.msra.mxu0 %v7314_v32 }
 0x2e3   : > { %4979 = vmatprep.subr.bf16.mxu0 %v7315_v46 }
 0x2e5   : > { %4561 = vmatmul.mubr.f32.gmra.mrb[4].mxu0 %v6572_v53 }
 0x2e6   : > { %4563 = vmatprep.mubr.f32.mxu0 %v6593_v22  ;;  %4981 = vmatpush3.bf16.msra.mxu0 %v7315_v46 }
 0x2e7   : > { %4983 = vmatprep.subr.bf16.mxu0 %v6735_v40 }
 0x2e9   : > { %4564 = vmatmul.mubr.f32.gmra.mrb[6].mxu0 %v6617_v42 }
 0x2ea   : > { %4566 = vmatprep.mubr.f32.mxu0 %v6627_v18  ;;  %4985 = vmatpush3.bf16.msra.mxu0 %v6735_v40 }
 0x2eb   : > { %4987 = vmatprep.subr.bf16.mxu0 %v6762_v24 }
 0x2ed   : > { %4567 = vmatmul.mubr.f32.gmra.mrb[8].mxu0 %v6646_v47 }
 0x2ee   : > { %4569 = vmatprep.mubr.f32.mxu0 %v6656_v6  ;;  %4989 = vmatpush3.bf16.msra.mxu0 %v6762_v24 }
 0x2ef   : > { %4991 = vmatprep.subr.bf16.mxu0 %v6778_v49 }
 0x2f1   : > { %4570 = vmatmul.mubr.f32.gmra.mrb[10].mxu0 %v6667_v33 }
 0x2f2   : > { %4572 = vmatprep.mubr.f32.mxu0 %v6874_v14  ;;  %4993 = vmatpush3.bf16.msra.mxu0 %v6778_v49 }
 0x2f3   : > { %4995 = vmatprep.subr.bf16.mxu0 %v6795_v43 }
 0x2f5   : > { %4573 = vmatmul.mubr.f32.gmra.mrb[12].mxu0 %v6878_v17 }
 0x2f6   : > { %4575 = vmatprep.mubr.f32.mxu0 %v7316_v31  ;;  %4997 = vmatpush3.bf16.msra.mxu0 %v6795_v43 }
 0x2f7   : > { %4999 = vmatprep.subr.bf16.mxu0 %v6814_v16 }
 0x2f9   : > { %4576 = vmatmul.mubr.f32.gmra.mrb[14].mxu0 %v7317_v19 }
 0x2fa   : > { %5001 = vmatpush3.bf16.msra.mxu0 %v6814_v16  ;;  %4610 = vmatprep.mubr.f32.mxu0 %v6481_v37 }
 0x2fd   : > { %4611 = vmatmul.mubr.f32.vlgmr.msra.gmra.mrb[0].mxu0 %v6498_v11 }
 0x2fe   : > { %4613 = vmatprep.mubr.f32.mxu0 %v7307_v50 }
 0x301   : > { %4614 = vmatmul.mubr.f32.gmra.mrb[2].mxu0 %v7308_v36 }
 0x32e   : > { %v6967_v34 = vpop.f32.mrb[36].mxu1 }
 0x32f   : > { %v6969_v55 = vpop.f32.mrb[37].mxu1 }
 0x332   : > { %v6971_v8 = vpop.f32.mrb[38].mxu1 }
 0x333   : > { %v6973_v53 = vpop.f32.mrb[39].mxu1 }
 0x336   : > { %v4226_v22 = vpop.f32.mrb[40].mxu1 }
 0x337   : > { %v1536_v42 = vpop.f32.mrb[41].mxu1 }
 0x33a   : > { %v4229_v18 = vpop.f32.mrb[42].mxu1 }
 0x33b   : > { %v1546_v47 = vpop.f32.mrb[43].mxu1 }
 0x33e   : > { %v4232_v6 = vpop.f32.mrb[44].mxu1 }
 0x33f   : > { %v1556_v37 = vpop.f32.mrb[45].mxu1 }
 0x342   : > { %v4235_v33 = vpop.f32.mrb[46].mxu1 }
 0x343   : > { %v1566_v11 = vpop.f32.mrb[47].mxu1 }
 0x346   : > { %v6975_v49 = vpop.f32.mrb[48].mxu1 }
 0x347   : > { %v6977_v40 = vpop.f32.mrb[49].mxu1 }
 0x34a   : > { %v6979_v24 = vpop.f32.mrb[50].mxu1 }
 0x34b   : > { %v6981_v43 = vpop.f32.mrb[51].mxu1 }
 0x350   : > { %v4618_v16 = vpop.f32.mrb[52].mxu1 }
 0x351   : > { %v3144_v59 = vpop.f32.mrb[53].mxu1 }
 0x354   : > { %v4621_v14 = vpop.f32.mrb[54].mxu1 }
 0x355   : > { %v3154_v17 = vpop.f32.mrb[55].mxu1 }
 0x358   : > { %v4624_v50 = vpop.f32.mrb[56].mxu1 }
 0x359   : > { %v3164_v36 = vpop.f32.mrb[57].mxu1 }
 0x35c   : > { %v4627_v5 = vpop.f32.mrb[58].mxu1 }
 0x35d   : > { %v3174_v35 = vpop.f32.mrb[59].mxu1 }
 0x360   : > { %v6983_v10 = vpop.f32.mrb[60].mxu1 }
 0x361   : > { %v6985_v21 = vpop.f32.mrb[61].mxu1 }
 0x364   : > { %v6987_v61 = vpop.f32.mrb[62].mxu1 }
 0x365   : > { %v6989_v7 = vpop.f32.mrb[63].mxu1 }
 0x3b8   : > { %v4562_v3 = vpop.f32.mrb[4].mxu0 }
 0x3b9   : > { %v5022_v38 = vadd.f32 %v4562_v3, %v4226_v22  ;;  %v2910_v4 = vpop.f32.mrb[5].mxu0 }
 0x3ba   : > { %v5024_v39 = vadd.f32 %v2910_v4, %v1536_v42  ;;  %v3327_v42 = vld [vmem:[%s6071_s11 + $0x39] sm:$0xff] }
 0x3bb   : > { %v5023_v52 = vadd.f32 %v5022_v38, %v4618_v16 }
 0x3bc   : > { %v5025_v57 = vadd.f32 %v5024_v39, %v3144_v59  ;;  %v4565_v44 = vpop.f32.mrb[6].mxu0  ;;  %v3326_v59 = vld [vmem:[%s6071_s11 + $0x31] sm:$0xff] }
 0x3bd   : > { %v3231_v23 = vadd.f32 %v5023_v52, %v6994_v0  ;;  %v5026_v29 = vadd.f32 %v4565_v44, %v4229_v18  ;;  %v2920_v27 = vpop.f32.mrb[7].mxu0 }
 0x3be   : > { %v3230_v45 = vadd.f32 %v5025_v57, %v6994_v0  ;;  %v5028_v28 = vadd.f32 %v2920_v27, %v1546_v47 }
 0x3bf   : > { %v3247_v41 = vadd.f32 3.0, %v3231_v23  ;;  %v5027_v9 = vadd.f32 %v5026_v29, %v4621_v14  ;;  %v3329_v29 = vld [vmem:[%s6071_s11 + $0x51] sm:$0xff] }
 0x3c0   : > { %v3246_v54 = vadd.f32 3.0, %v3230_v45  ;;  %v5029_v48 = vadd.f32 %v5028_v28, %v3154_v17  ;;  %v4568_v58 = vpop.f32.mrb[8].mxu0 }
 0x3c1   : > { %v3263_v1 = vmax.f32 %v3247_v41, 0.0  ;;  %v3233_v56 = vadd.f32 %v5027_v9, %v6994_v0  ;;  %v5030_v63 = vadd.f32 %v4568_v58, %v4232_v6  ;;  %v2930_v26 = vpop.f32.mrb[9].mxu0 }
 0x3c2   : > { %v3262_v12 = vmax.f32 %v3246_v54, 0.0  ;;  %v3232_v13 = vadd.f32 %v5029_v48, %v6994_v0  ;;  %v5032_v15 = vadd.f32 %v2930_v26, %v1556_v37 }
 0x3c3   : > { %v3279_v62 = vmin.f32 %v3263_v1, 6.0  ;;  %v3249_v25 = vadd.f32 3.0, %v3233_v56  ;;  %v5031_v51 = vadd.f32 %v5030_v63, %v4624_v50 }
 0x3c4   : > { %v3278_v2 = vmin.f32 %v3262_v12, 6.0  ;;  %v3248_v20 = vadd.f32 3.0, %v3232_v13  ;;  %v5033_v30 = vadd.f32 %v5032_v15, %v3164_v36  ;;  %v4571_v60 = vpop.f32.mrb[10].mxu0 }
 0x3c5   : > { %v3295_v32 = vmul.f32 %v3279_v62, %v3231_v23  ;;  %v3265_v46 = vmax.f32 %v3249_v25, 0.0  ;;  %v3235_v31 = vadd.f32 %v5031_v51, %v6994_v0  ;;  %v5034_v19 = vadd.f32 %v4571_v60, %v4235_v33  ;;  %v2940_v22 = vpop.f32.mrb[11].mxu0  ;;  %v3331_v51 = vld [vmem:[%s6071_s11 + $0x69] sm:$0xff]  ;;  %v3330_v60 = vld [vmem:[%s6071_s11 + $0x61] sm:$0xff] }
 0x3c6   : > { %v3294_v18 = vmul.f32 %v3278_v2, %v3230_v45  ;;  %v3264_v47 = vmax.f32 %v3248_v20, 0.0  ;;  %v3234_v6 = vadd.f32 %v5033_v30, %v6994_v0  ;;  %v5036_v37 = vadd.f32 %v2940_v22, %v1566_v11 }
 0x3c7   : > { %v3311_v16 = vmul.f32 0.16666667, %v3295_v32  ;;  %v3281_v14 = vmin.f32 %v3265_v46, 6.0  ;;  %v3251_v17 = vadd.f32 3.0, %v3235_v31  ;;  %v5035_v50 = vadd.f32 %v5034_v19, %v4627_v5 }
 0x3c8   : > { %v3310_v36 = vmul.f32 0.16666667, %v3294_v18  ;;  %v3280_v3 = vmin.f32 %v3264_v47, 6.0  ;;  %v3250_v38 = vadd.f32 3.0, %v3234_v6  ;;  %v5037_v4 = vadd.f32 %v5036_v37, %v3174_v35  ;;  %v4574_v33 = vpop.f32.mrb[12].mxu0  ;;  %v3328_v35 = vld [vmem:[%s6071_s11 + $0x49] sm:$0xff] }
 0x3c9   : > { %v3343_v39 = vadd.f32 %v3327_v42, %v3311_v16  ;;  %v3297_v52 = vmul.f32 %v3281_v14, %v3233_v56  ;;  %v3267_v57 = vmax.f32 %v3251_v17, 0.0  ;;  %v3237_v44 = vadd.f32 %v5035_v50, %v6994_v0  ;;  %v2950_v23 = vpop.f32.mrb[13].mxu0 }
 0x3ca   : > { %v3342_v11 = vadd.f32 %v3326_v59, %v3310_v36  ;;  %v3296_v27 = vmul.f32 %v3280_v3, %v3232_v13  ;;  %v3266_v45 = vmax.f32 %v3250_v38, 0.0  ;;  %v3236_v28 = vadd.f32 %v5037_v4, %v6994_v0  ;;  %v3333_v59 = vld [vmem:[%s6071_s11 + $0x81] sm:$0xff]  ;;  %v3332_v36 = vld [vmem:[%s6071_s11 + $0x79] sm:$0xff] }
 0x3cb   : > { %3359 = vst [vmem:[%s7010_s23 + $0x28] sm:$0xff] %v3343_v39  ;;  %v3313_v5 = vmul.f32 0.16666667, %v3297_v52  ;;  %v3283_v41 = vmin.f32 %v3267_v57, 6.0  ;;  %v3253_v9 = vadd.f32 3.0, %v3237_v44  ;;  %v5038_v54 = vadd.f32 %v4574_v33, %v6975_v49 }
 0x3cc   : > { %3358 = vst [vmem:[%s7010_s23 + $0x20] sm:$0xff] %v3342_v11  ;;  %v3312_v48 = vmul.f32 0.16666667, %v3296_v27  ;;  %v3282_v58 = vmin.f32 %v3266_v45, 6.0  ;;  %v3252_v1 = vadd.f32 3.0, %v3236_v28  ;;  %v5040_v56 = vadd.f32 %v2950_v23, %v6977_v40  ;;  %v4577_v63 = vpop.f32.mrb[14].mxu0 }
 0x3cd   : > { %v3345_v26 = vadd.f32 %v3329_v29, %v3313_v5  ;;  %v3299_v12 = vmul.f32 %v3283_v41, %v3235_v31  ;;  %v3269_v13 = vmax.f32 %v3253_v9, 0.0  ;;  %v5039_v15 = vadd.f32 %v5038_v54, %v6983_v10  ;;  %v2960_v62 = vpop.f32.mrb[15].mxu0  ;;  %v3335_v41 = vld [vmem:[%s6071_s11 + $0x99] sm:$0xff] }
 0x3ce   : > { %v3344_v25 = vadd.f32 %v3328_v35, %v3312_v48  ;;  %v3298_v2 = vmul.f32 %v3282_v58, %v3234_v6  ;;  %v3268_v49 = vmax.f32 %v3252_v1, 0.0  ;;  %v5041_v20 = vadd.f32 %v5040_v56, %v6985_v21  ;;  %v3334_v56 = vld [vmem:[%s6071_s11 + $0x91] sm:$0xff] }
 0x3cf   : > { %3361 = vst [vmem:[%s7010_s23 + $0x38] sm:$0xff] %v3345_v26  ;;  %v3315_v30 = vmul.f32 0.16666667, %v3299_v12  ;;  %v3285_v32 = vmin.f32 %v3269_v13, 6.0  ;;  %v3239_v40 = vadd.f32 %v5039_v15, %v6994_v0  ;;  %v5042_v46 = vadd.f32 %v4577_v63, %v6979_v24 }
 0x3d0   : > { %3360 = vst [vmem:[%s7010_s23 + $0x30] sm:$0xff] %v3344_v25  ;;  %v3314_v31 = vmul.f32 0.16666667, %v3298_v2  ;;  %v3284_v10 = vmin.f32 %v3268_v49, 6.0  ;;  %v3238_v19 = vadd.f32 %v5041_v20, %v6994_v0  ;;  %v5044_v22 = vadd.f32 %v2960_v62, %v6981_v43  ;;  %v4612_v42 = vpop.f32.mrb[0].mxu0  ;;  %v3337_v20 = vld [vmem:[%s6071_s11 + $0xb1] sm:$0xff] }
 0x3d1   : > { %v3347_v21 = vadd.f32 %v3331_v51, %v3315_v30  ;;  %v3301_v18 = vmul.f32 %v3285_v32, %v3237_v44  ;;  %v3255_v47 = vadd.f32 3.0, %v3239_v40  ;;  %v5043_v6 = vadd.f32 %v5042_v46, %v6987_v61  ;;  %v3124_v37 = vpop.f32.mrb[1].mxu0  ;;  %v3336_v46 = vld [vmem:[%s6071_s11 + $0xa9] sm:$0xff] }
 0x3d2   : > { %v3346_v16 = vadd.f32 %v3330_v60, %v3314_v31  ;;  %v3300_v24 = vmul.f32 %v3284_v10, %v3236_v28  ;;  %v3254_v14 = vadd.f32 3.0, %v3238_v19  ;;  %v5045_v17 = vadd.f32 %v5044_v22, %v6989_v7 }
 0x3d3   : > { %3363 = vst [vmem:[%s7010_s23 + $0x48] sm:$0xff] %v3347_v21  ;;  %v3317_v50 = vmul.f32 0.16666667, %v3301_v18  ;;  %v3271_v3 = vmax.f32 %v3255_v47, 0.0  ;;  %v3241_v43 = vadd.f32 %v5043_v6, %v6994_v0  ;;  %v5018_v38 = vadd.f32 %v4612_v42, %v6967_v34  ;;  %v3322_v47 = vld [vmem:[%s6071_s11 + $0x1] sm:$0xff] }
 0x3d4   : > { %3362 = vst [vmem:[%s7010_s23 + $0x40] sm:$0xff] %v3346_v16  ;;  %v3316_v4 = vmul.f32 0.16666667, %v3300_v24  ;;  %v3270_v33 = vmax.f32 %v3254_v14, 0.0  ;;  %v3240_v61 = vadd.f32 %v5045_v17, %v6994_v0  ;;  %v5019_v39 = vadd.f32 %v3124_v37, %v6969_v55  ;;  %v4615_v52 = vpop.f32.mrb[2].mxu0 }
 0x3d5   : > { %v3349_v7 = vadd.f32 %v3333_v59, %v3317_v50  ;;  %v3287_v57 = vmin.f32 %v3271_v3, 6.0  ;;  %v3257_v44 = vadd.f32 3.0, %v3241_v43  ;;  %v3227_v23 = vadd.f32 %v5018_v38, %v6994_v0  ;;  %v3134_v11 = vpop.f32.mrb[3].mxu0  ;;  %v3325_v50 = vld [vmem:[%s6071_s11 + $0x21] sm:$0xff] }
 0x3d6   : > { %v3348_v29 = vadd.f32 %v3332_v36, %v3316_v4  ;;  %v3286_v34 = vmin.f32 %v3270_v33, 6.0  ;;  %v3256_v27 = vadd.f32 3.0, %v3240_v61  ;;  %v3226_v45 = vadd.f32 %v5019_v39, %v6994_v0 }
 0x3d7   : > { %3365 = vst [vmem:[%s7010_s23 + $0x58] sm:$0xff] %v3349_v7  ;;  %v3303_v28 = vmul.f32 %v3287_v57, %v3239_v40  ;;  %v3273_v5 = vmax.f32 %v3257_v44, 0.0  ;;  %v3243_v35 = vadd.f32 3.0, %v3227_v23  ;;  %v5020_v55 = vadd.f32 %v4615_v52, %v6971_v8 }
 0x3d8   : > { %3364 = vst [vmem:[%s7010_s23 + $0x50] sm:$0xff] %v3348_v29  ;;  %v3302_v9 = vmul.f32 %v3286_v34, %v3238_v19  ;;  %v3272_v54 = vmax.f32 %v3256_v27, 0.0  ;;  %v3242_v48 = vadd.f32 3.0, %v3226_v45  ;;  %v5021_v58 = vadd.f32 %v3134_v11, %v6973_v53  ;;  %v3323_v19 = vld [vmem:[%s6071_s11 + $0x9] sm:$0xff] }
 0x3d9   : > { %v3319_v1 = vmul.f32 0.16666667, %v3303_v28  ;;  %v3289_v63 = vmin.f32 %v3273_v5, 6.0  ;;  %v3259_v26 = vmax.f32 %v3243_v35, 0.0  ;;  %v3229_v12 = vadd.f32 %v5020_v55, %v6994_v0 }
 0x3da   : > { %v3318_v13 = vmul.f32 0.16666667, %v3302_v9  ;;  %v3288_v15 = vmin.f32 %v3272_v54, 6.0  ;;  %v3258_v62 = vmax.f32 %v3242_v48, 0.0  ;;  %v3228_v8 = vadd.f32 %v5021_v58, %v6994_v0 }
 0x3db   : > { %v3351_v25 = vadd.f32 %v3335_v41, %v3319_v1  ;;  %v3305_v51 = vmul.f32 %v3289_v63, %v3241_v43  ;;  %v3275_v2 = vmin.f32 %v3259_v26, 6.0  ;;  %v3245_v53 = vadd.f32 3.0, %v3229_v12  ;;  %v3324_v43 = vld [vmem:[%s6071_s11 + $0x19] sm:$0xff]  ;;  %s5638_s11 = smov [#allocation12]  }
 0x3dc   : > { %v3350_v49 = vadd.f32 %v3334_v56, %v3318_v13  ;;  %v3304_v30 = vmul.f32 %v3288_v15, %v3240_v61  ;;  %v3274_v60 = vmin.f32 %v3258_v62, 6.0  ;;  %v3244_v32 = vadd.f32 3.0, %v3228_v8  ;;  %s5472_s7 = sshll.u32 %s5638_s11, 4  ;;  %s5473_s7 = int_to_ptr.vmem [resolvable:$false] %s5472_s7 }
 0x3dd   : > { %3367 = vst [vmem:[%s7010_s23 + $0x68] sm:$0xff] %v3351_v25  ;;  %v3321_v40 = vmul.f32 0.16666667, %v3305_v51  ;;  %v3291_v31 = vmul.f32 %v3275_v2, %v3227_v23  ;;  %v3261_v10 = vmax.f32 %v3245_v53, 0.0  ;;  %s5474_s21 = scalar_lea.vmem %s5473_s7, 4096  ;;  %p5475_p8 = scmp.lt.s32.totalorder %s7062_s1, %s5473_s7 }
 0x3de   : > { %3366 = vst [vmem:[%s7010_s23 + $0x60] sm:$0xff] %v3350_v49  ;;  %v3320_v0 = vmul.f32 0.16666667, %v3304_v30  ;;  %v3290_v22 = vmul.f32 %v3274_v60, %v3226_v45  ;;  %v3260_v42 = vmax.f32 %v3244_v32, 0.0  ;;  %p5476_p5 = scmp.lt.s32.totalorder %s5474_s21, %s5468_s20 }
 0x3df   : > { %v3353_v21 = vadd.f32 %v3337_v20, %v3321_v40  ;;  %v3307_v18 = vmul.f32 0.16666667, %v3291_v31  ;;  %v3277_v6 = vmin.f32 %v3261_v10, 6.0 }
 0x3e0   : > { %v3352_v37 = vadd.f32 %v3336_v46, %v3320_v0  ;;  %v3306_v16 = vmul.f32 0.16666667, %v3290_v22  ;;  %v3276_v59 = vmin.f32 %v3260_v42, 6.0  ;;  %p5477_p10 = por %p5476_p5, %p5475_p8 }
 0x3e1   : > { %3369 = vst [vmem:[%s7010_s23 + $0x78] sm:$0xff] %v3353_v21  ;;  %v3339_v24 = vadd.f32 %v3323_v19, %v3307_v18  ;;  %v3293_v14 = vmul.f32 %v3277_v6, %v3229_v12 }
 0x3e2   : > { %3368 = vst [vmem:[%s7010_s23 + $0x70] sm:$0xff] %v3352_v37  ;;  %v3338_v17 = vadd.f32 %v3322_v47, %v3306_v16  ;;  %v3292_v36 = vmul.f32 %v3276_v59, %v3228_v8  ;;  %p5478_p9 = pnand %p5477_p10, %p5471_p3 }
 0x3e3   : > { %3355 = vst [vmem:[%s7010_s23 + $0x8] sm:$0xff] %v3339_v24  ;;  %v3309_v3 = vmul.f32 0.16666667, %v3293_v14 }
 0x3e4   : > { %3354 = vst [vmem:[%s7010_s23] sm:$0xff] %v3338_v17  ;;  %v3308_v38 = vmul.f32 0.16666667, %v3292_v36 }
 0x3e5   : > { %v3341_v4 = vadd.f32 %v3325_v50, %v3309_v3 }
 0x3e6   : > { %v3340_v33 = vadd.f32 %v3324_v43, %v3308_v38 }
 0x3e7   : > { %3357 = vst [vmem:[%s7010_s23 + $0x18] sm:$0xff] %v3341_v4 }
 0x3e8   : > { %3356 = vst [vmem:[%s7010_s23 + $0x10] sm:$0xff] %v3340_v33 }
 0x3e9   : > { %5481 = shalt.err (!%p5478_p9)
}
 0x3ea   : > { %s5482_s28 = scalar_lea.hbm %s7067_s16, 2048  ;;  %s5486_s6 = scalar_lea.hbm %s7320_s2, 8192 }
 0x3eb   : > { %p5483_p11 = scmp.ne.s32.totalorder %s7067_s16, %s5482_s28  ;;  %p5487_p6 = scmp.lt.u32.totalorder %s7067_s16, %s7320_s2 }
 0x3ec   : > { %p5488_p13 = scmp.lt.u32.totalorder %s5486_s6, %s5482_s28  ;;  %p5490_p2 = scmp.lt.u32.totalorder %s5482_s28, %s7067_s16 }
 0x3ed   : > { %p5484_p4 = pnand %p5483_p11, %p7321_p0 }
 0x3ee   : > { %p5489_p1 = por %p5488_p13, %p5487_p6 }
 0x3ef   : > { %p5485_p7 = pneg %p5484_p4 }
 0x3f0   : > { %p5491_p12 = por %p5490_p2, %p5489_p1 }
 0x3f2   : > { %p5492_p3 = pnand %p5491_p12, %p5485_p7 }
 0x3f4   : > { %5495 = shalt.err (!%p5492_p3)
}
 0x3f5   : > { %s5639_s19 = smov 128   ;;  %s5640_s24 = smov 8  }
 0x3f6   : > { %5172 = dma.vmem_to_hbm [thread:$0]  (%p7321_p0), %s7062_s1, 2048, %s7067_s16, %s3371_s29, %s5639_s19, %s5639_s19, %s5640_s24  }
 0x3f7 PF: > { %p5200_p8 = scmp.ge.s32.totalorder %s5626_s14, 2  ;;  %s3402_s4 = sand.u32 1, %s5598_s30  }
 0x3f8   : > { %p7322_p5 = scmp.ne.s32.totalorder %s7245_s17, 0  ;;  %s3403_s20 = scalar_lea.sflag [#allocation5], %s3402_s4 }
 0x3fa   : > { %p5192_p10 = pnand %p5200_p8, %p7322_p5 }
 0x3fc   : > { %5569 = dma.done.wait (!%p5192_p10), %s3403_s20, 2048  }
 0x3fd   : > { %5571 = vsyncadd (!%p5192_p10), %s3403_s20, 4294965248  ;;  %s27_s14 = sadd.s32 1, %s5626_s14   ;;  %s7324_s27 = sld [smem:[#allocation19_spill]] }
 0x3fe   : > { %p7100_p9 = scmp.ge.s32.totalorder %s27_s14, 6   ;;  %s7325_s28 = sld [smem:[#allocation20_spill]] }
 0x3ff   : > { %s7326_s29 = sld [smem:[#allocation29_spill]]  ;;  %s7327_s13 = sld [smem:[#allocation30_spill]] }
 0x400   : > { %s7328_s17 = sld [smem:[#allocation23_spill]]  ;;  %s7329_s22 = sld [smem:[#allocation25_spill]] }
 0x401   : > { %s7330_s1 = sld [smem:[#allocation26_spill]]  ;;  %s7332_s24 = smov %s5578_s25 }
 0x402   : > { %s7333_s25 = smov %s5582_s26  ;;  %s7334_s26 = smov %s6019_s5 }
 0x403   : > { %s7335_s30 = smov %s5602_s8  ;;  %s7336_s8 = smov %s5606_s9 }
 0x404   : > { %s7338_s10 = smov %s5618_s12  ;;  %26 = sbr.rel (!%p7100_p9) target bundleno = 21 (0x15), region = 136 }
 0x405   : > { %s7337_s9 = smov %s7327_s13 }
 0x406   : > { %s7339_s11 = smov %s7328_s17  ;;  %s7340_s12 = smov %s7329_s22 }
 0x407   : > { %s7341_s13 = smov %s7330_s1 }
 0x40b   :  { %3408 = vsyncpa [#allocation4], 1 }
 0x40c   :  { %3410 = vsyncpa [#allocation4 + $0x1], 1 }
 0x40d   :  { %3411 = vsyncpa [#allocation7], 1 }
 0x40e   :  { %3413 = vsyncpa [#allocation7 + $0x1], 1 }
 0x40f   :  { %3414 = vsyncpa [#allocation10], 1 }
 0x410   :  { %3415 = vsyncpa [#allocation5], 1 }
 0x411   :  { %3417 = vsyncpa [#allocation5 + $0x1], 1 }

</bundles_post_ra>
